<compile_context>
chip_gen: v6e
topology: v6e:2x2x1
jax: 0.10.0
libtpu: 0.0.40
codegen_flags: <defaults>
</compile_context>

<pallas_src>
import functools

import jax
import jax.numpy as jnp
from jax import lax
from jax.experimental import pallas as pl
from jax.experimental.pallas import tpu as pltpu


def _attention_kernel(num_heads, head_dim, H, W, D, fold_qr,
                      xq_ref, xf_ref, wq_ref, bq_ref, wkv_ref, bkv_ref,
                      *rest):
    if fold_qr:
        (ohq_ref, ohk_ref, wp_ref, bp_ref, o_ref) = rest
        rm_ref = None
    else:
        (rm_ref, ohq_ref, ohk_ref, wp_ref, bp_ref, o_ref) = rest

    C = num_heads * head_dim
    S2 = H * H + W * W + D * D
    bf16 = jnp.bfloat16

    # ---- Q projection for this query tile (plus folded qr columns when small C)
    xq = xq_ref[0]                                                    # (TQ, C) bf16
    q_all = (jnp.dot(xq, wq_ref[...], preferred_element_type=jnp.float32)
             + bq_ref[...]).astype(bf16)                              # (TQ, C[+nh*S2])

    # ---- K/V projection for ALL keys (softmax scale pre-folded into K columns)
    xf = xf_ref[0]                                                    # (N, C) bf16
    kv = (jnp.dot(xf, wkv_ref[...], preferred_element_type=jnp.float32)
          + bkv_ref[...]).astype(bf16)                                # (N, 2C) bf16

    ohq = ohq_ref[...]                                                # (TQ, H+W+D) bf16
    ohk = ohk_ref[...]                                                # (N,  H+W+D) bf16

    sizes = (H, W, D)
    axis_off = (0, H, H + W)
    qr_base = (0, H * H, H * H + W * W)

    outs = []
    for h in range(num_heads):
        lo = h * head_dim
        q = q_all[:, lo:lo + head_dim]                                # (TQ, hd) bf16
        k = kv[:, lo:lo + head_dim]                                   # (N, hd) bf16, pre-scaled
        v = kv[:, C + lo:C + lo + head_dim]                           # (N, hd) bf16

        # decomposed rel-pos "query" term:
        #   qr[:, base + i*size + kk] = lr * (q . R_axis[i, kk, :])
        if fold_qr:
            qr = q_all[:, C + h * S2: C + (h + 1) * S2]               # (TQ, S2) bf16
        else:
            qr = jnp.dot(q, rm_ref[...],
                         preferred_element_type=jnp.float32)          # (TQ, S2) f32

        # query-side one-hot selection (pm is 0/1 -> exact select, pure VPU work)
        # TODO(synk): if the MLIR shows lane-rotate copies for these column
        #             slices, restructure the select (sublane-indexed view).
        rel_parts = []
        for size, aoff, base in zip(sizes, axis_off, qr_base):
            pm = ohq[:, aoff:aoff + size]                             # (TQ, size)
            rel = pm[:, 0:1] * qr[:, base:base + size]
            for i in range(1, size):
                rel = rel + pm[:, i:i + 1] * qr[:, base + i * size:
                                                 base + (i + 1) * size]
            rel_parts.append(rel.astype(bf16))                        # (TQ, size)

        # ONE fused MXU pass over the (TQ, N) scores:
        #   [q | rel_h | rel_w | rel_d] @ [k | oh_h | oh_w | oh_d]^T
        lhs = jnp.concatenate([q] + rel_parts, axis=1)                # (TQ, hd+H+W+D)
        rhs = jnp.concatenate([k, ohk], axis=1)                       # (N,  hd+H+W+D)
        attn = lax.dot_general(lhs, rhs, (((1,), (1,)), ((), ())),
                               preferred_element_type=jnp.float32)    # (TQ, N) f32

        # softmax over keys: f32 stats, EUP exp, approx reciprocal + VPU multiply
        attn = attn - jnp.max(attn, axis=-1, keepdims=True)
        p = jnp.exp(attn)
        p = p * pl.reciprocal(jnp.sum(p, axis=-1, keepdims=True), approx=True)

        outs.append(jnp.dot(p.astype(bf16), v,
                            preferred_element_type=jnp.float32))      # (TQ, hd) f32

    # lane-dense head concat (no masked sub-128-lane scatter, no scratch RMW),
    # single wide output projection + bias, single store.
    out_all = jnp.concatenate(outs, axis=1).astype(bf16)              # (TQ, C) bf16
    o_ref[0] = jnp.dot(out_all, wp_ref[...],
                       preferred_element_type=jnp.float32) + bp_ref[...]


def _get_rel_pos_same(size, rel_pos):
    # q_size == k_size and rel_pos.shape[0] == 2*size-1 -> no interpolation branch
    coords = jnp.arange(size)[:, None] - jnp.arange(size)[None, :] + (size - 1)
    return rel_pos[coords]                                            # (size, size, hd)


def attention_3d_forward(x, params, num_heads, *, tq=None, fold_qr=None):
    B, H, W, D, C = x.shape
    N = H * W * D
    hd = C // num_heads
    scale = hd ** (-0.5)
    S2 = H * H + W * W + D * D
    HWD = H + W + D
    f32, bf16 = jnp.float32, jnp.bfloat16

    if tq is None:
        tq = min(N, 1024)
    assert N % tq == 0 and (tq % 8 == 0 or tq == N)
    num_qt = N // tq

    if fold_qr is None:
        # Fold rel-pos tables into the Q projection only for small-C configs.
        fold_qr = C <= 256

    x_flat = x.reshape(B, N, C).astype(bf16)

    # qkv weight (3C, C) torch layout -> split into Q and KV projections,
    # fold the softmax scale into the K columns (q stays unscaled for rel-pos).
    w_qkv = jnp.asarray(params["w_qkv"], f32)
    b_qkv = jnp.asarray(params["b_qkv"], f32)
    wq_t = w_qkv[:C].T                                                # (C, C)
    wk_t = w_qkv[C:2 * C].T * scale
    wv_t = w_qkv[2 * C:].T
    bq = b_qkv[:C]
    bk = b_qkv[C:2 * C] * scale
    bv = b_qkv[2 * C:]
    w_kv_t = jnp.concatenate([wk_t, wv_t], axis=1).astype(bf16)       # (C, 2C)
    b_kv = jnp.concatenate([bk, bv]).reshape(1, 2 * C)                # f32

    # rel-pos tables with lr folded in, flattened to (hd, H^2 + W^2 + D^2):
    #   rm[:, base + i*size + kk] = lr * R_axis[i, kk, :]
    lr = jnp.asarray(params["lr"], f32)
    Rh = _get_rel_pos_same(H, jnp.asarray(params["rel_pos_h"], f32)) * lr
    Rw = _get_rel_pos_same(W, jnp.asarray(params["rel_pos_w"], f32)) * lr
    Rd = _get_rel_pos_same(D, jnp.asarray(params["rel_pos_d"], f32)) * lr
    rm = jnp.concatenate([Rh.transpose(2, 0, 1).reshape(hd, H * H),
                          Rw.transpose(2, 0, 1).reshape(hd, W * W),
                          Rd.transpose(2, 0, 1).reshape(hd, D * D)],
                         axis=1)                                      # (hd, S2) f32

    if fold_qr:
        # qr_h = q_h @ rm = x @ (Wq_h^T @ rm) + (bq_h @ rm): append nh*S2 columns.
        extra_w = jnp.concatenate(
            [wq_t[:, h * hd:(h + 1) * hd] @ rm for h in range(num_heads)], axis=1)
        extra_b = jnp.concatenate(
            [bq[h * hd:(h + 1) * hd] @ rm for h in range(num_heads)])
        w_q_t = jnp.concatenate([wq_t, extra_w], axis=1).astype(bf16)  # (C, C+nh*S2)
        b_q = jnp.concatenate([bq, extra_b]).reshape(1, -1)            # f32
    else:
        w_q_t = wq_t.astype(bf16)                                      # (C, C)
        b_q = bq.reshape(1, C)

    # merged lane-dense query/key one-hots (shared for selection & expansion)
    n = jnp.arange(N)
    ih, iw, idd = n // (W * D), (n // D) % W, n % D
    onehot = jnp.concatenate(
        [(ih[:, None] == jnp.arange(H)[None, :]),
         (iw[:, None] == jnp.arange(W)[None, :]),
         (idd[:, None] == jnp.arange(D)[None, :])], axis=1).astype(bf16)  # (N, HWD)

    w_proj_t = jnp.asarray(params["w_proj"], f32).T.astype(bf16)       # (C, C)
    b_proj = jnp.asarray(params["b_proj"], f32).reshape(1, C)

    def inv(shape):  # grid-invariant full-array block
        nd = len(shape)
        return pl.BlockSpec(shape, lambda *args, _nd=nd: (0,) * _nd)

    inputs = [x_flat, x_flat, w_q_t, b_q, w_kv_t, b_kv]
    in_specs = [
        pl.BlockSpec((1, tq, C), lambda b, t: (b, t, 0)),   # x query tile
        pl.BlockSpec((1, N, C), lambda b, t: (b, 0, 0)),    # x full (K/V), once per b
        inv((C, w_q_t.shape[1])),                           # Wq^T (+ folded rel cols)
        inv((1, b_q.shape[1])),                             # bq   (+ folded rel bias)
        inv((C, 2 * C)),                                    # Wkv^T (K cols pre-scaled)
        inv((1, 2 * C)),                                    # bkv
    ]
    if not fold_qr:
        inputs.append(rm.astype(bf16))
        in_specs.append(inv((hd, S2)))                      # flattened rel-pos tables
    inputs += [onehot, onehot, w_proj_t, b_proj]
    in_specs += [
        pl.BlockSpec((tq, HWD), lambda b, t: (t, 0)),       # query-side one-hots (tile)
        inv((N, HWD)),                                      # key-side one-hots (full)
        inv((C, C)),                                        # Wproj^T
        inv((1, C)),                                        # bproj
    ]
    out_specs = pl.BlockSpec((1, tq, C), lambda b, t: (b, t, 0))

    # generation-aware scoped-VMEM limit (<= ~56 MiB on v7x, ~100 MiB on v5e/v6e)
    try:
        vmem_cap = pltpu.get_tpu_info().vmem_capacity_bytes
    except Exception:
        vmem_cap = 64 * 1024 * 1024
    vmem_limit = int(min(0.875 * vmem_cap, 100 * 1024 * 1024))

    kernel = functools.partial(_attention_kernel, num_heads, hd, H, W, D, fold_qr)

    out = pl.pallas_call(
        kernel,
        out_shape=jax.ShapeDtypeStruct((B, N, C), jnp.float32),
        grid_spec=pltpu.PrefetchScalarGridSpec(
            num_scalar_prefetch=0,
            grid=(B, num_qt),
            in_specs=in_specs,
            out_specs=out_specs,
        ),
        compiler_params=pltpu.CompilerParams(
            dimension_semantics=("parallel", "parallel"),
            vmem_limit_bytes=vmem_limit),
    )(*inputs)

    return out.reshape(B, H, W, D, C)


def reference_attention_3d(x, params, num_heads):
    """Pure-JAX f32 transliteration of the PyTorch forward (use_rel_pos=True, mask=None)."""
    B, H, W, D, C = x.shape
    N = H * W * D
    hd = C // num_heads
    scale = hd ** (-0.5)

    xf = x.reshape(B, N, C)
    qkv = xf @ params["w_qkv"].T + params["b_qkv"]
    qkv = qkv.reshape(B, N, 3, num_heads, hd).transpose(2, 0, 3, 1, 4)
    q, k, v = qkv[0], qkv[1], qkv[2]                                   # (B, nh, N, hd)
    attn = (q * scale) @ jnp.swapaxes(k, -1, -2)                       # (B, nh, N, N)

    Rh = _get_rel_pos_same(H, params["rel_pos_h"])
    Rw = _get_rel_pos_same(W, params["rel_pos_w"])
    Rd = _get_rel_pos_same(D, params["rel_pos_d"])
    r_q = q.reshape(B * num_heads, H, W, D, hd)
    rel_h = jnp.einsum("bhwdc,hkc->bhwdk", r_q, Rh)
    rel_w = jnp.einsum("bhwdc,wkc->bhwdk", r_q, Rw)
    rel_d = jnp.einsum("bhwdc,dkc->bhwdk", r_q, Rd)
    lr = params["lr"]
    attn = (attn.reshape(B * num_heads, H, W, D, H, W, D)
            + lr * rel_h[:, :, :, :, :, None, None]
            + lr * rel_w[:, :, :, :, None, :, None]
            + lr * rel_d[:, :, :, :, None, None, :]).reshape(B, num_heads, N, N)

    attn = jax.nn.softmax(attn, axis=-1)
    out = attn @ v                                                     # (B, nh, N, hd)
    out = out.transpose(0, 2, 1, 3).reshape(B, N, C)
    out = out @ params["w_proj"].T + params["b_proj"]
    return out.reshape(B, H, W, D, C)


if __name__ == "__main__":
    B, H, W, D = 2, 4, 4, 4
    dim, num_heads = 32, 4
    hd = dim // num_heads

    key = jax.random.PRNGKey(0)
    keys = jax.random.split(key, 8)
    x = jax.random.normal(keys[0], (B, H, W, D, dim), jnp.float32)
    params = dict(
        w_qkv=0.05 * jax.random.normal(keys[1], (3 * dim, dim), jnp.float32),
        b_qkv=0.05 * jax.random.normal(keys[2], (3 * dim,), jnp.float32),
        w_proj=0.05 * jax.random.normal(keys[3], (dim, dim), jnp.float32),
        b_proj=0.05 * jax.random.normal(keys[4], (dim,), jnp.float32),
        rel_pos_h=0.05 * jax.random.normal(keys[5], (2 * H - 1, hd), jnp.float32),
        rel_pos_w=0.05 * jax.random.normal(keys[6], (2 * W - 1, hd), jnp.float32),
        rel_pos_d=0.05 * jax.random.normal(keys[7], (2 * D - 1, hd), jnp.float32),
        lr=jnp.float32(1.0),
    )

    ref = reference_attention_3d(x, params, num_heads)

    # Path 1: small-C config -> rel tables folded into the Q projection, 2 query tiles.
    out_fold = jax.block_until_ready(
        attention_3d_forward(x, params, num_heads, tq=32))
    # Path 2: generic path (per-head qr matmul with the rm input), single query tile.
    out_gen = jax.block_until_ready(
        attention_3d_forward(x, params, num_heads, tq=H * W * D, fold_qr=False))

    assert out_fold.shape == (B, H, W, D, dim)
    assert out_gen.shape == (B, H, W, D, dim)
    # bf16 MXU operands with f32 accumulation + approx-reciprocal softmax:
    # allow bf16-level rounding error.
    err_fold = float(jnp.max(jnp.abs(out_fold - ref)))
    err_gen = float(jnp.max(jnp.abs(out_gen - ref)))
    assert err_fold < 2e-2, f"max abs err (folded path) {err_fold}"
    assert err_gen < 2e-2, f"max abs err (generic path) {err_gen}"
    print("KERNEL_OK")
</pallas_src>

<mosaic_0001>
module attributes {stable_mosaic.version = 11 : i64} {
  func.func @_attention_kernel(%arg0: i32, %arg1: i32, %arg2: memref<1x32x32xbf16, #tpu.memory_space<vmem>>, %arg3: memref<1x64x32xbf16, #tpu.memory_space<vmem>>, %arg4: memref<32x224xbf16, #tpu.memory_space<vmem>>, %arg5: memref<1x224xf32, #tpu.memory_space<vmem>>, %arg6: memref<32x64xbf16, #tpu.memory_space<vmem>>, %arg7: memref<1x64xf32, #tpu.memory_space<vmem>>, %arg8: memref<32x12xbf16, #tpu.memory_space<vmem>>, %arg9: memref<64x12xbf16, #tpu.memory_space<vmem>>, %arg10: memref<32x32xbf16, #tpu.memory_space<vmem>>, %arg11: memref<1x32xf32, #tpu.memory_space<vmem>>, %arg12: memref<1x32x32xf32, #tpu.memory_space<vmem>>) attributes {dimension_semantics = [#tpu.dimension_semantics<parallel>, #tpu.dimension_semantics<parallel>], iteration_bounds = array<i64: 2, 2>, scalar_prefetch = 0 : i64, scratch_operands = 0 : i64, tpu.core_type = #tpu.core_type<tc>, window_params = [{transform_indices = @transform_0, window_bounds = array<i64: 1, 32, 32>}, {transform_indices = @transform_1, window_bounds = array<i64: 1, 64, 32>}, {pipeline_mode = #tpu.pipeline_mode<synchronous>, transform_indices = @transform_2, window_bounds = array<i64: 32, 224>}, {pipeline_mode = #tpu.pipeline_mode<synchronous>, transform_indices = @transform_3, window_bounds = array<i64: 1, 224>}, {pipeline_mode = #tpu.pipeline_mode<synchronous>, transform_indices = @transform_4, window_bounds = array<i64: 32, 64>}, {pipeline_mode = #tpu.pipeline_mode<synchronous>, transform_indices = @transform_5, window_bounds = array<i64: 1, 64>}, {transform_indices = @transform_6, window_bounds = array<i64: 32, 12>}, {pipeline_mode = #tpu.pipeline_mode<synchronous>, transform_indices = @transform_7, window_bounds = array<i64: 64, 12>}, {pipeline_mode = #tpu.pipeline_mode<synchronous>, transform_indices = @transform_8, window_bounds = array<i64: 32, 32>}, {pipeline_mode = #tpu.pipeline_mode<synchronous>, transform_indices = @transform_9, window_bounds = array<i64: 1, 32>}, {transform_indices = @transform_10, window_bounds = array<i64: 1, 32, 32>}]} {
    %c0 = arith.constant 0 : index
    %c0_0 = arith.constant 0 : index
    %c0_1 = arith.constant 0 : index
    %0 = vector.load %arg2[%c0, %c0_0, %c0_1] : memref<1x32x32xbf16, #tpu.memory_space<vmem>>, vector<1x32x32xbf16>
    %1 = vector.shape_cast %0 : vector<1x32x32xbf16> to vector<32x32xbf16>
    %c0_2 = arith.constant 0 : index
    %c0_3 = arith.constant 0 : index
    %2 = vector.load %arg4[%c0_2, %c0_3] : memref<32x224xbf16, #tpu.memory_space<vmem>>, vector<32x224xbf16>
    %cst = arith.constant dense<0.000000e+00> : vector<32x224xf32>
    %3 = tpu.matmul %1, %2, %cst {dimension_numbers = #tpu.dot_dimension_numbers<[1], [0], [0], [1], [0, 0, 1, 1], [], []>} : vector<32x32xbf16>, vector<32x224xbf16>, vector<32x224xf32> -> vector<32x224xf32>
    %c0_4 = arith.constant 0 : index
    %c0_5 = arith.constant 0 : index
    %4 = vector.load %arg5[%c0_4, %c0_5] : memref<1x224xf32, #tpu.memory_space<vmem>>, vector<1x224xf32>
    %5 = vector.broadcast %4 : vector<1x224xf32> to vector<32x224xf32>
    %6 = arith.addf %3, %5 : vector<32x224xf32>
    %7 = arith.truncf %6 : vector<32x224xf32> to vector<32x224xbf16>
    %c0_6 = arith.constant 0 : index
    %c0_7 = arith.constant 0 : index
    %c0_8 = arith.constant 0 : index
    %8 = vector.load %arg3[%c0_6, %c0_7, %c0_8] : memref<1x64x32xbf16, #tpu.memory_space<vmem>>, vector<1x64x32xbf16>
    %9 = vector.shape_cast %8 : vector<1x64x32xbf16> to vector<64x32xbf16>
    %c0_9 = arith.constant 0 : index
    %c0_10 = arith.constant 0 : index
    %10 = vector.load %arg6[%c0_9, %c0_10] : memref<32x64xbf16, #tpu.memory_space<vmem>>, vector<32x64xbf16>
    %cst_11 = arith.constant dense<0.000000e+00> : vector<64x64xf32>
    %11 = tpu.matmul %9, %10, %cst_11 {dimension_numbers = #tpu.dot_dimension_numbers<[1], [0], [0], [1], [0, 0, 1, 1], [], []>} : vector<64x32xbf16>, vector<32x64xbf16>, vector<64x64xf32> -> vector<64x64xf32>
    %c0_12 = arith.constant 0 : index
    %c0_13 = arith.constant 0 : index
    %12 = vector.load %arg7[%c0_12, %c0_13] : memref<1x64xf32, #tpu.memory_space<vmem>>, vector<1x64xf32>
    %13 = vector.broadcast %12 : vector<1x64xf32> to vector<64x64xf32>
    %14 = arith.addf %11, %13 : vector<64x64xf32>
    %15 = arith.truncf %14 : vector<64x64xf32> to vector<64x64xbf16>
    %c0_14 = arith.constant 0 : index
    %c0_15 = arith.constant 0 : index
    %16 = vector.load %arg8[%c0_14, %c0_15] : memref<32x12xbf16, #tpu.memory_space<vmem>>, vector<32x12xbf16>
    %c0_16 = arith.constant 0 : index
    %c0_17 = arith.constant 0 : index
    %17 = vector.load %arg9[%c0_16, %c0_17] : memref<64x12xbf16, #tpu.memory_space<vmem>>, vector<64x12xbf16>
    %18 = vector.extract_strided_slice %7 {offsets = [0, 0], sizes = [32, 8], strides = [1, 1]} : vector<32x224xbf16> to vector<32x8xbf16>
    %19 = vector.extract_strided_slice %15 {offsets = [0, 0], sizes = [64, 8], strides = [1, 1]} : vector<64x64xbf16> to vector<64x8xbf16>
    %20 = vector.extract_strided_slice %15 {offsets = [0, 32], sizes = [64, 8], strides = [1, 1]} : vector<64x64xbf16> to vector<64x8xbf16>
    %21 = vector.extract_strided_slice %7 {offsets = [0, 32], sizes = [32, 48], strides = [1, 1]} : vector<32x224xbf16> to vector<32x48xbf16>
    %22 = vector.extract_strided_slice %16 {offsets = [0, 0], sizes = [32, 4], strides = [1, 1]} : vector<32x12xbf16> to vector<32x4xbf16>
    %23 = vector.extract_strided_slice %22 {offsets = [0, 0], sizes = [32, 1], strides = [1, 1]} : vector<32x4xbf16> to vector<32x1xbf16>
    %24 = vector.extract_strided_slice %21 {offsets = [0, 0], sizes = [32, 4], strides = [1, 1]} : vector<32x48xbf16> to vector<32x4xbf16>
    %25 = vector.broadcast %23 : vector<32x1xbf16> to vector<32x4xbf16>
    %26 = arith.mulf %25, %24 : vector<32x4xbf16>
    %27 = vector.extract_strided_slice %22 {offsets = [0, 1], sizes = [32, 1], strides = [1, 1]} : vector<32x4xbf16> to vector<32x1xbf16>
    %28 = vector.extract_strided_slice %21 {offsets = [0, 4], sizes = [32, 4], strides = [1, 1]} : vector<32x48xbf16> to vector<32x4xbf16>
    %29 = vector.broadcast %27 : vector<32x1xbf16> to vector<32x4xbf16>
    %30 = arith.mulf %29, %28 : vector<32x4xbf16>
    %31 = arith.addf %26, %30 : vector<32x4xbf16>
    %32 = vector.extract_strided_slice %22 {offsets = [0, 2], sizes = [32, 1], strides = [1, 1]} : vector<32x4xbf16> to vector<32x1xbf16>
    %33 = vector.extract_strided_slice %21 {offsets = [0, 8], sizes = [32, 4], strides = [1, 1]} : vector<32x48xbf16> to vector<32x4xbf16>
    %34 = vector.broadcast %32 : vector<32x1xbf16> to vector<32x4xbf16>
    %35 = arith.mulf %34, %33 : vector<32x4xbf16>
    %36 = arith.addf %31, %35 : vector<32x4xbf16>
    %37 = vector.extract_strided_slice %22 {offsets = [0, 3], sizes = [32, 1], strides = [1, 1]} : vector<32x4xbf16> to vector<32x1xbf16>
    %38 = vector.extract_strided_slice %21 {offsets = [0, 12], sizes = [32, 4], strides = [1, 1]} : vector<32x48xbf16> to vector<32x4xbf16>
    %39 = vector.broadcast %37 : vector<32x1xbf16> to vector<32x4xbf16>
    %40 = arith.mulf %39, %38 : vector<32x4xbf16>
    %41 = arith.addf %36, %40 : vector<32x4xbf16>
    %42 = vector.extract_strided_slice %16 {offsets = [0, 4], sizes = [32, 4], strides = [1, 1]} : vector<32x12xbf16> to vector<32x4xbf16>
    %43 = vector.extract_strided_slice %42 {offsets = [0, 0], sizes = [32, 1], strides = [1, 1]} : vector<32x4xbf16> to vector<32x1xbf16>
    %44 = vector.extract_strided_slice %21 {offsets = [0, 16], sizes = [32, 4], strides = [1, 1]} : vector<32x48xbf16> to vector<32x4xbf16>
    %45 = vector.broadcast %43 : vector<32x1xbf16> to vector<32x4xbf16>
    %46 = arith.mulf %45, %44 : vector<32x4xbf16>
    %47 = vector.extract_strided_slice %42 {offsets = [0, 1], sizes = [32, 1], strides = [1, 1]} : vector<32x4xbf16> to vector<32x1xbf16>
    %48 = vector.extract_strided_slice %21 {offsets = [0, 20], sizes = [32, 4], strides = [1, 1]} : vector<32x48xbf16> to vector<32x4xbf16>
    %49 = vector.broadcast %47 : vector<32x1xbf16> to vector<32x4xbf16>
    %50 = arith.mulf %49, %48 : vector<32x4xbf16>
    %51 = arith.addf %46, %50 : vector<32x4xbf16>
    %52 = vector.extract_strided_slice %42 {offsets = [0, 2], sizes = [32, 1], strides = [1, 1]} : vector<32x4xbf16> to vector<32x1xbf16>
    %53 = vector.extract_strided_slice %21 {offsets = [0, 24], sizes = [32, 4], strides = [1, 1]} : vector<32x48xbf16> to vector<32x4xbf16>
    %54 = vector.broadcast %52 : vector<32x1xbf16> to vector<32x4xbf16>
    %55 = arith.mulf %54, %53 : vector<32x4xbf16>
    %56 = arith.addf %51, %55 : vector<32x4xbf16>
    %57 = vector.extract_strided_slice %42 {offsets = [0, 3], sizes = [32, 1], strides = [1, 1]} : vector<32x4xbf16> to vector<32x1xbf16>
    %58 = vector.extract_strided_slice %21 {offsets = [0, 28], sizes = [32, 4], strides = [1, 1]} : vector<32x48xbf16> to vector<32x4xbf16>
    %59 = vector.broadcast %57 : vector<32x1xbf16> to vector<32x4xbf16>
    %60 = arith.mulf %59, %58 : vector<32x4xbf16>
    %61 = arith.addf %56, %60 : vector<32x4xbf16>
    %62 = vector.extract_strided_slice %16 {offsets = [0, 8], sizes = [32, 4], strides = [1, 1]} : vector<32x12xbf16> to vector<32x4xbf16>
    %63 = vector.extract_strided_slice %62 {offsets = [0, 0], sizes = [32, 1], strides = [1, 1]} : vector<32x4xbf16> to vector<32x1xbf16>
    %64 = vector.extract_strided_slice %21 {offsets = [0, 32], sizes = [32, 4], strides = [1, 1]} : vector<32x48xbf16> to vector<32x4xbf16>
    %65 = vector.broadcast %63 : vector<32x1xbf16> to vector<32x4xbf16>
    %66 = arith.mulf %65, %64 : vector<32x4xbf16>
    %67 = vector.extract_strided_slice %62 {offsets = [0, 1], sizes = [32, 1], strides = [1, 1]} : vector<32x4xbf16> to vector<32x1xbf16>
    %68 = vector.extract_strided_slice %21 {offsets = [0, 36], sizes = [32, 4], strides = [1, 1]} : vector<32x48xbf16> to vector<32x4xbf16>
    %69 = vector.broadcast %67 : vector<32x1xbf16> to vector<32x4xbf16>
    %70 = arith.mulf %69, %68 : vector<32x4xbf16>
    %71 = arith.addf %66, %70 : vector<32x4xbf16>
    %72 = vector.extract_strided_slice %62 {offsets = [0, 2], sizes = [32, 1], strides = [1, 1]} : vector<32x4xbf16> to vector<32x1xbf16>
    %73 = vector.extract_strided_slice %21 {offsets = [0, 40], sizes = [32, 4], strides = [1, 1]} : vector<32x48xbf16> to vector<32x4xbf16>
    %74 = vector.broadcast %72 : vector<32x1xbf16> to vector<32x4xbf16>
    %75 = arith.mulf %74, %73 : vector<32x4xbf16>
    %76 = arith.addf %71, %75 : vector<32x4xbf16>
    %77 = vector.extract_strided_slice %62 {offsets = [0, 3], sizes = [32, 1], strides = [1, 1]} : vector<32x4xbf16> to vector<32x1xbf16>
    %78 = vector.extract_strided_slice %21 {offsets = [0, 44], sizes = [32, 4], strides = [1, 1]} : vector<32x48xbf16> to vector<32x4xbf16>
    %79 = vector.broadcast %77 : vector<32x1xbf16> to vector<32x4xbf16>
    %80 = arith.mulf %79, %78 : vector<32x4xbf16>
    %81 = arith.addf %76, %80 : vector<32x4xbf16>
    %82 = tpu.concatenate %18, %41, %61, %81 in 1 : vector<32x8xbf16>, vector<32x4xbf16>, vector<32x4xbf16>, vector<32x4xbf16> -> vector<32x20xbf16>
    %83 = tpu.concatenate %19, %17 in 1 : vector<64x8xbf16>, vector<64x12xbf16> -> vector<64x20xbf16>
    %cst_18 = arith.constant dense<0.000000e+00> : vector<32x64xf32>
    %84 = tpu.matmul %82, %83, %cst_18 {dimension_numbers = #tpu.dot_dimension_numbers<[1], [1], [0], [0], [0, 0, 1, 0], [], []>} : vector<32x20xbf16>, vector<64x20xbf16>, vector<32x64xf32> -> vector<32x64xf32>
    %cst_19 = arith.constant dense<0xFF800000> : vector<32xf32>
    %85 = vector.multi_reduction <maximumf>, %84, %cst_19 [1] : vector<32x64xf32> to vector<32xf32>
    %86 = vector.shape_cast %85 : vector<32xf32> to vector<32x1xf32>
    %87 = vector.broadcast %86 : vector<32x1xf32> to vector<32x64xf32>
    %88 = arith.subf %84, %87 : vector<32x64xf32>
    %89 = math.exp %88 : vector<32x64xf32>
    %cst_20 = arith.constant dense<0.000000e+00> : vector<32xf32>
    %90 = vector.multi_reduction <add>, %89, %cst_20 [1] : vector<32x64xf32> to vector<32xf32>
    %91 = vector.shape_cast %90 : vector<32xf32> to vector<32x1xf32>
    %92 = tpu.reciprocal %91 {approx = true} : vector<32x1xf32> -> vector<32x1xf32>
    %93 = vector.broadcast %92 : vector<32x1xf32> to vector<32x64xf32>
    %94 = arith.mulf %89, %93 : vector<32x64xf32>
    %95 = arith.truncf %94 : vector<32x64xf32> to vector<32x64xbf16>
    %cst_21 = arith.constant dense<0.000000e+00> : vector<32x8xf32>
    %96 = tpu.matmul %95, %20, %cst_21 {dimension_numbers = #tpu.dot_dimension_numbers<[1], [0], [0], [1], [0, 0, 1, 1], [], []>} : vector<32x64xbf16>, vector<64x8xbf16>, vector<32x8xf32> -> vector<32x8xf32>
    %97 = vector.extract_strided_slice %7 {offsets = [0, 8], sizes = [32, 8], strides = [1, 1]} : vector<32x224xbf16> to vector<32x8xbf16>
    %98 = vector.extract_strided_slice %15 {offsets = [0, 8], sizes = [64, 8], strides = [1, 1]} : vector<64x64xbf16> to vector<64x8xbf16>
    %99 = vector.extract_strided_slice %15 {offsets = [0, 40], sizes = [64, 8], strides = [1, 1]} : vector<64x64xbf16> to vector<64x8xbf16>
    %100 = vector.extract_strided_slice %7 {offsets = [0, 80], sizes = [32, 48], strides = [1, 1]} : vector<32x224xbf16> to vector<32x48xbf16>
    %101 = vector.extract_strided_slice %16 {offsets = [0, 0], sizes = [32, 4], strides = [1, 1]} : vector<32x12xbf16> to vector<32x4xbf16>
    %102 = vector.extract_strided_slice %101 {offsets = [0, 0], sizes = [32, 1], strides = [1, 1]} : vector<32x4xbf16> to vector<32x1xbf16>
    %103 = vector.extract_strided_slice %100 {offsets = [0, 0], sizes = [32, 4], strides = [1, 1]} : vector<32x48xbf16> to vector<32x4xbf16>
    %104 = vector.broadcast %102 : vector<32x1xbf16> to vector<32x4xbf16>
    %105 = arith.mulf %104, %103 : vector<32x4xbf16>
    %106 = vector.extract_strided_slice %101 {offsets = [0, 1], sizes = [32, 1], strides = [1, 1]} : vector<32x4xbf16> to vector<32x1xbf16>
    %107 = vector.extract_strided_slice %100 {offsets = [0, 4], sizes = [32, 4], strides = [1, 1]} : vector<32x48xbf16> to vector<32x4xbf16>
    %108 = vector.broadcast %106 : vector<32x1xbf16> to vector<32x4xbf16>
    %109 = arith.mulf %108, %107 : vector<32x4xbf16>
    %110 = arith.addf %105, %109 : vector<32x4xbf16>
    %111 = vector.extract_strided_slice %101 {offsets = [0, 2], sizes = [32, 1], strides = [1, 1]} : vector<32x4xbf16> to vector<32x1xbf16>
    %112 = vector.extract_strided_slice %100 {offsets = [0, 8], sizes = [32, 4], strides = [1, 1]} : vector<32x48xbf16> to vector<32x4xbf16>
    %113 = vector.broadcast %111 : vector<32x1xbf16> to vector<32x4xbf16>
    %114 = arith.mulf %113, %112 : vector<32x4xbf16>
    %115 = arith.addf %110, %114 : vector<32x4xbf16>
    %116 = vector.extract_strided_slice %101 {offsets = [0, 3], sizes = [32, 1], strides = [1, 1]} : vector<32x4xbf16> to vector<32x1xbf16>
    %117 = vector.extract_strided_slice %100 {offsets = [0, 12], sizes = [32, 4], strides = [1, 1]} : vector<32x48xbf16> to vector<32x4xbf16>
    %118 = vector.broadcast %116 : vector<32x1xbf16> to vector<32x4xbf16>
    %119 = arith.mulf %118, %117 : vector<32x4xbf16>
    %120 = arith.addf %115, %119 : vector<32x4xbf16>
    %121 = vector.extract_strided_slice %16 {offsets = [0, 4], sizes = [32, 4], strides = [1, 1]} : vector<32x12xbf16> to vector<32x4xbf16>
    %122 = vector.extract_strided_slice %121 {offsets = [0, 0], sizes = [32, 1], strides = [1, 1]} : vector<32x4xbf16> to vector<32x1xbf16>
    %123 = vector.extract_strided_slice %100 {offsets = [0, 16], sizes = [32, 4], strides = [1, 1]} : vector<32x48xbf16> to vector<32x4xbf16>
    %124 = vector.broadcast %122 : vector<32x1xbf16> to vector<32x4xbf16>
    %125 = arith.mulf %124, %123 : vector<32x4xbf16>
    %126 = vector.extract_strided_slice %121 {offsets = [0, 1], sizes = [32, 1], strides = [1, 1]} : vector<32x4xbf16> to vector<32x1xbf16>
    %127 = vector.extract_strided_slice %100 {offsets = [0, 20], sizes = [32, 4], strides = [1, 1]} : vector<32x48xbf16> to vector<32x4xbf16>
    %128 = vector.broadcast %126 : vector<32x1xbf16> to vector<32x4xbf16>
    %129 = arith.mulf %128, %127 : vector<32x4xbf16>
    %130 = arith.addf %125, %129 : vector<32x4xbf16>
    %131 = vector.extract_strided_slice %121 {offsets = [0, 2], sizes = [32, 1], strides = [1, 1]} : vector<32x4xbf16> to vector<32x1xbf16>
    %132 = vector.extract_strided_slice %100 {offsets = [0, 24], sizes = [32, 4], strides = [1, 1]} : vector<32x48xbf16> to vector<32x4xbf16>
    %133 = vector.broadcast %131 : vector<32x1xbf16> to vector<32x4xbf16>
    %134 = arith.mulf %133, %132 : vector<32x4xbf16>
    %135 = arith.addf %130, %134 : vector<32x4xbf16>
    %136 = vector.extract_strided_slice %121 {offsets = [0, 3], sizes = [32, 1], strides = [1, 1]} : vector<32x4xbf16> to vector<32x1xbf16>
    %137 = vector.extract_strided_slice %100 {offsets = [0, 28], sizes = [32, 4], strides = [1, 1]} : vector<32x48xbf16> to vector<32x4xbf16>
    %138 = vector.broadcast %136 : vector<32x1xbf16> to vector<32x4xbf16>
    %139 = arith.mulf %138, %137 : vector<32x4xbf16>
    %140 = arith.addf %135, %139 : vector<32x4xbf16>
    %141 = vector.extract_strided_slice %16 {offsets = [0, 8], sizes = [32, 4], strides = [1, 1]} : vector<32x12xbf16> to vector<32x4xbf16>
    %142 = vector.extract_strided_slice %141 {offsets = [0, 0], sizes = [32, 1], strides = [1, 1]} : vector<32x4xbf16> to vector<32x1xbf16>
    %143 = vector.extract_strided_slice %100 {offsets = [0, 32], sizes = [32, 4], strides = [1, 1]} : vector<32x48xbf16> to vector<32x4xbf16>
    %144 = vector.broadcast %142 : vector<32x1xbf16> to vector<32x4xbf16>
    %145 = arith.mulf %144, %143 : vector<32x4xbf16>
    %146 = vector.extract_strided_slice %141 {offsets = [0, 1], sizes = [32, 1], strides = [1, 1]} : vector<32x4xbf16> to vector<32x1xbf16>
    %147 = vector.extract_strided_slice %100 {offsets = [0, 36], sizes = [32, 4], strides = [1, 1]} : vector<32x48xbf16> to vector<32x4xbf16>
    %148 = vector.broadcast %146 : vector<32x1xbf16> to vector<32x4xbf16>
    %149 = arith.mulf %148, %147 : vector<32x4xbf16>
    %150 = arith.addf %145, %149 : vector<32x4xbf16>
    %151 = vector.extract_strided_slice %141 {offsets = [0, 2], sizes = [32, 1], strides = [1, 1]} : vector<32x4xbf16> to vector<32x1xbf16>
    %152 = vector.extract_strided_slice %100 {offsets = [0, 40], sizes = [32, 4], strides = [1, 1]} : vector<32x48xbf16> to vector<32x4xbf16>
    %153 = vector.broadcast %151 : vector<32x1xbf16> to vector<32x4xbf16>
    %154 = arith.mulf %153, %152 : vector<32x4xbf16>
    %155 = arith.addf %150, %154 : vector<32x4xbf16>
    %156 = vector.extract_strided_slice %141 {offsets = [0, 3], sizes = [32, 1], strides = [1, 1]} : vector<32x4xbf16> to vector<32x1xbf16>
    %157 = vector.extract_strided_slice %100 {offsets = [0, 44], sizes = [32, 4], strides = [1, 1]} : vector<32x48xbf16> to vector<32x4xbf16>
    %158 = vector.broadcast %156 : vector<32x1xbf16> to vector<32x4xbf16>
    %159 = arith.mulf %158, %157 : vector<32x4xbf16>
    %160 = arith.addf %155, %159 : vector<32x4xbf16>
    %161 = tpu.concatenate %97, %120, %140, %160 in 1 : vector<32x8xbf16>, vector<32x4xbf16>, vector<32x4xbf16>, vector<32x4xbf16> -> vector<32x20xbf16>
    %162 = tpu.concatenate %98, %17 in 1 : vector<64x8xbf16>, vector<64x12xbf16> -> vector<64x20xbf16>
    %cst_22 = arith.constant dense<0.000000e+00> : vector<32x64xf32>
    %163 = tpu.matmul %161, %162, %cst_22 {dimension_numbers = #tpu.dot_dimension_numbers<[1], [1], [0], [0], [0, 0, 1, 0], [], []>} : vector<32x20xbf16>, vector<64x20xbf16>, vector<32x64xf32> -> vector<32x64xf32>
    %cst_23 = arith.constant dense<0xFF800000> : vector<32xf32>
    %164 = vector.multi_reduction <maximumf>, %163, %cst_23 [1] : vector<32x64xf32> to vector<32xf32>
    %165 = vector.shape_cast %164 : vector<32xf32> to vector<32x1xf32>
    %166 = vector.broadcast %165 : vector<32x1xf32> to vector<32x64xf32>
    %167 = arith.subf %163, %166 : vector<32x64xf32>
    %168 = math.exp %167 : vector<32x64xf32>
    %cst_24 = arith.constant dense<0.000000e+00> : vector<32xf32>
    %169 = vector.multi_reduction <add>, %168, %cst_24 [1] : vector<32x64xf32> to vector<32xf32>
    %170 = vector.shape_cast %169 : vector<32xf32> to vector<32x1xf32>
    %171 = tpu.reciprocal %170 {approx = true} : vector<32x1xf32> -> vector<32x1xf32>
    %172 = vector.broadcast %171 : vector<32x1xf32> to vector<32x64xf32>
    %173 = arith.mulf %168, %172 : vector<32x64xf32>
    %174 = arith.truncf %173 : vector<32x64xf32> to vector<32x64xbf16>
    %cst_25 = arith.constant dense<0.000000e+00> : vector<32x8xf32>
    %175 = tpu.matmul %174, %99, %cst_25 {dimension_numbers = #tpu.dot_dimension_numbers<[1], [0], [0], [1], [0, 0, 1, 1], [], []>} : vector<32x64xbf16>, vector<64x8xbf16>, vector<32x8xf32> -> vector<32x8xf32>
    %176 = vector.extract_strided_slice %7 {offsets = [0, 16], sizes = [32, 8], strides = [1, 1]} : vector<32x224xbf16> to vector<32x8xbf16>
    %177 = vector.extract_strided_slice %15 {offsets = [0, 16], sizes = [64, 8], strides = [1, 1]} : vector<64x64xbf16> to vector<64x8xbf16>
    %178 = vector.extract_strided_slice %15 {offsets = [0, 48], sizes = [64, 8], strides = [1, 1]} : vector<64x64xbf16> to vector<64x8xbf16>
    %179 = vector.extract_strided_slice %7 {offsets = [0, 128], sizes = [32, 48], strides = [1, 1]} : vector<32x224xbf16> to vector<32x48xbf16>
    %180 = vector.extract_strided_slice %16 {offsets = [0, 0], sizes = [32, 4], strides = [1, 1]} : vector<32x12xbf16> to vector<32x4xbf16>
    %181 = vector.extract_strided_slice %180 {offsets = [0, 0], sizes = [32, 1], strides = [1, 1]} : vector<32x4xbf16> to vector<32x1xbf16>
    %182 = vector.extract_strided_slice %179 {offsets = [0, 0], sizes = [32, 4], strides = [1, 1]} : vector<32x48xbf16> to vector<32x4xbf16>
    %183 = vector.broadcast %181 : vector<32x1xbf16> to vector<32x4xbf16>
    %184 = arith.mulf %183, %182 : vector<32x4xbf16>
    %185 = vector.extract_strided_slice %180 {offsets = [0, 1], sizes = [32, 1], strides = [1, 1]} : vector<32x4xbf16> to vector<32x1xbf16>
    %186 = vector.extract_strided_slice %179 {offsets = [0, 4], sizes = [32, 4], strides = [1, 1]} : vector<32x48xbf16> to vector<32x4xbf16>
    %187 = vector.broadcast %185 : vector<32x1xbf16> to vector<32x4xbf16>
    %188 = arith.mulf %187, %186 : vector<32x4xbf16>
    %189 = arith.addf %184, %188 : vector<32x4xbf16>
    %190 = vector.extract_strided_slice %180 {offsets = [0, 2], sizes = [32, 1], strides = [1, 1]} : vector<32x4xbf16> to vector<32x1xbf16>
    %191 = vector.extract_strided_slice %179 {offsets = [0, 8], sizes = [32, 4], strides = [1, 1]} : vector<32x48xbf16> to vector<32x4xbf16>
    %192 = vector.broadcast %190 : vector<32x1xbf16> to vector<32x4xbf16>
    %193 = arith.mulf %192, %191 : vector<32x4xbf16>
    %194 = arith.addf %189, %193 : vector<32x4xbf16>
    %195 = vector.extract_strided_slice %180 {offsets = [0, 3], sizes = [32, 1], strides = [1, 1]} : vector<32x4xbf16> to vector<32x1xbf16>
    %196 = vector.extract_strided_slice %179 {offsets = [0, 12], sizes = [32, 4], strides = [1, 1]} : vector<32x48xbf16> to vector<32x4xbf16>
    %197 = vector.broadcast %195 : vector<32x1xbf16> to vector<32x4xbf16>
    %198 = arith.mulf %197, %196 : vector<32x4xbf16>
    %199 = arith.addf %194, %198 : vector<32x4xbf16>
    %200 = vector.extract_strided_slice %16 {offsets = [0, 4], sizes = [32, 4], strides = [1, 1]} : vector<32x12xbf16> to vector<32x4xbf16>
    %201 = vector.extract_strided_slice %200 {offsets = [0, 0], sizes = [32, 1], strides = [1, 1]} : vector<32x4xbf16> to vector<32x1xbf16>
    %202 = vector.extract_strided_slice %179 {offsets = [0, 16], sizes = [32, 4], strides = [1, 1]} : vector<32x48xbf16> to vector<32x4xbf16>
    %203 = vector.broadcast %201 : vector<32x1xbf16> to vector<32x4xbf16>
    %204 = arith.mulf %203, %202 : vector<32x4xbf16>
    %205 = vector.extract_strided_slice %200 {offsets = [0, 1], sizes = [32, 1], strides = [1, 1]} : vector<32x4xbf16> to vector<32x1xbf16>
    %206 = vector.extract_strided_slice %179 {offsets = [0, 20], sizes = [32, 4], strides = [1, 1]} : vector<32x48xbf16> to vector<32x4xbf16>
    %207 = vector.broadcast %205 : vector<32x1xbf16> to vector<32x4xbf16>
    %208 = arith.mulf %207, %206 : vector<32x4xbf16>
    %209 = arith.addf %204, %208 : vector<32x4xbf16>
    %210 = vector.extract_strided_slice %200 {offsets = [0, 2], sizes = [32, 1], strides = [1, 1]} : vector<32x4xbf16> to vector<32x1xbf16>
    %211 = vector.extract_strided_slice %179 {offsets = [0, 24], sizes = [32, 4], strides = [1, 1]} : vector<32x48xbf16> to vector<32x4xbf16>
    %212 = vector.broadcast %210 : vector<32x1xbf16> to vector<32x4xbf16>
    %213 = arith.mulf %212, %211 : vector<32x4xbf16>
    %214 = arith.addf %209, %213 : vector<32x4xbf16>
    %215 = vector.extract_strided_slice %200 {offsets = [0, 3], sizes = [32, 1], strides = [1, 1]} : vector<32x4xbf16> to vector<32x1xbf16>
    %216 = vector.extract_strided_slice %179 {offsets = [0, 28], sizes = [32, 4], strides = [1, 1]} : vector<32x48xbf16> to vector<32x4xbf16>
    %217 = vector.broadcast %215 : vector<32x1xbf16> to vector<32x4xbf16>
    %218 = arith.mulf %217, %216 : vector<32x4xbf16>
    %219 = arith.addf %214, %218 : vector<32x4xbf16>
    %220 = vector.extract_strided_slice %16 {offsets = [0, 8], sizes = [32, 4], strides = [1, 1]} : vector<32x12xbf16> to vector<32x4xbf16>
    %221 = vector.extract_strided_slice %220 {offsets = [0, 0], sizes = [32, 1], strides = [1, 1]} : vector<32x4xbf16> to vector<32x1xbf16>
    %222 = vector.extract_strided_slice %179 {offsets = [0, 32], sizes = [32, 4], strides = [1, 1]} : vector<32x48xbf16> to vector<32x4xbf16>
    %223 = vector.broadcast %221 : vector<32x1xbf16> to vector<32x4xbf16>
    %224 = arith.mulf %223, %222 : vector<32x4xbf16>
    %225 = vector.extract_strided_slice %220 {offsets = [0, 1], sizes = [32, 1], strides = [1, 1]} : vector<32x4xbf16> to vector<32x1xbf16>
    %226 = vector.extract_strided_slice %179 {offsets = [0, 36], sizes = [32, 4], strides = [1, 1]} : vector<32x48xbf16> to vector<32x4xbf16>
    %227 = vector.broadcast %225 : vector<32x1xbf16> to vector<32x4xbf16>
    %228 = arith.mulf %227, %226 : vector<32x4xbf16>
    %229 = arith.addf %224, %228 : vector<32x4xbf16>
    %230 = vector.extract_strided_slice %220 {offsets = [0, 2], sizes = [32, 1], strides = [1, 1]} : vector<32x4xbf16> to vector<32x1xbf16>
    %231 = vector.extract_strided_slice %179 {offsets = [0, 40], sizes = [32, 4], strides = [1, 1]} : vector<32x48xbf16> to vector<32x4xbf16>
    %232 = vector.broadcast %230 : vector<32x1xbf16> to vector<32x4xbf16>
    %233 = arith.mulf %232, %231 : vector<32x4xbf16>
    %234 = arith.addf %229, %233 : vector<32x4xbf16>
    %235 = vector.extract_strided_slice %220 {offsets = [0, 3], sizes = [32, 1], strides = [1, 1]} : vector<32x4xbf16> to vector<32x1xbf16>
    %236 = vector.extract_strided_slice %179 {offsets = [0, 44], sizes = [32, 4], strides = [1, 1]} : vector<32x48xbf16> to vector<32x4xbf16>
    %237 = vector.broadcast %235 : vector<32x1xbf16> to vector<32x4xbf16>
    %238 = arith.mulf %237, %236 : vector<32x4xbf16>
    %239 = arith.addf %234, %238 : vector<32x4xbf16>
    %240 = tpu.concatenate %176, %199, %219, %239 in 1 : vector<32x8xbf16>, vector<32x4xbf16>, vector<32x4xbf16>, vector<32x4xbf16> -> vector<32x20xbf16>
    %241 = tpu.concatenate %177, %17 in 1 : vector<64x8xbf16>, vector<64x12xbf16> -> vector<64x20xbf16>
    %cst_26 = arith.constant dense<0.000000e+00> : vector<32x64xf32>
    %242 = tpu.matmul %240, %241, %cst_26 {dimension_numbers = #tpu.dot_dimension_numbers<[1], [1], [0], [0], [0, 0, 1, 0], [], []>} : vector<32x20xbf16>, vector<64x20xbf16>, vector<32x64xf32> -> vector<32x64xf32>
    %cst_27 = arith.constant dense<0xFF800000> : vector<32xf32>
    %243 = vector.multi_reduction <maximumf>, %242, %cst_27 [1] : vector<32x64xf32> to vector<32xf32>
    %244 = vector.shape_cast %243 : vector<32xf32> to vector<32x1xf32>
    %245 = vector.broadcast %244 : vector<32x1xf32> to vector<32x64xf32>
    %246 = arith.subf %242, %245 : vector<32x64xf32>
    %247 = math.exp %246 : vector<32x64xf32>
    %cst_28 = arith.constant dense<0.000000e+00> : vector<32xf32>
    %248 = vector.multi_reduction <add>, %247, %cst_28 [1] : vector<32x64xf32> to vector<32xf32>
    %249 = vector.shape_cast %248 : vector<32xf32> to vector<32x1xf32>
    %250 = tpu.reciprocal %249 {approx = true} : vector<32x1xf32> -> vector<32x1xf32>
    %251 = vector.broadcast %250 : vector<32x1xf32> to vector<32x64xf32>
    %252 = arith.mulf %247, %251 : vector<32x64xf32>
    %253 = arith.truncf %252 : vector<32x64xf32> to vector<32x64xbf16>
    %cst_29 = arith.constant dense<0.000000e+00> : vector<32x8xf32>
    %254 = tpu.matmul %253, %178, %cst_29 {dimension_numbers = #tpu.dot_dimension_numbers<[1], [0], [0], [1], [0, 0, 1, 1], [], []>} : vector<32x64xbf16>, vector<64x8xbf16>, vector<32x8xf32> -> vector<32x8xf32>
    %255 = vector.extract_strided_slice %7 {offsets = [0, 24], sizes = [32, 8], strides = [1, 1]} : vector<32x224xbf16> to vector<32x8xbf16>
    %256 = vector.extract_strided_slice %15 {offsets = [0, 24], sizes = [64, 8], strides = [1, 1]} : vector<64x64xbf16> to vector<64x8xbf16>
    %257 = vector.extract_strided_slice %15 {offsets = [0, 56], sizes = [64, 8], strides = [1, 1]} : vector<64x64xbf16> to vector<64x8xbf16>
    %258 = vector.extract_strided_slice %7 {offsets = [0, 176], sizes = [32, 48], strides = [1, 1]} : vector<32x224xbf16> to vector<32x48xbf16>
    %259 = vector.extract_strided_slice %16 {offsets = [0, 0], sizes = [32, 4], strides = [1, 1]} : vector<32x12xbf16> to vector<32x4xbf16>
    %260 = vector.extract_strided_slice %259 {offsets = [0, 0], sizes = [32, 1], strides = [1, 1]} : vector<32x4xbf16> to vector<32x1xbf16>
    %261 = vector.extract_strided_slice %258 {offsets = [0, 0], sizes = [32, 4], strides = [1, 1]} : vector<32x48xbf16> to vector<32x4xbf16>
    %262 = vector.broadcast %260 : vector<32x1xbf16> to vector<32x4xbf16>
    %263 = arith.mulf %262, %261 : vector<32x4xbf16>
    %264 = vector.extract_strided_slice %259 {offsets = [0, 1], sizes = [32, 1], strides = [1, 1]} : vector<32x4xbf16> to vector<32x1xbf16>
    %265 = vector.extract_strided_slice %258 {offsets = [0, 4], sizes = [32, 4], strides = [1, 1]} : vector<32x48xbf16> to vector<32x4xbf16>
    %266 = vector.broadcast %264 : vector<32x1xbf16> to vector<32x4xbf16>
    %267 = arith.mulf %266, %265 : vector<32x4xbf16>
    %268 = arith.addf %263, %267 : vector<32x4xbf16>
    %269 = vector.extract_strided_slice %259 {offsets = [0, 2], sizes = [32, 1], strides = [1, 1]} : vector<32x4xbf16> to vector<32x1xbf16>
    %270 = vector.extract_strided_slice %258 {offsets = [0, 8], sizes = [32, 4], strides = [1, 1]} : vector<32x48xbf16> to vector<32x4xbf16>
    %271 = vector.broadcast %269 : vector<32x1xbf16> to vector<32x4xbf16>
    %272 = arith.mulf %271, %270 : vector<32x4xbf16>
    %273 = arith.addf %268, %272 : vector<32x4xbf16>
    %274 = vector.extract_strided_slice %259 {offsets = [0, 3], sizes = [32, 1], strides = [1, 1]} : vector<32x4xbf16> to vector<32x1xbf16>
    %275 = vector.extract_strided_slice %258 {offsets = [0, 12], sizes = [32, 4], strides = [1, 1]} : vector<32x48xbf16> to vector<32x4xbf16>
    %276 = vector.broadcast %274 : vector<32x1xbf16> to vector<32x4xbf16>
    %277 = arith.mulf %276, %275 : vector<32x4xbf16>
    %278 = arith.addf %273, %277 : vector<32x4xbf16>
    %279 = vector.extract_strided_slice %16 {offsets = [0, 4], sizes = [32, 4], strides = [1, 1]} : vector<32x12xbf16> to vector<32x4xbf16>
    %280 = vector.extract_strided_slice %279 {offsets = [0, 0], sizes = [32, 1], strides = [1, 1]} : vector<32x4xbf16> to vector<32x1xbf16>
    %281 = vector.extract_strided_slice %258 {offsets = [0, 16], sizes = [32, 4], strides = [1, 1]} : vector<32x48xbf16> to vector<32x4xbf16>
    %282 = vector.broadcast %280 : vector<32x1xbf16> to vector<32x4xbf16>
    %283 = arith.mulf %282, %281 : vector<32x4xbf16>
    %284 = vector.extract_strided_slice %279 {offsets = [0, 1], sizes = [32, 1], strides = [1, 1]} : vector<32x4xbf16> to vector<32x1xbf16>
    %285 = vector.extract_strided_slice %258 {offsets = [0, 20], sizes = [32, 4], strides = [1, 1]} : vector<32x48xbf16> to vector<32x4xbf16>
    %286 = vector.broadcast %284 : vector<32x1xbf16> to vector<32x4xbf16>
    %287 = arith.mulf %286, %285 : vector<32x4xbf16>
    %288 = arith.addf %283, %287 : vector<32x4xbf16>
    %289 = vector.extract_strided_slice %279 {offsets = [0, 2], sizes = [32, 1], strides = [1, 1]} : vector<32x4xbf16> to vector<32x1xbf16>
    %290 = vector.extract_strided_slice %258 {offsets = [0, 24], sizes = [32, 4], strides = [1, 1]} : vector<32x48xbf16> to vector<32x4xbf16>
    %291 = vector.broadcast %289 : vector<32x1xbf16> to vector<32x4xbf16>
    %292 = arith.mulf %291, %290 : vector<32x4xbf16>
    %293 = arith.addf %288, %292 : vector<32x4xbf16>
    %294 = vector.extract_strided_slice %279 {offsets = [0, 3], sizes = [32, 1], strides = [1, 1]} : vector<32x4xbf16> to vector<32x1xbf16>
    %295 = vector.extract_strided_slice %258 {offsets = [0, 28], sizes = [32, 4], strides = [1, 1]} : vector<32x48xbf16> to vector<32x4xbf16>
    %296 = vector.broadcast %294 : vector<32x1xbf16> to vector<32x4xbf16>
    %297 = arith.mulf %296, %295 : vector<32x4xbf16>
    %298 = arith.addf %293, %297 : vector<32x4xbf16>
    %299 = vector.extract_strided_slice %16 {offsets = [0, 8], sizes = [32, 4], strides = [1, 1]} : vector<32x12xbf16> to vector<32x4xbf16>
    %300 = vector.extract_strided_slice %299 {offsets = [0, 0], sizes = [32, 1], strides = [1, 1]} : vector<32x4xbf16> to vector<32x1xbf16>
    %301 = vector.extract_strided_slice %258 {offsets = [0, 32], sizes = [32, 4], strides = [1, 1]} : vector<32x48xbf16> to vector<32x4xbf16>
    %302 = vector.broadcast %300 : vector<32x1xbf16> to vector<32x4xbf16>
    %303 = arith.mulf %302, %301 : vector<32x4xbf16>
    %304 = vector.extract_strided_slice %299 {offsets = [0, 1], sizes = [32, 1], strides = [1, 1]} : vector<32x4xbf16> to vector<32x1xbf16>
    %305 = vector.extract_strided_slice %258 {offsets = [0, 36], sizes = [32, 4], strides = [1, 1]} : vector<32x48xbf16> to vector<32x4xbf16>
    %306 = vector.broadcast %304 : vector<32x1xbf16> to vector<32x4xbf16>
    %307 = arith.mulf %306, %305 : vector<32x4xbf16>
    %308 = arith.addf %303, %307 : vector<32x4xbf16>
    %309 = vector.extract_strided_slice %299 {offsets = [0, 2], sizes = [32, 1], strides = [1, 1]} : vector<32x4xbf16> to vector<32x1xbf16>
    %310 = vector.extract_strided_slice %258 {offsets = [0, 40], sizes = [32, 4], strides = [1, 1]} : vector<32x48xbf16> to vector<32x4xbf16>
    %311 = vector.broadcast %309 : vector<32x1xbf16> to vector<32x4xbf16>
    %312 = arith.mulf %311, %310 : vector<32x4xbf16>
    %313 = arith.addf %308, %312 : vector<32x4xbf16>
    %314 = vector.extract_strided_slice %299 {offsets = [0, 3], sizes = [32, 1], strides = [1, 1]} : vector<32x4xbf16> to vector<32x1xbf16>
    %315 = vector.extract_strided_slice %258 {offsets = [0, 44], sizes = [32, 4], strides = [1, 1]} : vector<32x48xbf16> to vector<32x4xbf16>
    %316 = vector.broadcast %314 : vector<32x1xbf16> to vector<32x4xbf16>
    %317 = arith.mulf %316, %315 : vector<32x4xbf16>
    %318 = arith.addf %313, %317 : vector<32x4xbf16>
    %319 = tpu.concatenate %255, %278, %298, %318 in 1 : vector<32x8xbf16>, vector<32x4xbf16>, vector<32x4xbf16>, vector<32x4xbf16> -> vector<32x20xbf16>
    %320 = tpu.concatenate %256, %17 in 1 : vector<64x8xbf16>, vector<64x12xbf16> -> vector<64x20xbf16>
    %cst_30 = arith.constant dense<0.000000e+00> : vector<32x64xf32>
    %321 = tpu.matmul %319, %320, %cst_30 {dimension_numbers = #tpu.dot_dimension_numbers<[1], [1], [0], [0], [0, 0, 1, 0], [], []>} : vector<32x20xbf16>, vector<64x20xbf16>, vector<32x64xf32> -> vector<32x64xf32>
    %cst_31 = arith.constant dense<0xFF800000> : vector<32xf32>
    %322 = vector.multi_reduction <maximumf>, %321, %cst_31 [1] : vector<32x64xf32> to vector<32xf32>
    %323 = vector.shape_cast %322 : vector<32xf32> to vector<32x1xf32>
    %324 = vector.broadcast %323 : vector<32x1xf32> to vector<32x64xf32>
    %325 = arith.subf %321, %324 : vector<32x64xf32>
    %326 = math.exp %325 : vector<32x64xf32>
    %cst_32 = arith.constant dense<0.000000e+00> : vector<32xf32>
    %327 = vector.multi_reduction <add>, %326, %cst_32 [1] : vector<32x64xf32> to vector<32xf32>
    %328 = vector.shape_cast %327 : vector<32xf32> to vector<32x1xf32>
    %329 = tpu.reciprocal %328 {approx = true} : vector<32x1xf32> -> vector<32x1xf32>
    %330 = vector.broadcast %329 : vector<32x1xf32> to vector<32x64xf32>
    %331 = arith.mulf %326, %330 : vector<32x64xf32>
    %332 = arith.truncf %331 : vector<32x64xf32> to vector<32x64xbf16>
    %cst_33 = arith.constant dense<0.000000e+00> : vector<32x8xf32>
    %333 = tpu.matmul %332, %257, %cst_33 {dimension_numbers = #tpu.dot_dimension_numbers<[1], [0], [0], [1], [0, 0, 1, 1], [], []>} : vector<32x64xbf16>, vector<64x8xbf16>, vector<32x8xf32> -> vector<32x8xf32>
    %334 = tpu.concatenate %96, %175, %254, %333 in 1 : vector<32x8xf32>, vector<32x8xf32>, vector<32x8xf32>, vector<32x8xf32> -> vector<32x32xf32>
    %335 = arith.truncf %334 : vector<32x32xf32> to vector<32x32xbf16>
    %c0_34 = arith.constant 0 : index
    %c0_35 = arith.constant 0 : index
    %336 = vector.load %arg10[%c0_34, %c0_35] : memref<32x32xbf16, #tpu.memory_space<vmem>>, vector<32x32xbf16>
    %cst_36 = arith.constant dense<0.000000e+00> : vector<32x32xf32>
    %337 = tpu.matmul %335, %336, %cst_36 {dimension_numbers = #tpu.dot_dimension_numbers<[1], [0], [0], [1], [0, 0, 1, 1], [], []>} : vector<32x32xbf16>, vector<32x32xbf16>, vector<32x32xf32> -> vector<32x32xf32>
    %c0_37 = arith.constant 0 : index
    %c0_38 = arith.constant 0 : index
    %338 = vector.load %arg11[%c0_37, %c0_38] : memref<1x32xf32, #tpu.memory_space<vmem>>, vector<1x32xf32>
    %339 = vector.broadcast %338 : vector<1x32xf32> to vector<32x32xf32>
    %340 = arith.addf %337, %339 : vector<32x32xf32>
    %c0_39 = arith.constant 0 : index
    %c0_40 = arith.constant 0 : index
    %c0_41 = arith.constant 0 : index
    %341 = vector.load %arg12[%c0_39, %c0_40, %c0_41] : memref<1x32x32xf32, #tpu.memory_space<vmem>>, vector<1x32x32xf32>
    %342 = vector.shape_cast %341 : vector<1x32x32xf32> to vector<32x32xf32>
    %343 = vector.shape_cast %340 : vector<32x32xf32> to vector<1x32x32xf32>
    tpu.vector_store %arg12[%c0_39, %c0_40, %c0_41], %343 {strides = array<i32>} : memref<1x32x32xf32, #tpu.memory_space<vmem>>, vector<1x32x32xf32>,
    return
  }
  func.func @transform_0(%arg0: i32, %arg1: i32) -> (i32, i32, i32) {
    %c0_i32 = arith.constant 0 : i32
    %c0_i32_0 = arith.constant 0 : i32
    return %arg0, %arg1, %c0_i32 : i32, i32, i32
  }
  func.func @transform_1(%arg0: i32, %arg1: i32) -> (i32, i32, i32) {
    %c0_i32 = arith.constant 0 : i32
    %c0_i32_0 = arith.constant 0 : i32
    %c0_i32_1 = arith.constant 0 : i32
    return %arg0, %c0_i32, %c0_i32_0 : i32, i32, i32
  }
  func.func @transform_2(%arg0: i32, %arg1: i32) -> (i32, i32) {
    %c0_i32 = arith.constant 0 : i32
    %c0_i32_0 = arith.constant 0 : i32
    %c0_i32_1 = arith.constant 0 : i32
    return %c0_i32, %c0_i32_0 : i32, i32
  }
  func.func @transform_3(%arg0: i32, %arg1: i32) -> (i32, i32) {
    %c0_i32 = arith.constant 0 : i32
    %c0_i32_0 = arith.constant 0 : i32
    %c0_i32_1 = arith.constant 0 : i32
    return %c0_i32, %c0_i32_0 : i32, i32
  }
  func.func @transform_4(%arg0: i32, %arg1: i32) -> (i32, i32) {
    %c0_i32 = arith.constant 0 : i32
    %c0_i32_0 = arith.constant 0 : i32
    %c0_i32_1 = arith.constant 0 : i32
    return %c0_i32, %c0_i32_0 : i32, i32
  }
  func.func @transform_5(%arg0: i32, %arg1: i32) -> (i32, i32) {
    %c0_i32 = arith.constant 0 : i32
    %c0_i32_0 = arith.constant 0 : i32
    %c0_i32_1 = arith.constant 0 : i32
    return %c0_i32, %c0_i32_0 : i32, i32
  }
  func.func @transform_6(%arg0: i32, %arg1: i32) -> (i32, i32) {
    %c0_i32 = arith.constant 0 : i32
    %c0_i32_0 = arith.constant 0 : i32
    return %arg1, %c0_i32 : i32, i32
  }
  func.func @transform_7(%arg0: i32, %arg1: i32) -> (i32, i32) {
    %c0_i32 = arith.constant 0 : i32
    %c0_i32_0 = arith.constant 0 : i32
    %c0_i32_1 = arith.constant 0 : i32
    return %c0_i32, %c0_i32_0 : i32, i32
  }
  func.func @transform_8(%arg0: i32, %arg1: i32) -> (i32, i32) {
    %c0_i32 = arith.constant 0 : i32
    %c0_i32_0 = arith.constant 0 : i32
    %c0_i32_1 = arith.constant 0 : i32
    return %c0_i32, %c0_i32_0 : i32, i32
  }
  func.func @transform_9(%arg0: i32, %arg1: i32) -> (i32, i32) {
    %c0_i32 = arith.constant 0 : i32
    %c0_i32_0 = arith.constant 0 : i32
    %c0_i32_1 = arith.constant 0 : i32
    return %c0_i32, %c0_i32_0 : i32, i32
  }
  func.func @transform_10(%arg0: i32, %arg1: i32) -> (i32, i32, i32) {
    %c0_i32 = arith.constant 0 : i32
    %c0_i32_0 = arith.constant 0 : i32
    return %arg0, %arg1, %c0_i32 : i32, i32, i32
  }
}

</mosaic_0001>

<bundles_post_ra>
// kernel: tpu_custom_call.1
= control target key start
LH: loop header
LB: loop body
LE: loop exit
PB: predicated region body
PF: predicated region fallthrough
CT: control target
= control target key end

     0   :  { %s4105_s13 = smov 0   ;;  %s4107_s14 = smov 0   ;;  %s5953_s0 = inlined_call_operand.vmem [shape: bf16[2,64,32], index: 0, kind: input, shape index: {}]   ;;  %s5954_s1 = inlined_call_operand.vmem [shape: bf16[2,64,32], index: 1, kind: input, shape index: {}]   ;;  %s5955_s2 = inlined_call_operand.vmem [shape: bf16[32,224], index: 2, kind: input, shape index: {}]   ;;  %s5956_s3 = inlined_call_operand.vmem [shape: f32[1,224], index: 3, kind: input, shape index: {}]   ;;  %s5957_s4 = inlined_call_operand.vmem [shape: bf16[32,64], index: 4, kind: input, shape index: {}]   ;;  %s5958_s5 = inlined_call_operand.vmem [shape: f32[1,64], index: 5, kind: input, shape index: {}]   ;;  %s5959_s6 = inlined_call_operand.vmem [shape: bf16[64,12], index: 6, kind: input, shape index: {}]   ;;  %s5960_s7 = inlined_call_operand.vmem [shape: bf16[64,12], index: 7, kind: input, shape index: {}]   ;;  %s5961_s8 = inlined_call_operand.vmem [shape: bf16[32,32], index: 8, kind: input, shape index: {}]   ;;  %s5962_s9 = inlined_call_operand.vmem [shape: f32[1,32], index: 9, kind: input, shape index: {}]   ;;  %s5963_s10 = inlined_call_operand.vmem [shape: f32[2,64,32], index: 10, kind: output, shape index: {}]  }
   0x1   :  { %s4109_s15 = smov 0   ;;  %s4111_s16 = smov 0  }
   0x2   :  { %s4113_s17 = smov 0  }
   0x3 LB: > { %s29_s18 = sadd.s32 1, %s3996_s15  ;;  %s32_s19 = sadd.s32 1, %s4000_s16  ;;  %s4004_s17 = sphi %s4113_s17, %s20_s17   ;;  %s4000_s16 = sphi %s4111_s16, %s6376_s16   ;;  %s3996_s15 = sphi %s4109_s15, %s6375_s15   ;;  %s3992_s14 = sphi %s4107_s14, %s6374_s14   ;;  %s3988_s13 = sphi %s4105_s13, %s6373_s13  }
   0x4   : > { %p30_p0 = scmp.ge.s32.totalorder %s29_s18, 2  ;;  %p3448_p1 = scmp.ge.s32.totalorder %s4004_s17, 1 }
   0x5   : > { %p354_p2 = scmp.lt.s32.totalorder %s4004_s17, 5 }
   0x6   : > { %s6378_s18 = smov (%p30_p0, %s29_s18), 0  ;;  %s6380_s19 = smov (!%p30_p0, %s32_s19), %s4000_s16 }
   0x7   : > { %p355_p3 = pnand %p3448_p1, %p354_p2  ;;  %p34_p4 = scmp.ge.s32.totalorder %s6380_s19, 2 }
   0x9   : > { %s6382_s19 = smov (%p34_p4, %s6380_s19), 0  ;;  %358 = sbr.rel (%p355_p3) target bundleno = 3241 (0xca9), region = 60 }
   0xe   : > { %v3882_v0 = vld [vmem:[%s5955_s2 + $0x14] ss:$8 sps:$4 sm:$0xff]   ;;  %s3449_s22 = sshll.u32 %s3988_s13, 2  ;;  %v3884_v1 = vld [vmem:[%s5955_s2 + $0x10] ss:$8 sps:$4 sm:$0xff]   ;;  %v4006_v2 = vmov 0   ;;  %v452_v19 = vlaneseq }
   0xf   : > { %531 = vmatprep.mubr.bf16.mxu0 %v4006_v2  ;;  %p411_p5 = scmp.lt.s32.totalorder %s3992_s14, 1  ;;  %p413_p6 = scmp.lt.s32.totalorder %s3449_s22, 7  ;;  %3820 = vset.pattern.permute.xlu0 %v4006_v2  ;;  %v3885_v3 = vld [vmem:[%s5955_s2 + $0x4] ss:$8 sps:$4 sm:$0xff]   ;;  %v3887_v4 = vld [vmem:[%s5955_s2] ss:$8 sps:$4 sm:$0xff]  }
  0x10   : > { %511 = vmatprep.subr.bf16.mxu0 %v3882_v0  ;;  %v4007_v5 = vmov 1   ;;  %vm492_vm0 = vcmask 261120   ;;  %v4008_v12 = vmov 2   ;;  %v4009_v13 = vmov 4   ;;  %v450_v23 = vld [vmem:[%s5956_s3] sm:$0x3] }
  0x11   : > { %512 = vmatpush1.bf16.msra.mxu0 %v3884_v1  ;;  %s6384_s14 = smov (!%p411_p5, %s3992_s14), 1  ;;  %3821 = vset.pattern.permute.xlu1 %v4007_v5  ;;  %s6386_s22 = smov (!%p413_p6, %s3449_s22), 7  ;;  %v4010_v14 = vmov 5   ;;  %v4011_v15 = vmov 9   ;;  %v4012_v16 = vmov 8   ;;  %v4013_v17 = vmov 6  }
  0x12   : > { %513 = vmatprep.subr.bf16.mxu0 %v3885_v3  ;;  %s3450_s29 = sshll.u32 %s6384_s14, 3  ;;  %s3455_s11 = sshll.u32 %s6386_s22, 2  ;;  %v4014_v18 = vmov 3   ;;  %v4200_v20 = vshrl.u32 %v452_v19, 7  ;;  %v4015_v21 = vmov 7   ;;  %v4016_v25 = vmov 11  }
  0x13   : > { %s4153_s30 = sadd.s32 %s3450_s29, %s6386_s22  ;;  %s429_s21 = scalar_lea.vmem %s5959_s6, %s3455_s11  ;;  %v4017_v26 = vmov 10   ;;  %v3890_v27 = vld [vmem:[%s5957_s4 + $0x8] sm:$0xff]   ;;  %v3891_v28 = vld [vmem:[%s5957_s4] sm:$0xff]   ;;  %vm1512_vm1 = vcmask 64512   ;;  %vm1569_vm2 = vcmask 162816   ;;  %vm1519_vm3 = vcmask 97280  }
  0x14   : > { %s3451_s12 = sshll.u32 %s4153_s30, 2  ;;  %v4162_v6 = vld [vmem:[%s429_s21] sm:$0xf]  ;;  %v4166_v8 = vld [vmem:[%s429_s21 + $0x4] sm:$0xf]  ;;  %v458_v22 = vsub.s32 1, %v4200_v20  ;;  %3604 = vmatprep.subr.bf16.mxu1 %v3890_v27 }
  0x15   : > { %514 = vmatpush1.bf16.msra.mxu0 %v3887_v4  ;;  %s418_s25 = scalar_lea.vmem %s5953_s0, %s3451_s12  ;;  %775 = vperm.xlu1 %3821, %v4162_v6   ;;  %v4171_v9 = vld [vmem:[%s429_s21 + $0xc] sm:$0xf]  ;;  %v4173_v11 = vld [vmem:[%s429_s21 + $0x8] sm:$0xf]  ;;  %s3537_s12 = sshll.u32 %s6384_s14, 5  ;;  %v454_v41 = vsub.s32 0, %v4200_v20 }
  0x16   : > { %v3888_v7 = vld [vmem:[%s418_s25] sm:$0xff]   ;;  %702 = vperm.xlu0 %3820, %v4162_v6   ;;  %v3889_v10 = vld [vmem:[%s418_s25 + $0x8] sm:$0xff]   ;;  %v4208_v24 = vrot.slane %v450_v23, %v458_v22  ;;  %3605 = vmatpush3.bf16.msra.mxu1 %v3890_v27  ;;  %s424_s21 = scalar_lea.vmem %s5954_s1, %s3537_s12  ;;  %s4018_s14 = smov 96   ;;  %vm1524_vm4 = vcmask 130048   ;;  %vm1631_vm5 = vcmask 523264   ;;  %vm3241_vm6 = vcmask 195584  }
  0x17   : > { %3606 = vmatprep.subr.bf16.mxu1 %v3891_v28  ;;  %v3892_v29 = vld [vmem:[%s424_s21] sm:$0xff]   ;;  %v3893_v30 = vld [vmem:[%s424_s21 + $0x8] sm:$0xff]   ;;  %v3894_v31 = vld [vmem:[%s424_s21 + $0x10] sm:$0xff]   ;;  %v455_v42 = vrot.slane %v450_v23, %v454_v41  ;;  %s4019_s23 = smov 92   ;;  %s5997_s24 = smov 80  }
  0x18   : > { %3465 = vmatmul.mubr.msk.bf16.vlgmr.msra.gmra.mxu0 %vm492_vm0, %v3888_v7  ;;  %6102 = vst [vmem:[#allocation2_spill] sm:$0xff] %v4208_v24  ;;  %3608 = vmatprep.mubr.msk.bf16.mxu1 %vm492_vm0, %v3892_v29  ;;  %v3895_v32 = vld [vmem:[%s424_s21 + $0x18] sm:$0xff]   ;;  %s5995_s25 = smov 76   ;;  %s4022_s22 = smov 88  }
  0x19   : > { %541 = vmatprep.mubr.bf16.mxu0 %v4006_v2  ;;  %786 = vperm.xlu1 %3821, %v4166_v8   ;;  %s5972_s26 = smov 64   ;;  %s5970_s27 = smov 60  }
  0x1a   : > { %714 = vperm.xlu0 %3820, %v4166_v8   ;;  %3607 = vmatpush3.bf16.msra.mxu1 %v3891_v28  ;;  %s5968_s28 = smov 72   ;;  %s4026_s29 = smov 84  }
  0x1b   : > { %s5964_s11 = smov 56   ;;  %s5966_s12 = smov 68  }
  0x1c   : > { %s5993_s13 = smov 52   ;;  %s4036_s20 = smov 32  }
  0x1d   : > { %3822 = vset.pattern.permute.xlu1 %v4006_v2  ;;  %3609 = vmatmul.mubr.msk.bf16.vlgmr.msra.gmra.mxu1 %vm492_vm0, %v3893_v30  ;;  %s4037_s21 = smov 28  }
  0x1e   : > { %726 = vperm.xlu0 %3820, %v4173_v11   ;;  %738 = vperm.xlu1 %3822, %v4171_v9  }
  0x1f   : > { %3612 = vmatprep.mubr.msk.bf16.mxu1 %vm492_vm0, %v3894_v31 }
  0x20   : > { %3466 = vmatmul.mubr.msk.bf16.gmra.mxu0 %vm492_vm0, %v3889_v10 }
  0x22   : > { %3823 = vset.pattern.permute.xlu0 %v4007_v5  ;;  %3824 = vset.pattern.permute.xlu1 %v4007_v5 }
  0x23   : > { %797 = vperm.xlu0 %3823, %v4173_v11   ;;  %808 = vperm.xlu1 %3824, %v4171_v9  }
  0x25   : > { %3613 = vmatmul.mubr.msk.bf16.gmra.mxu1 %vm492_vm0, %v3895_v32 }
  0x27   : > { %3827 = vset.pattern.permute.xlu0 %v4008_v12  ;;  %3825 = vset.pattern.permute.xlu1 %v4009_v13 }
  0x28   : > { %839 = vperm.xlu0 %3827, %v4162_v6   ;;  %967 = vperm.xlu1 %3825, %v4162_v6  }
  0x2c   : > { %3828 = vset.pattern.permute.xlu0 %v4009_v13  ;;  %3826 = vset.pattern.permute.xlu1 %v4010_v14 }
  0x2d   : > { %978 = vperm.xlu0 %3828, %v4166_v8   ;;  %1027 = vperm.xlu1 %3826, %v4162_v6  }
  0x31   : > { %1000 = vperm.xlu0 %3828, %v4171_v9   ;;  %1038 = vperm.xlu1 %3826, %v4166_v8  }
  0x35   : > { %3834 = vset.pattern.permute.xlu0 %v4011_v15  ;;  %3829 = vset.pattern.permute.xlu1 %v4008_v12 }
  0x36   : > { %1290 = vperm.xlu0 %3834, %v4166_v8   ;;  %850 = vperm.xlu1 %3829, %v4166_v8  }
  0x3a   : > { %3835 = vset.pattern.permute.xlu0 %v4012_v16  ;;  %3830 = vset.pattern.permute.xlu1 %v4009_v13 }
  0x3b   : > { %1219 = vperm.xlu0 %3835, %v4162_v6   ;;  %989 = vperm.xlu1 %3830, %v4173_v11  }
  0x3f   : > { %1252 = vperm.xlu0 %3835, %v4171_v9   ;;  %3831 = vset.pattern.permute.xlu1 %v4010_v14 }
  0x40   : > { %1049 = vperm.xlu1 %3831, %v4173_v11  }
  0x43   : > { %3839 = vset.pattern.permute.xlu0 %v4013_v17 }
  0x44   : > { %1091 = vperm.xlu0 %3839, %v4162_v6   ;;  %1060 = vperm.xlu1 %3831, %v4171_v9  }
  0x48   : > { %1124 = vperm.xlu0 %3839, %v4171_v9   ;;  %3832 = vset.pattern.permute.xlu1 %v4012_v16 }
  0x49   : > { %1230 = vperm.xlu1 %3832, %v4166_v8  }
  0x4c   : > { %3843 = vset.pattern.permute.xlu0 %v4014_v18 }
  0x4d   : > { %903 = vperm.xlu0 %3843, %v4162_v6   ;;  %3833 = vset.pattern.permute.xlu1 %v4011_v15 }
  0x4e   : > { %1279 = vperm.xlu1 %3833, %v4162_v6  }
  0x51   : > { %925 = vperm.xlu0 %3843, %v4173_v11  }
  0x52   : > { %3836 = vset.pattern.permute.xlu1 %v4008_v12 }
  0x53   : > { %861 = vperm.xlu1 %3836, %v4173_v11  }
  0x55   : > { %3847 = vset.pattern.permute.xlu0 %v4015_v21 }
  0x56   : > { %1166 = vperm.xlu0 %3847, %v4166_v8  }
  0x57   : > { %872 = vperm.xlu1 %3836, %v4171_v9  }
  0x5a   : > { %1177 = vperm.xlu0 %3847, %v4173_v11  }
  0x5b   : > { %3837 = vset.pattern.permute.xlu1 %v4013_v17 }
  0x5c   : > { %1102 = vperm.xlu1 %3837, %v4166_v8  }
  0x5e   : > { %3850 = vset.pattern.permute.xlu0 %v4016_v25 }
  0x5f   : > { %1407 = vperm.xlu0 %3850, %v4162_v6  }
  0x60   : > { %3838 = vset.pattern.permute.xlu1 %v4012_v16 }
  0x61   : > { %1241 = vperm.xlu1 %3838, %v4173_v11  }
  0x63   : > { %1440 = vperm.xlu0 %3850, %v4171_v9  }
  0x65   : > { %3840 = vset.pattern.permute.xlu1 %v4011_v15 }
  0x66   : > { %1301 = vperm.xlu1 %3840, %v4173_v11  }
  0x6a   : > { %1312 = vperm.xlu1 %3840, %v4171_v9  }
  0x6e   : > { %3841 = vset.pattern.permute.xlu1 %v4014_v18 }
  0x6f   : > { %914 = vperm.xlu1 %3841, %v4166_v8  }
  0x73   : > { %3842 = vset.pattern.permute.xlu1 %v4013_v17 }
  0x74   : > { %1113 = vperm.xlu1 %3842, %v4173_v11  }
  0x78   : > { %3844 = vset.pattern.permute.xlu1 %v4017_v26 }
  0x79   : > { %1343 = vperm.xlu1 %3844, %v4162_v6  }
  0x7d   : > { %1354 = vperm.xlu1 %3844, %v4166_v8  }
  0x81   : > { %3845 = vset.pattern.permute.xlu1 %v4014_v18 }
  0x82   : > { %936 = vperm.xlu1 %3845, %v4171_v9  }
  0x86   : > { %3846 = vset.pattern.permute.xlu1 %v4015_v21 }
  0x87   : > { %1155 = vperm.xlu1 %3846, %v4162_v6  }
  0x8b   : > { %3848 = vset.pattern.permute.xlu1 %v4017_v26 }
  0x8c   : > { %1365 = vperm.xlu1 %3848, %v4173_v11  }
  0x90   : > { %1376 = vperm.xlu1 %3848, %v4171_v9   ;;  %v4242_v33 = vpop.permute.xlu1 %775 }
  0x91   : > { %v4304_v2 = vpop.permute.xlu0 %702 }
  0x94   : > { %3849 = vset.pattern.permute.xlu1 %v4015_v21  ;;  %v4244_v34 = vpop.permute.xlu1 %786 }
  0x95   : > { %1188 = vperm.xlu1 %3849, %v4171_v9   ;;  %v4312_v4 = vpop.permute.xlu0 %714 }
  0x99   : > { %3851 = vset.pattern.permute.xlu1 %v4016_v25  ;;  %v4246_v35 = vpop.permute.xlu1 %738  ;;  %v4324_v6 = vpop.permute.xlu0 %726 }
  0x9a   : > { %1418 = vperm.xlu1 %3851, %v4166_v8  }
  0x9e   : > { %1429 = vperm.xlu1 %3851, %v4173_v11   ;;  %v4248_v36 = vpop.permute.xlu1 %808  ;;  %v4332_v8 = vpop.permute.xlu0 %797 }
  0xa3   : > { %v4250_v37 = vpop.permute.xlu1 %967  ;;  %v4340_v10 = vpop.permute.xlu0 %839 }
  0xa8   : > { %v4252_v38 = vpop.permute.xlu1 %1027  ;;  %v4354_v13 = vpop.permute.xlu0 %978 }
  0xac   : > { %v4254_v39 = vpop.permute.xlu1 %1038  ;;  %v4364_v16 = vpop.permute.xlu0 %1000 }
  0xb1   : > { %v4256_v40 = vpop.permute.xlu1 %850  ;;  %v4372_v18 = vpop.permute.xlu0 %1290 }
  0xb6   : > { %v4259_v43 = vpop.permute.xlu1 %989  ;;  %v4384_v21 = vpop.permute.xlu0 %1219 }
  0xba   : > { %v4392_v23 = vpop.permute.xlu0 %1252 }
  0xbb   : > { %v4266_v49 = vpop.permute.xlu1 %1049  ;;  %6113 = vst [vmem:[#allocation13_spill] sm:$0xff] %v4392_v23 }
  0xbf   : > { %v4281_v57 = vpop.permute.xlu1 %1060  ;;  %v4404_v26 = vpop.permute.xlu0 %1091 }
  0xc3   : > { %v4412_v28 = vpop.permute.xlu0 %1124 }
  0xc4   : > { %v4290_v63 = vpop.permute.xlu1 %1230  ;;  %6115 = vst [vmem:[#allocation15_spill] sm:$0xff] %v4412_v28 }
  0xc8   : > { %v904_v30 = vpop.permute.xlu0 %903 }
  0xc9   : > { %v4298_v1 = vpop.permute.xlu1 %1279 }
  0xcc   : > { %v4430_v32 = vpop.permute.xlu0 %925 }
  0xce   : > { %v4310_v3 = vpop.permute.xlu1 %861 }
  0xd2   : > { %v4318_v5 = vpop.permute.xlu1 %872 }
  0xd7   : > { %v4326_v7 = vpop.permute.xlu1 %1102 }
  0xd8   : > { %v533_v44 = vpop.f32.mrf.mxu0 }
  0xd9   : > { %v534_v45 = vadd.f32 %v533_v44, %v455_v42  ;;  %v4443_v44 = vpop.permute.xlu0 %1166 }
  0xda   : > { %v535_v46 = vpop.f32.mrf.mxu0 }
  0xdb   : > { %v4261_v47 = vpack.c.bf16 %v534_v45, %v534_v45  ;;  %v4264_v48 = vadd.f32 %v535_v46, %v4208_v24  ;;  %v3897_v46 = vld [vmem:[%s5960_s7 + $0x8] sm:$0xff]  }
  0xdc   : > { %v537_v50 = vpop.f32.mrf.mxu0  ;;  %v4338_v9 = vpop.permute.xlu1 %1241 }
  0xdd   : > { %6103 = vst [vmem:[#allocation3_spill] sm:$0xff] %v4264_v48  ;;  %v538_v51 = vadd.f32 %v537_v50, %v455_v42  ;;  %758 = vrot.lane.b32.xlu1 %v4261_v47, %s4018_s14  ;;  %6108 = vst [vmem:[#allocation8_spill] sm:$0xff] %v4338_v9  ;;  %v3898_v50 = vld [vmem:[%s5960_s7 + $0x10] sm:$0xff]  }
  0xde   : > { %v539_v52 = vpop.f32.mrf.mxu0 }
  0xdf   : > { %v4270_v53 = vpack.c.bf16 %v538_v51, %v534_v45  ;;  %v4272_v54 = vpack.c.bf16 %v538_v51, %v538_v51  ;;  %v4275_v55 = vadd.f32 %v539_v52, %v4208_v24  ;;  %v3899_v51 = vld [vmem:[%s5960_s7] sm:$0xff]   ;;  %v4459_v52 = vpop.permute.xlu0 %1177 }
  0xe0   : > { %v543_v56 = vpop.f32.mrf.mxu0  ;;  %6119 = vst [vmem:[#allocation19_spill] sm:$0xff] %v4459_v52 }
  0xe1   : > { %6104 = vst [vmem:[#allocation4_spill] sm:$0xff] %v4270_v53  ;;  %6105 = vst [vmem:[#allocation5_spill] sm:$0xff] %v4275_v55  ;;  %760 = vrot.lane.b32.xlu0 %v4272_v54, %s4018_s14  ;;  %818 = vrot.lane.b32.xlu1 %v4261_v47, %s4019_s23  ;;  %v544_v59 = vadd.f32 %v543_v56, %v455_v42  ;;  %v4346_v11 = vpop.permute.xlu1 %1301  ;;  %v4031_v53 = vmov 839922192  }
  0xe2   : > { %v545_v58 = vpop.f32.mrf.mxu0  ;;  %6109 = vst [vmem:[#allocation9_spill] sm:$0xff] %v4346_v11 }
  0xe3   : > { %v4284_v60 = vadd.f32 %v545_v58, %v4208_v24  ;;  %v4348_v12 = vpack.c.bf16 %v544_v59, %v544_v59  ;;  %v4464_v58 = vpop.permute.xlu0 %1407 }
  0xe4   : > { %v547_v61 = vpop.f32.mrf.mxu0 }
  0xe5   : > { %6106 = vst [vmem:[#allocation6_spill] sm:$0xff] %v4284_v60  ;;  %v548_v62 = vadd.f32 %v547_v61, %v455_v42  ;;  %820 = vrot.lane.b32.xlu0 %v4272_v54, %s4019_s23  ;;  %1010 = vrot.lane.b32.xlu1 %v4261_v47, %s5997_s24  ;;  %v4360_v14 = vpop.permute.xlu1 %1312  ;;  %v3896_v42 = vld [vmem:[%s5960_s7 + $0x18] sm:$0xff]  }
  0xe6   : > { %6110 = vst [vmem:[#allocation10_spill] sm:$0xff] %v4360_v14 }
  0xe7   : > { %v4292_v0 = vpack.c.bf16 %v548_v62, %v544_v59  ;;  %v4362_v15 = vpack.c.bf16 %v548_v62, %v548_v62  ;;  %v4468_v61 = vpop.permute.xlu0 %1440 }
  0xe8   : > { %6121 = vst [vmem:[#allocation21_spill] sm:$0xff] %v4468_v61 }
  0xe9   : > { %6107 = vst [vmem:[#allocation7_spill] sm:$0xff] %v4292_v0  ;;  %1012 = vrot.lane.b32.xlu0 %v4272_v54, %s5997_s24  ;;  %1070 = vrot.lane.b32.xlu1 %v4261_v47, %s5995_s25  ;;  %6111 = vst [vmem:[#allocation11_spill] sm:$0xff] %v4362_v15 }
  0xea   : > { %v4370_v17 = vpop.permute.xlu1 %914 }
  0xed   : > { %1072 = vrot.lane.b32.xlu0 %v4272_v54, %s5995_s25  ;;  %882 = vrot.lane.b32.xlu1 %v4261_v47, %s4022_s22 }
  0xef   : > { %v4378_v19 = vpop.permute.xlu1 %1113 }
  0xf0   : > { %6112 = vst [vmem:[#allocation12_spill] sm:$0xff] %v4378_v19 }
  0xf1   : > { %884 = vrot.lane.b32.xlu0 %v4272_v54, %s4022_s22  ;;  %1262 = vrot.lane.b32.xlu1 %v4261_v47, %s5972_s26 }
  0xf4   : > { %v4390_v22 = vpop.permute.xlu1 %1343 }
  0xf5   : > { %1264 = vrot.lane.b32.xlu0 %v4272_v54, %s5972_s26  ;;  %1322 = vrot.lane.b32.xlu1 %v4261_v47, %s5970_s27 }
  0xf8   : > { %v4398_v25 = vpop.permute.xlu1 %1354 }
  0xf9   : > { %1324 = vrot.lane.b32.xlu0 %v4272_v54, %s5970_s27  ;;  %1134 = vrot.lane.b32.xlu1 %v4261_v47, %s5968_s28 }
  0xfd   : > { %1136 = vrot.lane.b32.xlu0 %v4272_v54, %s5968_s28  ;;  %946 = vrot.lane.b32.xlu1 %v4261_v47, %s4026_s29  ;;  %v4406_v27 = vpop.permute.xlu1 %936 }
  0xfe   : > { %6114 = vst [vmem:[#allocation14_spill] sm:$0xff] %v4406_v27 }
 0x101   : > { %948 = vrot.lane.b32.xlu0 %v4272_v54, %s4026_s29  ;;  %1386 = vrot.lane.b32.xlu1 %v4261_v47, %s5964_s11 }
 0x102   : > { %v4418_v29 = vpop.permute.xlu1 %1155 }
 0x105   : > { %1388 = vrot.lane.b32.xlu0 %v4272_v54, %s5964_s11  ;;  %1198 = vrot.lane.b32.xlu1 %v4261_v47, %s5966_s12 }
 0x107   : > { %v4424_v31 = vpop.permute.xlu1 %1365 }
 0x108   : > { %6116 = vst [vmem:[#allocation16_spill] sm:$0xff] %v4424_v31 }
 0x109   : > { %1200 = vrot.lane.b32.xlu0 %v4272_v54, %s5966_s12  ;;  %1450 = vrot.lane.b32.xlu1 %v4261_v47, %s5993_s13 }
 0x10b   : > { %v4436_v41 = vpop.permute.xlu1 %1376 }
 0x10c   : > { %6117 = vst [vmem:[#allocation17_spill] sm:$0xff] %v4436_v41 }
 0x10d   : > { %1452 = vrot.lane.b32.xlu0 %v4272_v54, %s5993_s13  ;;  %762 = vrot.lane.b32.xlu1 %v4348_v12, %s4018_s14 }
 0x110   : > { %v4445_v45 = vpop.permute.xlu1 %1188 }
 0x111   : > { %764 = vrot.lane.b32.xlu0 %v4362_v15, %s4018_s14  ;;  %822 = vrot.lane.b32.xlu1 %v4348_v12, %s4019_s23  ;;  %6118 = vst [vmem:[#allocation18_spill] sm:$0xff] %v4445_v45 }
 0x115   : > { %824 = vrot.lane.b32.xlu0 %v4362_v15, %s4019_s23  ;;  %1014 = vrot.lane.b32.xlu1 %v4348_v12, %s5997_s24  ;;  %v4461_v56 = vpop.permute.xlu1 %1418 }
 0x119   : > { %1016 = vrot.lane.b32.xlu0 %v4362_v15, %s5997_s24  ;;  %1074 = vrot.lane.b32.xlu1 %v4348_v12, %s5995_s25  ;;  %v4466_v59 = vpop.permute.xlu1 %1429  ;;  %s6080_s24 = smov 24  }
 0x11a   : > { %6120 = vst [vmem:[#allocation20_spill] sm:$0xff] %v4466_v59 }
 0x11d   : > { %1076 = vrot.lane.b32.xlu0 %v4362_v15, %s5995_s25  ;;  %886 = vrot.lane.b32.xlu1 %v4348_v12, %s4022_s22  ;;  %s6082_s25 = smov 36  }
 0x121   : > { %888 = vrot.lane.b32.xlu0 %v4362_v15, %s4022_s22  ;;  %1266 = vrot.lane.b32.xlu1 %v4348_v12, %s5972_s26 }
 0x125   : > { %1268 = vrot.lane.b32.xlu0 %v4362_v15, %s5972_s26  ;;  %1326 = vrot.lane.b32.xlu1 %v4348_v12, %s5970_s27  ;;  %s4032_s26 = smov 12  }
 0x129   : > { %1328 = vrot.lane.b32.xlu0 %v4362_v15, %s5970_s27  ;;  %1138 = vrot.lane.b32.xlu1 %v4348_v12, %s5968_s28  ;;  %s4033_s27 = smov 16  }
 0x12d   : > { %1140 = vrot.lane.b32.xlu0 %v4362_v15, %s5968_s28  ;;  %950 = vrot.lane.b32.xlu1 %v4348_v12, %s4026_s29  ;;  %s4034_s28 = smov 48  }
 0x131   : > { %952 = vrot.lane.b32.xlu0 %v4362_v15, %s4026_s29  ;;  %1390 = vrot.lane.b32.xlu1 %v4348_v12, %s5964_s11 }
 0x135   : > { %1392 = vrot.lane.b32.xlu0 %v4362_v15, %s5964_s11  ;;  %1202 = vrot.lane.b32.xlu1 %v4348_v12, %s5966_s12  ;;  %s4030_s11 = smov 8  }
 0x139   : > { %1204 = vrot.lane.b32.xlu0 %v4362_v15, %s5966_s12  ;;  %1454 = vrot.lane.b32.xlu1 %v4348_v12, %s5993_s13  ;;  %s4035_s12 = smov 44  }
 0x13d   : > { %1456 = vrot.lane.b32.xlu0 %v4362_v15, %s5993_s13  ;;  %1555 = vrot.lane.b32.xlu1 %v3896_v42, %s4030_s11  ;;  %s4038_s13 = smov 40  }
 0x141   : > { %1551 = vrot.lane.b32.xlu1 %v3897_v46, %s4030_s11  ;;  %1553 = vrot.lane.b32.xlu0 %v3898_v50, %s4030_s11 }
 0x145   : > { %1549 = vrot.lane.b32.xlu0 %v3899_v51, %s4030_s11  ;;  %v706_v51 = vunpack.c.l.s4 %v4031_v53 }
 0x147   : > { %v707_v59 = vunpack.c.0.s8 %v706_v51 }
 0x149   : > { %v4483_v31 = vsub.s32 %v707_v59, %v4200_v20 }
 0x14b   : > { %v4489_v52 = vrot.slane %v4242_v33, %v4483_v31  ;;  %v4493_v53 = vrot.slane %v4244_v34, %v4483_v31  ;;  %v4497_v51 = vrot.slane %v4304_v2, %v4483_v31  ;;  %v4501_v28 = vrot.slane %v4312_v4, %v4483_v31 }
 0x14c   : > { %v4505_v20 = vrot.slane %v4256_v40, %v4483_v31  ;;  %v4509_v33 = vrot.slane %v4340_v10, %v4483_v31  ;;  %v4514_v11 = vrot.slane %v904_v30, %v4483_v31  ;;  %v4522_v10 = vrot.slane %v4370_v17, %v4483_v31 }
 0x14d   : > { %6122 = vst [vmem:[#allocation22_spill] sm:$0xff] %v4489_v52  ;;  %6123 = vst [vmem:[#allocation23_spill] sm:$0xff] %v4493_v53  ;;  %v4527_v30 = vrot.slane %v4250_v37, %v4483_v31  ;;  %v4539_v17 = vrot.slane %v4254_v39, %v4483_v31  ;;  %v4544_v37 = vrot.slane %v4372_v18, %v4483_v31 }
 0x14e   : > { %6124 = vst [vmem:[#allocation24_spill] sm:$0xff] %v4505_v20  ;;  %6125 = vst [vmem:[#allocation25_spill] sm:$0xff] %v4509_v33  ;;  %v4557_v39 = vrot.slane %v4326_v7, %v4483_v31 }
 0x14f   : > { %v759_v62 = vpop.permute.xlu1 %758  ;;  %6126 = vst [vmem:[#allocation26_spill] sm:$0xff] %v4514_v11  ;;  %6127 = vst [vmem:[#allocation27_spill] sm:$0xff] %v4522_v10 }
 0x150   : > { %v770_v4 = vmul.bf16 %v759_v62, %v4497_v51  ;;  %v4531_v62 = vrot.slane %v4252_v38, %v4483_v31  ;;  %6129 = vst [vmem:[#allocation29_spill] sm:$0xff] %v4539_v17  ;;  %6130 = vst [vmem:[#allocation30_spill] sm:$0xff] %v4544_v37  ;;  %v4548_v38 = vrot.slane %v4384_v21, %v4483_v31 }
 0x151   : > { %6133 = vst [vmem:[#allocation33_spill] sm:$0xff] %v4557_v39  ;;  %v4567_v21 = vrot.slane %v4298_v1, %v4483_v31  ;;  %v4581_v1 = vrot.slane %v4390_v22, %v4483_v31  ;;  %v4599_v22 = vrot.slane %v4464_v58, %v4483_v31  ;;  %v4610_v58 = vrot.slane %v4461_v56, %v4483_v31 }
 0x152   : > { %6128 = vst [vmem:[#allocation28_spill] sm:$0xff] %v4531_v62  ;;  %6131 = vst [vmem:[#allocation31_spill] sm:$0xff] %v4548_v38 }
 0x153   : > { %v761_v42 = vpop.permute.xlu0 %760  ;;  %v819_v46 = vpop.permute.xlu1 %818  ;;  %6135 = vst [vmem:[#allocation35_spill] sm:$0xff] %v4567_v21  ;;  %6137 = vst [vmem:[#allocation37_spill] sm:$0xff] %v4581_v1 }
 0x154   : > { %v830_v59 = vmul.bf16 %v819_v46, %v4489_v52  ;;  %v771_v27 = vmul.bf16 %v761_v42, %v4501_v28  ;;  %6140 = vst [vmem:[#allocation40_spill] sm:$0xff] %v4599_v22  ;;  %6141 = vst [vmem:[#allocation41_spill] sm:$0xff] %v4610_v58 }
 0x156   : > { %v834_v46 = vadd.bf16 %v830_v59, %v770_v4  ;;  %v4563_v4 = vrot.slane %v4290_v63, %v4483_v31 }
 0x157   : > { %v821_v50 = vpop.permute.xlu0 %820  ;;  %v4470_v24 = vpop.permute.xlu1 %1010 }
 0x158   : > { %v831_v34 = vmul.bf16 %v821_v50, %v4493_v53  ;;  %6134 = vst [vmem:[#allocation34_spill] sm:$0xff] %v4563_v4 }
 0x15a   : > { %v835_v52 = vadd.bf16 %v831_v34, %v771_v27 }
 0x15b   : > { %v4472_v48 = vpop.permute.xlu0 %1012  ;;  %v1071_v60 = vpop.permute.xlu1 %1070 }
 0x15c   : > { %v1082_v34 = vmul.bf16 %v1071_v60, %v4531_v62  ;;  %v1022_v60 = vmul.bf16 %v4470_v24, %v4527_v30  ;;  %v4585_v24 = vrot.slane %v4443_v44, %v4483_v31 }
 0x15e   : > { %6138 = vst [vmem:[#allocation38_spill] sm:$0xff] %v4585_v24 }
 0x15f   : > { %v4474_v55 = vpop.permute.xlu0 %1072  ;;  %v883_v0 = vpop.permute.xlu1 %882 }
 0x160   : > { %v894_v40 = vmul.bf16 %v883_v0, %v4509_v33  ;;  %v4535_v0 = vrot.slane %v4354_v13, %v4483_v31  ;;  %v4552_v13 = vrot.slane %v4404_v26, %v4483_v31 }
 0x162   : > { %v898_v27 = vadd.bf16 %v894_v40, %v834_v46  ;;  %6132 = vst [vmem:[#allocation32_spill] sm:$0xff] %v4552_v13  ;;  %v1023_v46 = vmul.bf16 %v4472_v48, %v4535_v0 }
 0x163   : > { %v885_v15 = vpop.permute.xlu0 %884  ;;  %v4476_v45 = vpop.permute.xlu1 %1262 }
 0x164   : > { %v895_v23 = vmul.bf16 %v885_v15, %v4505_v20  ;;  %v1274_v44 = vmul.bf16 %v4476_v45, %v4548_v38 }
 0x167   : > { %v4478_v41 = vpop.permute.xlu0 %1264  ;;  %v4480_v61 = vpop.permute.xlu1 %1322 }
 0x16b   : > { %v4485_v19 = vpop.permute.xlu0 %1324  ;;  %v1135_v14 = vpop.permute.xlu1 %1134 }
 0x16c   : > { %v1146_v26 = vmul.bf16 %v1135_v14, %v4552_v13  ;;  %v1086_v14 = vadd.bf16 %v1082_v34, %v1022_v60 }
 0x16f   : > { %v1137_v2 = vpop.permute.xlu0 %1136  ;;  %v947_v9 = vpop.permute.xlu1 %946 }
 0x170   : > { %v958_v50 = vmul.bf16 %v947_v9, %v4514_v11  ;;  %v899_v9 = vadd.bf16 %v895_v23, %v835_v52  ;;  %v1083_v23 = vmul.bf16 %v4474_v55, %v4539_v17  ;;  %v4574_v55 = vrot.slane %v4418_v29, %v4483_v31 }
 0x171   : > { %v1147_v63 = vmul.bf16 %v1137_v2, %v4557_v39  ;;  %v4591_v29 = vrot.slane %v4398_v25, %v4483_v31  ;;  %v1335_v2 = vmul.bf16 %v4485_v19, %v4544_v37  ;;  %v1150_v25 = vadd.bf16 %v1146_v26, %v1086_v14 }
 0x172   : > { %v962_v52 = vadd.bf16 %v958_v50, %v898_v27  ;;  %6136 = vst [vmem:[#allocation36_spill] sm:$0xff] %v4574_v55  ;;  %v1087_v48 = vadd.bf16 %v1083_v23, %v1023_v46  ;;  %v4707_v11 = vrot.slane %v4281_v57, %v4483_v31 }
 0x173   : > { %v949_v15 = vpop.permute.xlu0 %948  ;;  %v1387_v42 = vpop.permute.xlu1 %1386  ;;  %6139 = vst [vmem:[#allocation39_spill] sm:$0xff] %v4591_v29 }
 0x174   : > { %v959_v59 = vmul.bf16 %v949_v15, %v4522_v10  ;;  %v1334_v15 = vmul.bf16 %v4480_v61, %v4567_v21  ;;  %v1275_v61 = vmul.bf16 %v4478_v41, %v4563_v4  ;;  %v1151_v34 = vadd.bf16 %v1147_v63, %v1087_v48  ;;  %6151 = vst [vmem:[#allocation51_spill] sm:$0xff] %v4707_v11  ;;  %v6164_v4 = vld [vmem:[#allocation10_spill] sm:$0xff] }
 0x175   : > { %v1398_v19 = vmul.bf16 %v1387_v42, %v4581_v1  ;;  %v4743_v10 = vrot.slane %v6164_v4, %v4483_v31 }
 0x176   : > { %v963_v18 = vadd.bf16 %v959_v59, %v899_v9  ;;  %v1339_v60 = vadd.bf16 %v1335_v2, %v1275_v61  ;;  %v4622_v61 = vpop.f32.mrf.mxu1 }
 0x177   : > { %v1389_v7 = vpop.permute.xlu0 %1388  ;;  %v1199_v40 = vpop.permute.xlu1 %1198  ;;  %6165 = vst [vmem:[#allocation10_spill] sm:$0xff] %v4743_v10 }
 0x178   : > { %v3482_v50 = vcombine.low %v962_v52, %v963_v18  ;;  %v1210_v27 = vmul.bf16 %v1199_v40, %v4574_v55  ;;  %v1399_v23 = vmul.bf16 %v1389_v7, %v4591_v29  ;;  %v1338_v18 = vadd.bf16 %v1334_v15, %v1274_v44 }
 0x17a   : > { %1480 = vrot.lane.b32.xlu1 %v3482_v50, %s4030_s11  ;;  %v1214_v45 = vadd.bf16 %v1210_v27, %v1150_v25  ;;  %v1402_v63 = vadd.bf16 %v1398_v19, %v1338_v18  ;;  %v1403_v50 = vadd.bf16 %v1399_v23, %v1339_v60 }
 0x17b   : > { %v1201_v9 = vpop.permute.xlu0 %1200  ;;  %v1451_v59 = vpop.permute.xlu1 %1450 }
 0x17c   : > { %v1211_v52 = vmul.bf16 %v1201_v9, %v4585_v24  ;;  %v1462_v41 = vmul.bf16 %v1451_v59, %v4599_v22  ;;  %v4630_v59 = vpop.f32.mrf.mxu1 }
 0x17e   : > { %v1215_v40 = vadd.bf16 %v1211_v52, %v1151_v34  ;;  %v1466_v14 = vadd.bf16 %v1462_v41, %v1402_v63  ;;  %v4636_v23 = vpop.f32.mrf.mxu1 }
 0x17f   : > { %v1453_v26 = vpop.permute.xlu0 %1452  ;;  %v4613_v46 = vpop.permute.xlu1 %762 }
 0x180   : > { %v3484_v42 = vcombine.low %v1214_v45, %v1215_v40  ;;  %v1463_v7 = vmul.bf16 %v1453_v26, %v4610_v58  ;;  %v4642_v60 = vpop.f32.mrf.mxu1 }
 0x182   : > { %v1467_v48 = vadd.bf16 %v1463_v7, %v1403_v50  ;;  %1494 = vrot.lane.b32.xlu1 %v3484_v42, %s4032_s26  ;;  %v3614_v41 = vpop.f32.mrf.mxu1  ;;  %v4656_v50 = vrot.slane %v4248_v36, %v4483_v31  ;;  %v4660_v42 = vrot.slane %v4332_v8, %v4483_v31  ;;  %v4664_v7 = vrot.slane %v4246_v35, %v4483_v31 }
 0x183   : > { %v765_v56 = vpop.permute.xlu0 %764  ;;  %v823_v15 = vpop.permute.xlu1 %822  ;;  %v4676_v36 = vrot.slane %v4318_v5, %v4483_v31 }
 0x184   : > { %v3486_v2 = vcombine.low %v1466_v14, %v1467_v48  ;;  %6142 = vst [vmem:[#allocation42_spill] sm:$0xff] %v4656_v50  ;;  %6143 = vst [vmem:[#allocation43_spill] sm:$0xff] %v4660_v42  ;;  %v4668_v14 = vrot.slane %v4324_v6, %v4483_v31  ;;  %v4672_v48 = vrot.slane %v4310_v3, %v4483_v31  ;;  %v669_v35 = vpop.f32.mrf.mxu1 }
 0x185   : > { %6144 = vst [vmem:[#allocation44_spill] sm:$0xff] %v4664_v7  ;;  %6147 = vst [vmem:[#allocation47_spill] sm:$0xff] %v4676_v36  ;;  %v4684_v6 = vrot.slane %v4364_v16, %v4483_v31  ;;  %v4688_v3 = vrot.slane %v4430_v32, %v4483_v31  ;;  %v4699_v16 = vrot.slane %v4259_v43, %v4483_v31 }
 0x186   : > { %1508 = vrot.lane.b32.xlu1 %v3486_v2, %s4033_s27  ;;  %6145 = vst [vmem:[#allocation45_spill] sm:$0xff] %v4668_v14  ;;  %6146 = vst [vmem:[#allocation46_spill] sm:$0xff] %v4672_v48  ;;  %v832_v2 = vmul.bf16 %v823_v15, %v4660_v42  ;;  %v772_v15 = vmul.bf16 %v4613_v46, %v4668_v14  ;;  %v4703_v32 = vrot.slane %v4266_v49, %v4483_v31  ;;  %v6152_v46 = vld [vmem:[#allocation13_spill] sm:$0xff]  ;;  %v4723_v49 = vld [vmem:[%s5958_s5] ss:$0 sm:$0xff]  ;;  %v3615_v57 = vpop.f32.mrf.mxu1 }
 0x187   : > { %v825_v27 = vpop.permute.xlu0 %824  ;;  %v4618_v44 = vpop.permute.xlu1 %1014  ;;  %6148 = vst [vmem:[#allocation48_spill] sm:$0xff] %v4684_v6  ;;  %6149 = vst [vmem:[#allocation49_spill] sm:$0xff] %v4688_v3  ;;  %v4711_v55 = vrot.slane %v6152_v46, %v4483_v31  ;;  %v6156_v46 = vld [vmem:[#allocation8_spill] sm:$0xff]  ;;  %v681_v20 = vadd.f32 %v3615_v57, %v4723_v49 }
 0x188   : > { %v833_v8 = vmul.bf16 %v825_v27, %v4656_v50  ;;  %v773_v27 = vmul.bf16 %v765_v56, %v4664_v7  ;;  %6150 = vst [vmem:[#allocation50_spill] sm:$0xff] %v4703_v32  ;;  %v6154_v56 = vld [vmem:[#allocation14_spill] sm:$0xff]  ;;  %v4727_v7 = vrot.slane %v6156_v46, %v4483_v31 }
 0x189   : > { %6153 = vst [vmem:[#allocation13_spill] sm:$0xff] %v4711_v55 }
 0x18a   : > { %1751 = vrot.lane.b32.xlu1 %v4272_v54, %s4034_s28  ;;  %6157 = vst [vmem:[#allocation8_spill] sm:$0xff] %v4727_v7 }
 0x18b   : > { %v4624_v25 = vpop.permute.xlu0 %1016  ;;  %v4626_v9 = vpop.permute.xlu1 %1074 }
 0x18e   : > { %1765 = vrot.lane.b32.xlu1 %v4261_v47, %s4035_s12 }
 0x18f   : > { %v4632_v34 = vpop.permute.xlu0 %1076  ;;  %v887_v19 = vpop.permute.xlu1 %886 }
 0x190   : > { %v896_v58 = vmul.bf16 %v887_v19, %v4672_v48  ;;  %v4715_v19 = vrot.slane %v6154_v56, %v4483_v31  ;;  %v6158_v56 = vld [vmem:[#allocation9_spill] sm:$0xff]  ;;  %v6168_v48 = vld [vmem:[#allocation16_spill] sm:$0xff]  ;;  %v1085_v4 = vmul.bf16 %v4632_v34, %v4707_v11  ;;  %v1024_v34 = vmul.bf16 %v4618_v44, %v4699_v16 }
 0x191   : > { %v4756_v39 = vrot.slane %v6168_v48, %v4483_v31 }
 0x192   : > { %1753 = vrot.lane.b32.xlu1 %v4348_v12, %s4034_s28  ;;  %6155 = vst [vmem:[#allocation14_spill] sm:$0xff] %v4715_v19 }
 0x193   : > { %v889_v52 = vpop.permute.xlu0 %888  ;;  %v4638_v18 = vpop.permute.xlu1 %1266  ;;  %6169 = vst [vmem:[#allocation16_spill] sm:$0xff] %v4756_v39 }
 0x194   : > { %v897_v1 = vmul.bf16 %v889_v52, %v4676_v36  ;;  %v836_v52 = vadd.bf16 %v832_v2, %v772_v15  ;;  %v837_v36 = vadd.bf16 %v833_v8, %v773_v27  ;;  %v4731_v2 = vrot.slane %v6158_v56, %v4483_v31  ;;  %v6160_v8 = vld [vmem:[#allocation15_spill] sm:$0xff]  ;;  %v6166_v56 = vld [vmem:[#allocation12_spill] sm:$0xff] }
 0x195   : > { %v6162_v15 = vld [vmem:[#allocation19_spill] sm:$0xff]  ;;  %v4748_v37 = vrot.slane %v6166_v56, %v4483_v31 }
 0x196   : > { %1769 = vrot.lane.b32.xlu1 %v4348_v12, %s4035_s12  ;;  %6159 = vst [vmem:[#allocation9_spill] sm:$0xff] %v4731_v2  ;;  %v4739_v27 = vrot.slane %v6162_v15, %v4483_v31  ;;  %v900_v46 = vadd.bf16 %v896_v58, %v836_v52  ;;  %v901_v50 = vadd.bf16 %v897_v1, %v837_v36  ;;  %v6170_v36 = vld [vmem:[#allocation17_spill] sm:$0xff]  ;;  %v6174_v52 = vld [vmem:[#allocation20_spill] sm:$0xff] }
 0x197   : > { %v4644_v45 = vpop.permute.xlu0 %1268  ;;  %v4646_v40 = vpop.permute.xlu1 %1326  ;;  %6167 = vst [vmem:[#allocation12_spill] sm:$0xff] %v4748_v37  ;;  %v678_v15 = vadd.f32 %v3614_v41, %v4723_v49  ;;  %v4772_v48 = vrot.slane %v6174_v52, %v4483_v31 }
 0x198   : > { %6163 = vst [vmem:[#allocation19_spill] sm:$0xff] %v4739_v27  ;;  %v1336_v52 = vmul.bf16 %v4646_v40, %v4731_v2  ;;  %v1277_v40 = vmul.bf16 %v4644_v45, %v4711_v55 }
 0x199   : > { %6175 = vst [vmem:[#allocation20_spill] sm:$0xff] %v4772_v48  ;;  %v4785_v44 = vpack.c.bf16 %v681_v20, %v678_v15 }
 0x19a   : > { %1825 = vrot.lane.b32.xlu1 %v4261_v47, %s4036_s20 }
 0x19b   : > { %v4650_v26 = vpop.permute.xlu0 %1328  ;;  %v4652_v63 = vpop.permute.xlu1 %1138  ;;  %6176 = vst [vmem:[#allocation52_spill] sm:$0xff] %v4785_v44 }
 0x19c   : > { %v1148_v57 = vmul.bf16 %v4652_v63, %v4748_v37 }
 0x19e   : > { %1841 = vrot.lane.b32.xlu1 %v4261_v47, %s4037_s21 }
 0x19f   : > { %v4690_v22 = vpop.permute.xlu0 %1140  ;;  %v951_v5 = vpop.permute.xlu1 %950 }
 0x1a0   : > { %v960_v43 = vmul.bf16 %v951_v5, %v4688_v3  ;;  %v4735_v5 = vrot.slane %v6160_v8, %v4483_v31  ;;  %v1084_v8 = vmul.bf16 %v4626_v9, %v4703_v32  ;;  %v6172_v9 = vld [vmem:[#allocation18_spill] sm:$0xff] }
 0x1a1   : > { %v4768_v41 = vrot.slane %v6172_v9, %v4483_v31 }
 0x1a2   : > { %1785 = vrot.lane.b32.xlu1 %v4261_v47, %s4038_s13  ;;  %6161 = vst [vmem:[#allocation15_spill] sm:$0xff] %v4735_v5  ;;  %v964_v1 = vadd.bf16 %v960_v43, %v900_v46  ;;  %v1149_v46 = vmul.bf16 %v4690_v22, %v4735_v5  ;;  %v1088_v9 = vadd.bf16 %v1084_v8, %v1024_v34 }
 0x1a3   : > { %v953_v3 = vpop.permute.xlu0 %952  ;;  %v1391_v29 = vpop.permute.xlu1 %1390  ;;  %6173 = vst [vmem:[#allocation18_spill] sm:$0xff] %v4768_v41  ;;  %v1276_v22 = vmul.bf16 %v4638_v18, %v4727_v7 }
 0x1a4   : > { %v961_v24 = vmul.bf16 %v953_v3, %v4715_v19  ;;  %v4764_v3 = vrot.slane %v6170_v36, %v4483_v31  ;;  %v672_v36 = vpop.f32.mrf.mxu1  ;;  %v670_v19 = vadd.f32 %v4723_v49, %v669_v35  ;;  %v1400_v20 = vmul.bf16 %v1391_v29, %v4756_v39 }
 0x1a5   : > { %v673_v8 = vadd.f32 %v4723_v49, %v672_v36  ;;  %v1340_v18 = vadd.bf16 %v1336_v52, %v1276_v22  ;;  %v665_v52 = vadd.f32 %v4636_v23, %v4723_v49 }
 0x1a6   : > { %v965_v58 = vadd.bf16 %v961_v24, %v901_v50  ;;  %1829 = vrot.lane.b32.xlu1 %v4348_v12, %s4036_s20  ;;  %6171 = vst [vmem:[#allocation17_spill] sm:$0xff] %v4764_v3  ;;  %v1025_v50 = vmul.bf16 %v4624_v25, %v4684_v6  ;;  %v1337_v25 = vmul.bf16 %v4650_v26, %v4743_v10 }
 0x1a7   : > { %v1393_v43 = vpop.permute.xlu0 %1392  ;;  %v1203_v24 = vpop.permute.xlu1 %1202  ;;  %v1152_v26 = vadd.bf16 %v1148_v57, %v1088_v9  ;;  %v662_v9 = vadd.f32 %v4622_v61, %v4723_v49 }
 0x1a8   : > { %v3483_v56 = vcombine.low %v964_v1, %v965_v58  ;;  %v1089_v11 = vadd.bf16 %v1085_v4, %v1025_v50  ;;  %v1212_v6 = vmul.bf16 %v1203_v24, %v4739_v27  ;;  %v1401_v4 = vmul.bf16 %v1393_v43, %v4764_v3  ;;  %v6177_v58 = vld [vmem:[#allocation21_spill] sm:$0xff] }
 0x1a9   : > { %v4803_v34 = vrot.slane %v6177_v58, %v4483_v31  ;;  %v1341_v45 = vadd.bf16 %v1337_v25, %v1277_v40  ;;  %v4830_v23 = vpack.c.bf16 %v665_v52, %v662_v9 }
 0x1aa   : > { %1845 = vrot.lane.b32.xlu1 %v4348_v12, %s4037_s21  ;;  %1482 = vrot.lane.b32.xlu0 %v3483_v56, %s4030_s11  ;;  %v1153_v15 = vadd.bf16 %v1149_v46, %v1089_v11  ;;  %v1216_v24 = vadd.bf16 %v1212_v6, %v1152_v26  ;;  %v1404_v11 = vadd.bf16 %v1400_v20, %v1340_v18 }
 0x1ab   : > { %v1205_v63 = vpop.permute.xlu0 %1204  ;;  %v1455_v35 = vpop.permute.xlu1 %1454  ;;  %6178 = vst [vmem:[#allocation21_spill] sm:$0xff] %v4803_v34  ;;  %v4810_v46 = vpack.c.bf16 %v673_v8, %v670_v19  ;;  %v1405_v56 = vadd.bf16 %v1401_v4, %v1341_v45  ;;  %6182 = vst [vmem:[#allocation56_spill] sm:$0xff] %v4830_v23  ;;  %v654_v8 = vadd.f32 %v4723_v49, %v4630_v59 }
 0x1ac   : > { %v1213_v1 = vmul.bf16 %v1205_v63, %v4768_v41  ;;  %v1464_v50 = vmul.bf16 %v1455_v35, %v4772_v48  ;;  %v657_v26 = vadd.f32 %v4723_v49, %v4642_v60 }
 0x1ad   : > { %6180 = vst [vmem:[#allocation54_spill] sm:$0xff] %v4810_v46 }
 0x1ae   : > { %v1217_v29 = vadd.bf16 %v1213_v1, %v1153_v15  ;;  %1901 = vrot.lane.b32.xlu1 %v4261_v47, %s4033_s27  ;;  %v1468_v19 = vadd.bf16 %v1464_v50, %v1404_v11  ;;  %v4851_v4 = vpack.c.bf16 %v657_v26, %v654_v8  ;;  %v6186_v1 = vld [vmem:[#allocation11_spill] sm:$0xff] }
 0x1af   : > { %v1457_v57 = vpop.permute.xlu0 %1456  ;;  %v4808_v43 = vpop.permute.xlu1 %1555 }
 0x1b0   : > { %6179 = vst [vmem:[#allocation53_spill] sm:$0xff] %v4808_v43  ;;  %v1465_v31 = vmul.bf16 %v1457_v57, %v4803_v34  ;;  %v3485_v36 = vcombine.low %v1216_v24, %v1217_v29  ;;  %v1568_v6 = vsel %vm1512_vm1, %v4785_v44, %v4808_v43  ;;  %6184 = vst [vmem:[#allocation58_spill] sm:$0xff] %v4851_v4  ;;  %v6187_v24 = vld [vmem:[#allocation4_spill] sm:$0xff] }
 0x1b1   : > { %3720 = vmatprep.subr.msk.bf16.mxu0 %vm1569_vm2, %v1568_v6  ;;  %v1580_v25 = vsel %vm1569_vm2, %v1568_v6, 0 }
 0x1b2   : > { %v1469_v22 = vadd.bf16 %v1465_v31, %v1405_v56  ;;  %1917 = vrot.lane.b32.xlu1 %v4261_v47, %s4032_s26  ;;  %1496 = vrot.lane.b32.xlu0 %v3485_v36, %s4032_s26  ;;  %v6188_v36 = vld [vmem:[#allocation7_spill] sm:$0xff] }
 0x1b3   : > { %3617 = vmatpush3.bf16.xpose.msra.mxu0 %v1580_v25  ;;  %v4825_v40 = vpop.permute.xlu0 %1553  ;;  %v4836_v63 = vpop.permute.xlu1 %1551 }
 0x1b4   : > { %6181 = vst [vmem:[#allocation55_spill] sm:$0xff] %v4825_v40  ;;  %v3487_v20 = vcombine.low %v1468_v19, %v1469_v22  ;;  %v1565_v61 = vsel %vm1512_vm1, %v4810_v46, %v4825_v40  ;;  %6183 = vst [vmem:[#allocation57_spill] sm:$0xff] %v4836_v63  ;;  %v1562_v15 = vsel %vm1512_vm1, %v4830_v23, %v4836_v63  ;;  %v4913_v19 = vpop.f32.mrf.mxu0 }
 0x1b5   : > { %3721 = vmatprep.subr.msk.bf16.mxu0 %vm1569_vm2, %v1565_v61  ;;  %v1578_v35 = vsel %vm1569_vm2, %v1565_v61, 0  ;;  %v1576_v60 = vsel %vm1569_vm2, %v1562_v15, 0  ;;  %6189 = vst [vmem:[#allocation11_spill] sm:$0xff] %v4913_v19 }
 0x1b6   : > { %1789 = vrot.lane.b32.xlu1 %v4348_v12, %s4038_s13  ;;  %1510 = vrot.lane.b32.xlu0 %v3487_v20, %s4033_s27 }
 0x1b7   : > { %v4857_v59 = vpop.permute.xlu0 %1549 }
 0x1b8   : > { %6185 = vst [vmem:[#allocation59_spill] sm:$0xff] %v4857_v59  ;;  %v1559_v49 = vsel %vm1512_vm1, %v4851_v4, %v4857_v59 }
 0x1b9   : > { %v1574_v58 = vsel %vm1569_vm2, %v1559_v49, 0 }
 0x1ba   : > { %1861 = vrot.lane.b32.xlu1 %v4261_v47, %s6080_s24  ;;  %1749 = vrot.lane.b32.xlu0 %v4261_v47, %s4034_s28 }
 0x1bb   : > { %3619 = vmatpush3.bf16.xpose.msra.mxu0 %v1578_v35 }
 0x1bc   : > { %3722 = vmatprep.subr.msk.bf16.mxu0 %vm1569_vm2, %v1562_v15 }
 0x1be   : > { %1905 = vrot.lane.b32.xlu1 %v4348_v12, %s4033_s27  ;;  %1767 = vrot.lane.b32.xlu0 %v4272_v54, %s4035_s12 }
 0x1c2   : > { %1921 = vrot.lane.b32.xlu1 %v4348_v12, %s4032_s26  ;;  %1755 = vrot.lane.b32.xlu0 %v6186_v1, %s4034_s28 }
 0x1c3   : > { %3621 = vmatpush3.bf16.xpose.msra.mxu0 %v1576_v60 }
 0x1c4   : > { %3723 = vmatprep.subr.msk.bf16.mxu0 %vm1569_vm2, %v1559_v49 }
 0x1c6   : > { %1805 = vrot.lane.b32.xlu1 %v4261_v47, %s6082_s25  ;;  %1771 = vrot.lane.b32.xlu0 %v6186_v1, %s4035_s12 }
 0x1ca   : > { %1865 = vrot.lane.b32.xlu1 %v4348_v12, %s6080_s24  ;;  %1827 = vrot.lane.b32.xlu0 %v4272_v54, %s4036_s20 }
 0x1cb   : > { %3623 = vmatpush3.bf16.xpose.msra.mxu0 %v1574_v58 }
 0x1ce   : > { %1937 = vrot.lane.b32.xlu1 %v4261_v47, %s4030_s11  ;;  %1843 = vrot.lane.b32.xlu0 %v4272_v54, %s4037_s21 }
 0x1d2   : > { %1787 = vrot.lane.b32.xlu0 %v4272_v54, %s4038_s13 }
 0x1d6   : > { %1831 = vrot.lane.b32.xlu0 %v6186_v1, %s4036_s20  ;;  %s4041_s20 = smov 20  }
 0x1da   : > { %1847 = vrot.lane.b32.xlu0 %v6186_v1, %s4037_s21  ;;  %s4042_s21 = smov 4  }
 0x1de   : > { %1903 = vrot.lane.b32.xlu0 %v4272_v54, %s4033_s27 }
 0x1e2   : > { %1919 = vrot.lane.b32.xlu0 %v4272_v54, %s4032_s26 }
 0x1e6   : > { %1791 = vrot.lane.b32.xlu0 %v6186_v1, %s4038_s13 }
 0x1ea   : > { %1863 = vrot.lane.b32.xlu0 %v4272_v54, %s6080_s24 }
 0x1ec   : > { %v1481_v18 = vpop.permute.xlu1 %1480 }
 0x1ed   : > { %v1515_v29 = vsel %vm1512_vm1, %v6187_v24, %v1481_v18 }
 0x1ee   : > { %1907 = vrot.lane.b32.xlu0 %v6186_v1, %s4033_s27 }
 0x1f2   : > { %1923 = vrot.lane.b32.xlu0 %v6186_v1, %s4032_s26 }
 0x1f4   : > { %v1495_v45 = vpop.permute.xlu1 %1494 }
 0x1f5   : > { %v1521_v50 = vsel %vm1519_vm3, %v1515_v29, %v1495_v45 }
 0x1f6   : > { %1807 = vrot.lane.b32.xlu0 %v4272_v54, %s6082_s25 }
 0x1f8   : > { %v1509_v11 = vpop.permute.xlu1 %1508 }
 0x1f9   : > { %v1526_v57 = vsel %vm1524_vm4, %v1521_v50, %v1509_v11 }
 0x1fa   : > { %1867 = vrot.lane.b32.xlu0 %v6186_v1, %s6080_s24  ;;  %3624 = vmatprep.mubr.msk.bf16.mxu0 %vm1569_vm2, %v1526_v57  ;;  %s4045_s24 = smov 112  }
 0x1fc   : > { %v4940_v49 = vpop.permute.xlu1 %1751 }
 0x200   : > { %v4946_v18 = vpop.permute.xlu1 %1765 }
 0x204   : > { %v4955_v29 = vpop.permute.xlu1 %1753 }
 0x208   : > { %v4962_v11 = vpop.permute.xlu1 %1769 }
 0x21c   : > { %v1483_v56 = vpop.permute.xlu0 %1482 }
 0x21d   : > { %v1518_v6 = vsel %vm1512_vm1, %v6188_v36, %v1483_v56 }
 0x224   : > { %v1497_v31 = vpop.permute.xlu0 %1496 }
 0x225   : > { %v1523_v9 = vsel %vm1519_vm3, %v1518_v6, %v1497_v31 }
 0x228   : > { %v1511_v52 = vpop.permute.xlu0 %1510 }
 0x229   : > { %v1528_v25 = vsel %vm1524_vm4, %v1523_v9, %v1511_v52 }
 0x22a   : > { %3625 = vmatmul.mubr.msk.bf16.vlgmr.msra.gmra.mxu0 %vm1569_vm2, %v1528_v25 }
 0x22c   : > { %v4944_v58 = vpop.permute.xlu0 %1749 }
 0x230   : > { %v4951_v45 = vpop.permute.xlu0 %1767 }
 0x234   : > { %v4960_v50 = vpop.permute.xlu0 %1755 }
 0x2ea   : > { %v4915_v22 = vpop.f32.mrf.mxu0 }
 0x2eb   : > { %v1638_v20 = vsel %vm1631_vm5, %v4915_v22, -inf }
 0x2ec   : > { %1639 = vmax.xlane.f32.xlu0 %v1638_v20  ;;  %v4919_v61 = vpop.f32.mrf.mxu0 }
 0x2ed   : > { %v1632_v35 = vsel %vm1631_vm5, %v4919_v61, -inf }
 0x2ee   : > { %1633 = vmax.xlane.f32.xlu1 %v1632_v35  ;;  %v4923_v8 = vpop.f32.mrf.mxu0 }
 0x2ef   : > { %v1641_v15 = vsel %vm1631_vm5, %v4923_v8, -inf }
 0x2f0   : > { %v4925_v26 = vpop.f32.mrf.mxu0 }
 0x2f1   : > { %v1635_v60 = vsel %vm1631_vm5, %v4925_v26, -inf }
 0x2f2   : > { %1642 = vmax.xlane.f32.xlu1 %v1641_v15  ;;  %1636 = vmax.xlane.f32.xlu0 %v1635_v60 }
 0x303   : > { %1809 = vrot.lane.b32.xlu1 %v4348_v12, %s6082_s25 }
 0x307   : > { %1881 = vrot.lane.b32.xlu1 %v4261_v47, %s4041_s20 }
 0x308   : > { %1939 = vrot.lane.b32.xlu0 %v4272_v54, %s4030_s11 }
 0x30b   : > { %1941 = vrot.lane.b32.xlu1 %v4348_v12, %s4030_s11 }
 0x30c   : > { %1811 = vrot.lane.b32.xlu0 %v6186_v1, %s6082_s25  ;;  %s4046_s25 = smov 108  }
 0x30f   : > { %1885 = vrot.lane.b32.xlu1 %v4348_v12, %s4041_s20 }
 0x310   : > { %1883 = vrot.lane.b32.xlu0 %v4272_v54, %s4041_s20 }
 0x313   : > { %1957 = vrot.lane.b32.xlu1 %v4261_v47, %s4042_s21  ;;  %v4967_v47 = vpop.permute.xlu0 %1771 }
 0x314   : > { %1943 = vrot.lane.b32.xlu0 %v6186_v1, %s4030_s11 }
 0x317   : > { %1961 = vrot.lane.b32.xlu1 %v4348_v12, %s4042_s21  ;;  %v4971_v12 = vpop.permute.xlu1 %1825  ;;  %v4973_v57 = vpop.permute.xlu0 %1827 }
 0x318   : > { %1887 = vrot.lane.b32.xlu0 %v6186_v1, %s4041_s20  ;;  %s4043_s20 = smov 120  }
 0x31b   : > { %1686 = vrot.lane.b32.xlu1 %v4810_v46, %s4018_s14  ;;  %v4975_v56 = vpop.permute.xlu1 %1841 }
 0x31c   : > { %1959 = vrot.lane.b32.xlu0 %v4272_v54, %s4042_s21  ;;  %v4977_v54 = vpop.permute.xlu0 %1843 }
 0x31f   : > { %1684 = vrot.lane.b32.xlu1 %v4830_v23, %s4018_s14  ;;  %v4979_v31 = vpop.permute.xlu1 %1785 }
 0x320   : > { %1963 = vrot.lane.b32.xlu0 %v6186_v1, %s4042_s21  ;;  %v4981_v6 = vpop.permute.xlu0 %1787  ;;  %s4044_s21 = smov 124  }
 0x323   : > { %v4983_v9 = vpop.permute.xlu1 %1829 }
 0x324   : > { %1688 = vrot.lane.b32.xlu0 %v4785_v44, %s4018_s14  ;;  %v4985_v1 = vpop.permute.xlu0 %1831 }
 0x325   : > { %6190 = vst [vmem:[#allocation60_spill] sm:$0xff] %v4985_v1 }
 0x327   : > { %v4987_v52 = vpop.permute.xlu1 %1845 }
 0x328   : > { %v4989_v25 = vpop.permute.xlu0 %1847 }
 0x329   : > { %6191 = vst [vmem:[#allocation61_spill] sm:$0xff] %v4989_v25 }
 0x32b   : > { %v4991_v20 = vpop.permute.xlu1 %1901 }
 0x32c   : > { %v4993_v35 = vpop.permute.xlu0 %1903 }
 0x32f   : > { %v4995_v15 = vpop.permute.xlu1 %1917 }
 0x330   : > { %v4997_v60 = vpop.permute.xlu0 %1919 }
 0x333   : > { %v4999_v59 = vpop.permute.xlu1 %1789 }
 0x334   : > { %v5001_v63 = vpop.permute.xlu0 %1791 }
 0x337   : > { %v5003_v40 = vpop.permute.xlu1 %1861 }
 0x338   : > { %v5005_v43 = vpop.permute.xlu0 %1863 }
 0x33b   : > { %v5007_v19 = vpop.permute.xlu1 %1905 }
 0x33c   : > { %6192 = vst [vmem:[#allocation62_spill] sm:$0xff] %v5007_v19  ;;  %v5009_v48 = vpop.permute.xlu0 %1907 }
 0x33d   : > { %6193 = vst [vmem:[#allocation63_spill] sm:$0xff] %v5009_v48 }
 0x33f   : > { %v5011_v34 = vpop.permute.xlu1 %1921 }
 0x340   : > { %6194 = vst [vmem:[#allocation64_spill] sm:$0xff] %v5011_v34  ;;  %v5013_v39 = vpop.permute.xlu0 %1923 }
 0x341   : > { %6195 = vst [vmem:[#allocation65_spill] sm:$0xff] %v5013_v39 }
 0x343   : > { %v5015_v7 = vpop.permute.xlu1 %1805 }
 0x344   : > { %v5017_v3 = vpop.permute.xlu0 %1807 }
 0x347   : > { %v5019_v27 = vpop.permute.xlu1 %1865 }
 0x348   : > { %6196 = vst [vmem:[#allocation66_spill] sm:$0xff] %v5019_v27  ;;  %v5021_v55 = vpop.permute.xlu0 %1867 }
 0x349   : > { %6197 = vst [vmem:[#allocation67_spill] sm:$0xff] %v5021_v55 }
 0x34b   : > { %v5023_v2 = vpop.permute.xlu1 %1937 }
 0x375   : > { %v1640_v41 = vpop.xlane.xlu0 %1639 }
 0x376   : > { %v1646_v10 = vsub.f32 %v4915_v22, %v1640_v41 }
 0x377   : > { %v1634_v19 = vpop.xlane.xlu1 %1633 }
 0x378   : > { %v1652_v37 = vmul.f32 1.442695, %v1646_v10  ;;  %v1644_v48 = vsub.f32 %v4919_v61, %v1634_v19 }
 0x37a   : > { %3902 = vpow2.f32 %v1652_v37  ;;  %v1648_v34 = vmul.f32 1.442695, %v1644_v48 }
 0x37b   : > { %v1643_v39 = vpop.xlane.xlu1 %1642  ;;  %v1637_v5 = vpop.xlane.xlu0 %1636 }
 0x37c   : > { %3904 = vpow2.f32 %v1648_v34  ;;  %v1647_v1 = vsub.f32 %v4923_v8, %v1643_v39  ;;  %v1645_v27 = vsub.f32 %v4925_v26, %v1637_v5 }
 0x37e   : > { %v1654_v36 = vmul.f32 1.442695, %v1647_v1  ;;  %v1650_v55 = vmul.f32 1.442695, %v1645_v27 }
 0x37f   : > { %v5029_v25 = vpop.permute.xlu1 %1809  ;;  %v5031_v46 = vpop.permute.xlu0 %1939 }
 0x380   : > { %3906 = vpow2.f32 %v1654_v36 }
 0x381   : > { %3908 = vpow2.f32 %v1650_v55 }
 0x383   : > { %v5033_v10 = vpop.permute.xlu1 %1881  ;;  %v5035_v41 = vpop.permute.xlu0 %1811 }
 0x387   : > { %v5037_v37 = vpop.eup %3902  ;;  %v5039_v48 = vpop.permute.xlu1 %1941 }
 0x388   : > { %6198 = vst [vmem:[#allocation68_spill] sm:$0xff] %v5037_v37  ;;  %6199 = vst [vmem:[#allocation69_spill] sm:$0xff] %v5039_v48  ;;  %v5041_v34 = vpop.permute.xlu0 %1883  ;;  %v1662_v39 = vsel %vm1631_vm5, %v5037_v37, 0.0 }
 0x389   : > { %v5045_v5 = vpop.eup %3904  ;;  %1663 = vadd.xlane.f32.xlu0 %v1662_v39 }
 0x38a   : > { %6200 = vst [vmem:[#allocation70_spill] sm:$0xff] %v5045_v5  ;;  %v1656_v27 = vsel %vm1631_vm5, %v5045_v5, 0.0 }
 0x38b   : > { %1657 = vadd.xlane.f32.xlu1 %v1656_v27  ;;  %v5049_v55 = vpop.permute.xlu1 %1885 }
 0x38c   : > { %v5051_v36 = vpop.permute.xlu0 %1943 }
 0x38d   : > { %v5053_v19 = vpop.eup %3906 }
 0x38e   : > { %6201 = vst [vmem:[#allocation71_spill] sm:$0xff] %v5053_v19  ;;  %v5055_v22 = vpop.eup %3908  ;;  %v1665_v61 = vsel %vm1631_vm5, %v5053_v19, 0.0  ;;  %v1762_v19 = vmul.bf16 %v4940_v49, %v4501_v28 }
 0x38f   : > { %6202 = vst [vmem:[#allocation72_spill] sm:$0xff] %v5055_v22  ;;  %1666 = vadd.xlane.f32.xlu1 %v1665_v61  ;;  %v5059_v8 = vpop.permute.xlu1 %1957  ;;  %v1659_v26 = vsel %vm1631_vm5, %v5055_v22, 0.0  ;;  %v1779_v61 = vmul.bf16 %v4962_v11, %v4660_v42  ;;  %v1853_v22 = vmul.bf16 %v4975_v56, %v4531_v62  ;;  %v1929_v11 = vmul.bf16 %v4995_v15, %v4567_v21 }
 0x390   : > { %v5063_v1 = vpop.permute.xlu0 %1887  ;;  %1660 = vadd.xlane.f32.xlu0 %v1659_v26  ;;  %v1763_v26 = vmul.bf16 %v4955_v29, %v4668_v14  ;;  %v1761_v29 = vmul.bf16 %v4944_v58, %v4497_v51  ;;  %v1854_v14 = vmul.bf16 %v4977_v54, %v4539_v17  ;;  %v1873_v15 = vmul.bf16 %v5003_v40, %v4552_v13 }
 0x391   : > { %v1839_v58 = vmul.bf16 %v4983_v9, %v4699_v16  ;;  %v1838_v54 = vmul.bf16 %v4973_v57, %v4535_v0  ;;  %v1855_v40 = vmul.bf16 %v4987_v52, %v4703_v32  ;;  %v6208_v57 = vld [vmem:[#allocation30_spill] sm:$0xff]  ;;  %v6219_v32 = vld [vmem:[#allocation41_spill] sm:$0xff] }
 0x392   : > { %v1783_v62 = vadd.bf16 %v1779_v61, %v1763_v26  ;;  %v6205_v61 = vld [vmem:[#allocation33_spill] sm:$0xff]  ;;  %v1930_v21 = vmul.bf16 %v4997_v60, %v6208_v57 }
 0x393   : > { %v5067_v27 = vpop.permute.xlu1 %1961 }
 0x394   : > { %v5065_v39 = vpop.permute.xlu0 %1959  ;;  %6203 = vst [vmem:[#allocation73_spill] sm:$0xff] %v5067_v27  ;;  %v6204_v27 = vld [vmem:[#allocation22_spill] sm:$0xff] }
 0x395   : > { %v1777_v56 = vmul.bf16 %v4946_v18, %v6204_v27  ;;  %v1797_v18 = vmul.bf16 %v4979_v31, %v4509_v33  ;;  %v6207_v31 = vld [vmem:[#allocation24_spill] sm:$0xff] }
 0x397   : > { %v1687_v37 = vpop.permute.xlu1 %1686  ;;  %v1781_v9 = vadd.bf16 %v1777_v56, %v1761_v29  ;;  %v6213_v29 = vld [vmem:[#allocation39_spill] sm:$0xff] }
 0x398   : > { %v5069_v5 = vpop.permute.xlu0 %1963  ;;  %v1950_v60 = vmul.bf16 %v5031_v46, %v6213_v29 }
 0x39b   : > { %v1685_v42 = vpop.permute.xlu1 %1684 }
 0x39c   : > { %v1689_v48 = vpop.permute.xlu0 %1688 }
 0x39d   : > { %3628 = vmatprep.subr.bf16.mxu1 %v1689_v48 }
 0x39e   : > { %3629 = vmatpush3.bf16.msra.mxu1 %v1689_v48  ;;  %v1837_v48 = vmul.bf16 %v4971_v12, %v4527_v30  ;;  %v1913_v12 = vmul.bf16 %v4991_v20, %v4548_v38  ;;  %v1858_v38 = vadd.bf16 %v1854_v14, %v1838_v54  ;;  %v6214_v54 = vld [vmem:[#allocation36_spill] sm:$0xff] }
 0x39f   : > { %3630 = vmatprep.subr.bf16.mxu1 %v1687_v37 }
 0x3a0   : > { %2043 = vrot.lane.b32.xlu1 %v4785_v44, %s4043_s20  ;;  %v1857_v49 = vadd.bf16 %v1853_v22, %v1837_v48  ;;  %v1874_v22 = vmul.bf16 %v5005_v43, %v6205_v61  ;;  %v1933_v20 = vadd.bf16 %v1929_v11, %v1913_v12  ;;  %v1798_v48 = vmul.bf16 %v4981_v6, %v6207_v31  ;;  %v6209_v43 = vld [vmem:[#allocation38_spill] sm:$0xff] }
 0x3a1   : > { %v1894_v13 = vmul.bf16 %v5041_v34, %v6209_v43  ;;  %v6210_v12 = vld [vmem:[#allocation42_spill] sm:$0xff]  ;;  %v1893_v34 = vmul.bf16 %v5033_v10, %v6214_v54  ;;  %v1970_v10 = vmul.bf16 %v5065_v39, %v6219_v32 }
 0x3a2   : > { %3631 = vmatpush3.bf16.msra.mxu1 %v1687_v37  ;;  %v1778_v37 = vmul.bf16 %v4951_v45, %v4493_v53  ;;  %v6206_v45 = vld [vmem:[#allocation46_spill] sm:$0xff]  ;;  %v1877_v52 = vadd.bf16 %v1873_v15, %v1857_v49  ;;  %v1878_v56 = vadd.bf16 %v1874_v22, %v1858_v38  ;;  %v6218_v22 = vld [vmem:[#allocation47_spill] sm:$0xff] }
 0x3a3   : > { %3632 = vmatprep.subr.bf16.mxu1 %v1685_v42  ;;  %v1799_v26 = vmul.bf16 %v4999_v59, %v6206_v45  ;;  %v1780_v59 = vmul.bf16 %v4967_v47, %v6210_v12  ;;  %v6211_v45 = vld [vmem:[#allocation27_spill] sm:$0xff]  ;;  %v6216_v47 = vld [vmem:[#allocation26_spill] sm:$0xff]  ;;  %v1800_v46 = vmul.bf16 %v5001_v63, %v6218_v22 }
 0x3a4   : > { %2039 = vrot.lane.b32.xlu1 %v4830_v23, %s4043_s20  ;;  %v1782_v11 = vadd.bf16 %v1778_v37, %v1762_v19  ;;  %v1818_v6 = vmul.bf16 %v5017_v3, %v6211_v45  ;;  %v6215_v19 = vld [vmem:[#allocation44_spill] sm:$0xff]  ;;  %v1817_v15 = vmul.bf16 %v5015_v7, %v6216_v47  ;;  %v6217_v3 = vld [vmem:[#allocation37_spill] sm:$0xff]  ;;  %v1898_v29 = vadd.bf16 %v1894_v13, %v1878_v56  ;;  %v6221_v45 = vld [vmem:[#allocation51_spill] sm:$0xff] }
 0x3a5   : > { %v1764_v49 = vmul.bf16 %v4960_v50, %v6215_v19  ;;  %v1949_v37 = vmul.bf16 %v5023_v2, %v6217_v3  ;;  %v1801_v50 = vadd.bf16 %v1797_v18, %v1781_v9  ;;  %v1897_v2 = vadd.bf16 %v1893_v34, %v1877_v52  ;;  %v6225_v63 = vld [vmem:[#allocation7_spill] sm:$0xff]  ;;  %v6226_v56 = vld [vmem:[#allocation48_spill] sm:$0xff] }
 0x3a6   : > { %3633 = vmatpush3.bf16.msra.mxu1 %v1685_v42  ;;  %1682 = vrot.lane.b32.xlu0 %v4851_v4, %s4018_s14  ;;  %v6212_v42 = vld [vmem:[#allocation34_spill] sm:$0xff]  ;;  %v6228_v9 = vld [vmem:[#allocation15_spill] sm:$0xff] }
 0x3a7   : > { %v1914_v14 = vmul.bf16 %v4993_v35, %v6212_v42  ;;  %v1802_v35 = vadd.bf16 %v1798_v48, %v1782_v11  ;;  %v1784_v54 = vadd.bf16 %v1780_v59, %v1764_v49  ;;  %v6222_v42 = vld [vmem:[#allocation61_spill] sm:$0xff]  ;;  %v6223_v48 = vld [vmem:[#allocation14_spill] sm:$0xff]  ;;  %v6224_v11 = vld [vmem:[#allocation40_spill] sm:$0xff]  ;;  %v1821_v39 = vadd.bf16 %v1817_v15, %v1801_v50 }
 0x3a8   : > { %1977 = vrot.lane.b32.xlu1 %v6187_v24, %s4043_s20  ;;  %v6220_v24 = vld [vmem:[#allocation54_spill] sm:$0xff]  ;;  %v1856_v7 = vmul.bf16 %v6222_v42, %v6221_v45  ;;  %v1969_v13 = vmul.bf16 %v5059_v8, %v6224_v11  ;;  %v6227_v59 = vld [vmem:[#allocation60_spill] sm:$0xff]  ;;  %v6229_v49 = vld [vmem:[#allocation67_spill] sm:$0xff]  ;;  %v3498_v34 = vcombine.low %v1897_v2, %v1898_v29  ;;  %v1803_v8 = vadd.bf16 %v1799_v26, %v1783_v62 }
 0x3a9   : > { %v1934_v38 = vadd.bf16 %v1930_v21, %v1914_v14  ;;  %v1822_v47 = vadd.bf16 %v1818_v6, %v1802_v35  ;;  %v1820_v21 = vmul.bf16 %v5035_v41, %v6223_v48  ;;  %v1953_v14 = vadd.bf16 %v1949_v37, %v1933_v20  ;;  %v6231_v35 = vld [vmem:[#allocation12_spill] sm:$0xff]  ;;  %v6233_v37 = vld [vmem:[#allocation10_spill] sm:$0xff]  ;;  %v6234_v50 = vld [vmem:[#allocation65_spill] sm:$0xff] }
 0x3aa   : > { %2041 = vrot.lane.b32.xlu0 %v6220_v24, %s4043_s20  ;;  %v1840_v18 = vmul.bf16 %v6227_v59, %v6226_v56  ;;  %v1876_v42 = vmul.bf16 %v6229_v49, %v6228_v9  ;;  %v1804_v6 = vadd.bf16 %v1800_v46, %v1784_v54  ;;  %v1932_v59 = vmul.bf16 %v6234_v50, %v6233_v37  ;;  %v6235_v54 = vld [vmem:[#allocation18_spill] sm:$0xff]  ;;  %v6237_v29 = vld [vmem:[#allocation64_spill] sm:$0xff]  ;;  %v6238_v62 = vld [vmem:[#allocation13_spill] sm:$0xff] }
 0x3ab   : > { %v1954_v43 = vadd.bf16 %v1950_v60, %v1934_v38  ;;  %v6230_v60 = vld [vmem:[#allocation49_spill] sm:$0xff]  ;;  %v6232_v38 = vld [vmem:[#allocation66_spill] sm:$0xff]  ;;  %v3496_v56 = vcombine.low %v1821_v39, %v1822_v47  ;;  %v1973_v49 = vadd.bf16 %v1969_v13, %v1953_v14  ;;  %v1896_v46 = vmul.bf16 %v5063_v1, %v6235_v54  ;;  %v6239_v26 = vld [vmem:[#allocation63_spill] sm:$0xff] }
 0x3ac   : > { %1979 = vrot.lane.b32.xlu1 %v6225_v63, %s4043_s20  ;;  %v1819_v52 = vmul.bf16 %v5029_v25, %v6230_v60  ;;  %v1875_v15 = vmul.bf16 %v6232_v38, %v6231_v35  ;;  %v1860_v20 = vadd.bf16 %v1856_v7, %v1840_v18  ;;  %v1824_v63 = vadd.bf16 %v1820_v21, %v1804_v6  ;;  %v6240_v18 = vld [vmem:[#allocation19_spill] sm:$0xff]  ;;  %v6241_v47 = vld [vmem:[#allocation17_spill] sm:$0xff]  ;;  %v6242_v1 = vld [vmem:[#allocation8_spill] sm:$0xff] }
 0x3ad   : > { %v1974_v41 = vadd.bf16 %v1970_v10, %v1954_v43  ;;  %v1859_v25 = vadd.bf16 %v1855_v40, %v1839_v58  ;;  %v6236_v43 = vld [vmem:[#allocation9_spill] sm:$0xff]  ;;  %v1916_v2 = vmul.bf16 %v6239_v26, %v6238_v62  ;;  %v1895_v50 = vmul.bf16 %v5049_v55, %v6240_v18  ;;  %v6243_v39 = vld [vmem:[#allocation62_spill] sm:$0xff] }
 0x3ae   : > { %2037 = vrot.lane.b32.xlu0 %v4851_v4, %s4043_s20  ;;  %v1931_v10 = vmul.bf16 %v6237_v29, %v6236_v43  ;;  %v1880_v38 = vadd.bf16 %v1876_v42, %v1860_v20  ;;  %v1823_v7 = vadd.bf16 %v1819_v52, %v1803_v8  ;;  %v1952_v21 = vmul.bf16 %v5051_v36, %v6241_v47  ;;  %v6245_v29 = vld [vmem:[#allocation69_spill] sm:$0xff] }
 0x3af   : > { %v3500_v13 = vcombine.low %v1973_v49, %v1974_v41  ;;  %v1915_v58 = vmul.bf16 %v6243_v39, %v6242_v1  ;;  %v1879_v40 = vadd.bf16 %v1875_v15, %v1859_v25  ;;  %v1936_v14 = vadd.bf16 %v1932_v59, %v1916_v2  ;;  %v6246_v52 = vld [vmem:[#allocation21_spill] sm:$0xff]  ;;  %v6248_v49 = vld [vmem:[#allocation20_spill] sm:$0xff] }
 0x3b0   : > { %2005 = vrot.lane.b32.xlu1 %v3498_v34, %s4032_s26  ;;  %v3497_v6 = vcombine.low %v1823_v7, %v1824_v63  ;;  %v6244_v34 = vld [vmem:[#allocation16_spill] sm:$0xff]  ;;  %v1900_v42 = vadd.bf16 %v1896_v46, %v1880_v38  ;;  %v1972_v8 = vmul.bf16 %v5069_v5, %v6246_v52  ;;  %v6247_v55 = vld [vmem:[#allocation5_spill] sm:$0xff]  ;;  %v6250_v5 = vld [vmem:[#allocation6_spill] sm:$0xff] }
 0x3b1   : > { %v1951_v26 = vmul.bf16 %v6245_v29, %v6244_v34  ;;  %v5184_v36 = vpack.c.bf16 %v6247_v55, %v6247_v55  ;;  %v1899_v41 = vadd.bf16 %v1895_v50, %v1879_v40  ;;  %v1956_v20 = vadd.bf16 %v1952_v21, %v1936_v14  ;;  %v6249_v15 = vld [vmem:[#allocation73_spill] sm:$0xff]  ;;  %v6251_v7 = vld [vmem:[#allocation3_spill] sm:$0xff]  ;;  %v6252_v21 = vld [vmem:[#allocation2_spill] sm:$0xff] }
 0x3b2   : > { %1991 = vrot.lane.b32.xlu0 %v3496_v56, %s4030_s11  ;;  %v1935_v56 = vadd.bf16 %v1931_v10, %v1915_v58  ;;  %v1971_v59 = vmul.bf16 %v6249_v15, %v6248_v49  ;;  %v5192_v2 = vpack.c.bf16 %v6250_v5, %v6250_v5  ;;  %v5198_v50 = vpack.c.bf16 %v6251_v7, %v6251_v7  ;;  %v6255_v5 = vld [vmem:[#allocation68_spill] sm:$0xff]  ;;  %v6259_v49 = vld [vmem:[#allocation55_spill] sm:$0xff] }
 0x3b3   : > { %v3499_v25 = vcombine.low %v1899_v41, %v1900_v42  ;;  %v1976_v46 = vadd.bf16 %v1972_v8, %v1956_v20  ;;  %v6254_v42 = vld [vmem:[#allocation53_spill] sm:$0xff] }
 0x3b4   : > { %2019 = vrot.lane.b32.xlu1 %v3500_v13, %s4033_s27  ;;  %v1955_v63 = vadd.bf16 %v1951_v26, %v1935_v56  ;;  %v6253_v13 = vld [vmem:[#allocation11_spill] sm:$0xff] }
 0x3b5   : > { %v550_v39 = vadd.f32 %v6253_v13, %v6252_v21  ;;  %v6257_v13 = vld [vmem:[#allocation70_spill] sm:$0xff] }
 0x3b6   : > { %1993 = vrot.lane.b32.xlu0 %v3497_v6, %s4030_s11  ;;  %v1975_v38 = vadd.bf16 %v1971_v59, %v1955_v63 }
 0x3b7   : > { %v5206_v58 = vpack.c.bf16 %v550_v39, %v550_v39 }
 0x3b8   : > { %2247 = vrot.lane.b32.xlu1 %v5184_v36, %s4044_s21  ;;  %v3501_v10 = vcombine.low %v1975_v38, %v1976_v46 }
 0x3ba   : > { %2007 = vrot.lane.b32.xlu0 %v3499_v25, %s4032_s26 }
 0x3bc   : > { %2249 = vrot.lane.b32.xlu1 %v5192_v2, %s4044_s21 }
 0x3be   : > { %2021 = vrot.lane.b32.xlu0 %v3501_v10, %s4033_s27  ;;  %v6256_v10 = vld [vmem:[#allocation71_spill] sm:$0xff] }
 0x3c0   : > { %2305 = vrot.lane.b32.xlu1 %v5198_v50, %s4045_s24 }
 0x3c2   : > { %2245 = vrot.lane.b32.xlu0 %v5198_v50, %s4044_s21 }
 0x3c4   : > { %2321 = vrot.lane.b32.xlu1 %v5198_v50, %s4046_s25 }
 0x3c6   : > { %2251 = vrot.lane.b32.xlu0 %v5206_v58, %s4044_s21  ;;  %s4047_s21 = smov 104  }
 0x3c8   : > { %2265 = vrot.lane.b32.xlu1 %v5198_v50, %s4043_s20 }
 0x3ca   : > { %2307 = vrot.lane.b32.xlu0 %v5184_v36, %s4045_s24 }
 0x3cc   : > { %2309 = vrot.lane.b32.xlu1 %v5192_v2, %s4045_s24 }
 0x3ce   : > { %2323 = vrot.lane.b32.xlu0 %v5184_v36, %s4046_s25 }
 0x3d0   : > { %2325 = vrot.lane.b32.xlu1 %v5192_v2, %s4046_s25 }
 0x3d2   : > { %2267 = vrot.lane.b32.xlu0 %v5184_v36, %s4043_s20 }
 0x3d4   : > { %2381 = vrot.lane.b32.xlu1 %v5198_v50, %s4018_s14 }
 0x3d6   : > { %2311 = vrot.lane.b32.xlu0 %v5206_v58, %s4045_s24 }
 0x3d8   : > { %2397 = vrot.lane.b32.xlu1 %v5198_v50, %s4019_s23 }
 0x3da   : > { %2327 = vrot.lane.b32.xlu0 %v5206_v58, %s4046_s25  ;;  %s4048_s25 = smov 116  }
 0x3dc   : > { %2269 = vrot.lane.b32.xlu1 %v5192_v2, %s4043_s20 }
 0x3de   : > { %2383 = vrot.lane.b32.xlu0 %v5184_v36, %s4018_s14 }
 0x3e0   : > { %2341 = vrot.lane.b32.xlu1 %v5198_v50, %s4047_s21 }
 0x3e2   : > { %2399 = vrot.lane.b32.xlu0 %v5184_v36, %s4019_s23 }
 0x3e4   : > { %2385 = vrot.lane.b32.xlu1 %v5192_v2, %s4018_s14 }
 0x3e6   : > { %2271 = vrot.lane.b32.xlu0 %v5206_v58, %s4043_s20  ;;  %s6334_s20 = smov 72  }
 0x3e8   : > { %2401 = vrot.lane.b32.xlu1 %v5192_v2, %s4019_s23 }
 0x3ea   : > { %2343 = vrot.lane.b32.xlu0 %v5184_v36, %s4047_s21 }
 0x3ec   : > { %2285 = vrot.lane.b32.xlu1 %v5198_v50, %s4048_s25 }
 0x3ee   : > { %2387 = vrot.lane.b32.xlu0 %v5206_v58, %s4018_s14  ;;  %s4049_s14 = smov 100  }
 0x3f0   : > { %2345 = vrot.lane.b32.xlu1 %v5192_v2, %s4047_s21 }
 0x3f2   : > { %2403 = vrot.lane.b32.xlu0 %v5206_v58, %s4019_s23  ;;  %s6330_s23 = smov 80  }
 0x3f4   : > { %2417 = vrot.lane.b32.xlu1 %v5198_v50, %s4022_s22 }
 0x3f6   : > { %2287 = vrot.lane.b32.xlu0 %v5184_v36, %s4048_s25 }
 0x3fa   : > { %2347 = vrot.lane.b32.xlu0 %v5206_v58, %s4047_s21 }
 0x412   : > { %v1664_v40 = vpop.xlane.xlu0 %1663 }
 0x413   : > { %3910 = vrcp.f32 %v1664_v40  ;;  %v6258_v40 = vld [vmem:[#allocation72_spill] sm:$0xff] }
 0x414   : > { %v1658_v14 = vpop.xlane.xlu1 %1657 }
 0x415   : > { %3912 = vrcp.f32 %v1658_v14 }
 0x418   : > { %v1667_v6 = vpop.xlane.xlu1 %1666 }
 0x419   : > { %3914 = vrcp.f32 %v1667_v6  ;;  %v1661_v29 = vpop.xlane.xlu0 %1660 }
 0x41a   : > { %3916 = vrcp.f32 %v1661_v29 }
 0x41c   : > { %v2044_v26 = vpop.permute.xlu1 %2043 }
 0x41d   : > { %v2052_v8 = vsel %vm1512_vm1, %v2044_v26, %v6254_v42  ;;  %v1683_v55 = vpop.permute.xlu0 %1682 }
 0x41e   : > { %3634 = vmatprep.subr.bf16.mxu1 %v1683_v55  ;;  %v2063_v42 = vsel %vm1569_vm2, %v2052_v8, 0 }
 0x41f   : > { %3635 = vmatpush3.bf16.msra.mxu1 %v1683_v55 }
 0x420   : > { %3724 = vmatprep.subr.msk.bf16.mxu1 %vm1569_vm2, %v2052_v8  ;;  %v2040_v56 = vpop.permute.xlu1 %2039  ;;  %v3911_v20 = vpop.eup %3910  ;;  %v6260_v8 = vld [vmem:[#allocation57_spill] sm:$0xff] }
 0x421   : > { %v2042_v41 = vpop.permute.xlu0 %2041  ;;  %v1674_v38 = vmul.f32 %v3911_v20, %v6255_v5 }
 0x422   : > { %v3913_v59 = vpop.eup %3912  ;;  %v2050_v20 = vsel %vm1512_vm1, %v2042_v41, %v6259_v49 }
 0x423   : > { %v1672_v39 = vmul.f32 %v3913_v59, %v6257_v13 }
 0x424   : > { %v1978_v15 = vpop.permute.xlu1 %1977 }
 0x425   : > { %v2038_v25 = vpop.permute.xlu0 %2037 }
 0x426   : > { %v3915_v63 = vpop.eup %3914 }
 0x427   : > { %v3917_v46 = vpop.eup %3916  ;;  %v1675_v7 = vmul.f32 %v3915_v63, %v6256_v10  ;;  %v2048_v10 = vsel %vm1512_vm1, %v2040_v56, %v6260_v8 }
 0x428   : > { %v1980_v21 = vpop.permute.xlu1 %1979  ;;  %v1673_v14 = vmul.f32 %v3917_v46, %v6258_v40 }
 0x429   : > { %v1677_v6 = vpack.c.bf16 %v1675_v7, %v1674_v38  ;;  %v1992_v26 = vpop.permute.xlu0 %1991  ;;  %v2061_v38 = vsel %vm1569_vm2, %v2050_v20, 0 }
 0x42a   : > { %v1676_v29 = vpack.c.bf16 %v1673_v14, %v1672_v39  ;;  %v2025_v63 = vsel %vm1512_vm1, %v1978_v15, %v1992_v26  ;;  %v6261_v15 = vld [vmem:[#allocation59_spill] sm:$0xff] }
 0x42b   : > { %v2046_v7 = vsel %vm1512_vm1, %v2038_v25, %v6261_v15 }
 0x42c   : > { %3636 = vmatprep.mubr.msk.bf16.mxu1 %vm1631_vm5, %v1676_v29  ;;  %v2006_v55 = vpop.permute.xlu1 %2005  ;;  %v2057_v39 = vsel %vm1569_vm2, %v2046_v7, 0 }
 0x42d   : > { %3637 = vmatmul.mubr.msk.bf16.vlgmr.msra.gmra.mxu1 %vm1631_vm5, %v1677_v6  ;;  %v2030_v59 = vsel %vm1519_vm3, %v2025_v63, %v2006_v55  ;;  %v1994_v41 = vpop.permute.xlu0 %1993 }
 0x42e   : > { %3641 = vmatpush3.bf16.xpose.msra.mxu1 %v2063_v42  ;;  %v2059_v42 = vsel %vm1569_vm2, %v2048_v10, 0  ;;  %v2028_v14 = vsel %vm1512_vm1, %v1980_v21, %v1994_v41 }
 0x42f   : > { %3725 = vmatprep.subr.msk.bf16.mxu1 %vm1569_vm2, %v2050_v20 }
 0x430   : > { %v2020_v46 = vpop.permute.xlu1 %2019 }
 0x431   : > { %v2034_v5 = vsel %vm1524_vm4, %v2030_v59, %v2020_v46  ;;  %v2008_v13 = vpop.permute.xlu0 %2007 }
 0x432   : > { %3648 = vmatprep.mubr.msk.bf16.mxu1 %vm1569_vm2, %v2034_v5  ;;  %v2032_v56 = vsel %vm1519_vm3, %v2028_v14, %v2008_v13 }
 0x435   : > { %v2022_v40 = vpop.permute.xlu0 %2021 }
 0x436   : > { %3643 = vmatpush3.bf16.xpose.msra.mxu1 %v2061_v38  ;;  %v2036_v6 = vsel %vm1524_vm4, %v2032_v56, %v2022_v40 }
 0x437   : > { %3726 = vmatprep.subr.msk.bf16.mxu1 %vm1569_vm2, %v2048_v10 }
 0x439   : > { %v5335_v41 = vpop.permute.xlu0 %2245 }
 0x43d   : > { %v5343_v13 = vpop.permute.xlu0 %2251 }
 0x43e   : > { %3645 = vmatpush3.bf16.xpose.msra.mxu1 %v2059_v42  ;;  %v5329_v42 = vpop.permute.xlu1 %2247 }
 0x43f   : > { %3727 = vmatprep.subr.msk.bf16.mxu1 %vm1569_vm2, %v2046_v7 }
 0x441   : > { %v5349_v40 = vpop.permute.xlu0 %2307 }
 0x442   : > { %v5337_v7 = vpop.permute.xlu1 %2249 }
 0x445   : > { %v5353_v56 = vpop.permute.xlu0 %2323 }
 0x446   : > { %3647 = vmatpush3.bf16.xpose.msra.mxu1 %v2057_v39  ;;  %v5347_v39 = vpop.permute.xlu1 %2305 }
 0x44a   : > { %v5351_v14 = vpop.permute.xlu1 %2321 }
 0x44d   : > { %3649 = vmatmul.mubr.msk.bf16.vlgmr.msra.gmra.mxu1 %vm1569_vm2, %v2036_v6 }
 0x44e   : > { %v5355_v6 = vpop.permute.xlu1 %2265 }
 0x4ed   : > { %v5287_v29 = vpop.f32.mrf.mxu1 }
 0x4ee   : > { %6262 = vst [vmem:[#allocation33_spill] sm:$0xff] %v5287_v29 }
 0x4ef   : > { %v5289_v26 = vpop.f32.mrf.mxu1 }
 0x4f0   : > { %6263 = vst [vmem:[#allocation24_spill] sm:$0xff] %v5289_v26 }
 0x4f1   : > { %v5291_v25 = vpop.f32.mrf.mxu1 }
 0x4f2   : > { %6264 = vst [vmem:[#allocation30_spill] sm:$0xff] %v5291_v25 }
 0x4f3   : > { %v5293_v55 = vpop.f32.mrf.mxu1 }
 0x4f4   : > { %6265 = vst [vmem:[#allocation44_spill] sm:$0xff] %v5293_v55 }
 0x50d   : > { %v5295_v20 = vpop.f32.mrf.mxu1 }
 0x50e   : > { %v2120_v63 = vsel %vm1631_vm5, %v5295_v20, -inf }
 0x50f   : > { %2121 = vmax.xlane.f32.xlu0 %v2120_v63  ;;  %v5299_v21 = vpop.f32.mrf.mxu1  ;;  %v5357_v63 = vpop.permute.xlu0 %2267 }
 0x510   : > { %v2114_v59 = vsel %vm1631_vm5, %v5299_v21, -inf }
 0x511   : > { %2115 = vmax.xlane.f32.xlu1 %v2114_v59  ;;  %v5303_v46 = vpop.f32.mrf.mxu1  ;;  %v5359_v59 = vpop.permute.xlu1 %2309 }
 0x512   : > { %v2123_v38 = vsel %vm1631_vm5, %v5303_v46, -inf }
 0x513   : > { %v5305_v5 = vpop.f32.mrf.mxu1 }
 0x514   : > { %v2117_v10 = vsel %vm1631_vm5, %v5305_v5, -inf }
 0x515   : > { %2124 = vmax.xlane.f32.xlu1 %v2123_v38  ;;  %2118 = vmax.xlane.f32.xlu0 %v2117_v10  ;;  %v5361_v38 = vpop.permute.xlu0 %2311  ;;  %v5363_v10 = vpop.permute.xlu1 %2325 }
 0x516   : > { %6266 = vst [vmem:[#allocation47_spill] sm:$0xff] %v5361_v38 }
 0x519   : > { %v5365_v29 = vpop.permute.xlu0 %2327  ;;  %v5367_v25 = vpop.permute.xlu1 %2381 }
 0x51a   : > { %6267 = vst [vmem:[#allocation61_spill] sm:$0xff] %v5365_v29 }
 0x51d   : > { %v5369_v26 = vpop.permute.xlu0 %2383  ;;  %v5371_v55 = vpop.permute.xlu1 %2397 }
 0x521   : > { %v5373_v15 = vpop.permute.xlu0 %2399  ;;  %v5375_v8 = vpop.permute.xlu1 %2269 }
 0x522   : > { %6268 = vst [vmem:[#allocation60_spill] sm:$0xff] %v5375_v8 }
 0x525   : > { %v5377_v49 = vpop.permute.xlu0 %2271  ;;  %v5379_v52 = vpop.permute.xlu1 %2341 }
 0x526   : > { %2289 = vrot.lane.b32.xlu1 %v5192_v2, %s4048_s25 }
 0x529   : > { %v5381_v34 = vpop.permute.xlu0 %2343  ;;  %v5383_v1 = vpop.permute.xlu1 %2385 }
 0x52a   : > { %2361 = vrot.lane.b32.xlu1 %v5198_v50, %s4049_s14  ;;  %6269 = vst [vmem:[#allocation67_spill] sm:$0xff] %v5383_v1 }
 0x52b   : > { %2419 = vrot.lane.b32.xlu0 %v5184_v36, %s4022_s22 }
 0x52d   : > { %v5385_v47 = vpop.permute.xlu0 %2387  ;;  %v5387_v18 = vpop.permute.xlu1 %2401 }
 0x52e   : > { %2421 = vrot.lane.b32.xlu1 %v5192_v2, %s4022_s22  ;;  %6270 = vst [vmem:[#allocation66_spill] sm:$0xff] %v5385_v47  ;;  %6271 = vst [vmem:[#allocation65_spill] sm:$0xff] %v5387_v18 }
 0x52f   : > { %2291 = vrot.lane.b32.xlu0 %v5206_v58, %s4048_s25  ;;  %s6335_s25 = smov 56  }
 0x531   : > { %v5389_v62 = vpop.permute.xlu0 %2403  ;;  %v5391_v43 = vpop.permute.xlu1 %2285 }
 0x532   : > { %2365 = vrot.lane.b32.xlu1 %v5192_v2, %s4049_s14  ;;  %6272 = vst [vmem:[#allocation64_spill] sm:$0xff] %v5389_v62 }
 0x533   : > { %2363 = vrot.lane.b32.xlu0 %v5184_v36, %s4049_s14 }
 0x535   : > { %v5393_v54 = vpop.permute.xlu0 %2287  ;;  %v5395_v35 = vpop.permute.xlu1 %2345 }
 0x536   : > { %2437 = vrot.lane.b32.xlu1 %v5198_v50, %s4026_s29  ;;  %6273 = vst [vmem:[#allocation63_spill] sm:$0xff] %v5395_v35 }
 0x537   : > { %2423 = vrot.lane.b32.xlu0 %v5206_v58, %s4022_s22 }
 0x539   : > { %v5397_v37 = vpop.permute.xlu0 %2347  ;;  %v5399_v60 = vpop.permute.xlu1 %2417 }
 0x53a   : > { %2441 = vrot.lane.b32.xlu1 %v5192_v2, %s4026_s29  ;;  %6274 = vst [vmem:[#allocation62_spill] sm:$0xff] %v5397_v37 }
 0x53b   : > { %2367 = vrot.lane.b32.xlu0 %v5206_v58, %s4049_s14  ;;  %s6336_s14 = smov 68  }
 0x53e   : > { %2164 = vrot.lane.b32.xlu1 %v6220_v24, %s4022_s22 }
 0x53f   : > { %2439 = vrot.lane.b32.xlu0 %v5184_v36, %s4026_s29 }
 0x542   : > { %2162 = vrot.lane.b32.xlu1 %v4830_v23, %s4022_s22 }
 0x543   : > { %2443 = vrot.lane.b32.xlu0 %v5206_v58, %s4026_s29  ;;  %s6332_s29 = smov 64  }
 0x547   : > { %2166 = vrot.lane.b32.xlu0 %v4785_v44, %s4022_s22 }
 0x598   : > { %v2122_v9 = vpop.xlane.xlu0 %2121 }
 0x599   : > { %v2128_v38 = vsub.f32 %v5295_v20, %v2122_v9 }
 0x59a   : > { %v2116_v1 = vpop.xlane.xlu1 %2115 }
 0x59b   : > { %v2134_v11 = vmul.f32 1.442695, %v2128_v38  ;;  %v2126_v47 = vsub.f32 %v5299_v21, %v2116_v1 }
 0x59d   : > { %3918 = vpow2.f32 %v2134_v11  ;;  %v2130_v18 = vmul.f32 1.442695, %v2126_v47 }
 0x59e   : > { %v2125_v62 = vpop.xlane.xlu1 %2124  ;;  %v2119_v48 = vpop.xlane.xlu0 %2118 }
 0x59f   : > { %3920 = vpow2.f32 %v2130_v18  ;;  %v2129_v8 = vsub.f32 %v5303_v46, %v2125_v62  ;;  %v2127_v35 = vsub.f32 %v5305_v5, %v2119_v48 }
 0x5a1   : > { %v2136_v29 = vmul.f32 1.442695, %v2129_v8  ;;  %v2132_v37 = vmul.f32 1.442695, %v2127_v35 }
 0x5a2   : > { %v5405_v45 = vpop.permute.xlu1 %2289  ;;  %v5407_v24 = vpop.permute.xlu0 %2419 }
 0x5a3   : > { %3922 = vpow2.f32 %v2136_v29 }
 0x5a4   : > { %3924 = vpow2.f32 %v2132_v37 }
 0x5a6   : > { %v5409_v9 = vpop.permute.xlu1 %2361  ;;  %v5411_v1 = vpop.permute.xlu0 %2291 }
 0x5aa   : > { %v5413_v11 = vpop.eup %3918  ;;  %v5415_v47 = vpop.permute.xlu1 %2421 }
 0x5ab   : > { %6275 = vst [vmem:[#allocation69_spill] sm:$0xff] %v5413_v11  ;;  %6276 = vst [vmem:[#allocation5_spill] sm:$0xff] %v5415_v47  ;;  %v5417_v18 = vpop.permute.xlu0 %2363  ;;  %v2144_v48 = vsel %vm1631_vm5, %v5413_v11, 0.0 }
 0x5ac   : > { %v5421_v35 = vpop.eup %3920  ;;  %2145 = vadd.xlane.f32.xlu0 %v2144_v48 }
 0x5ad   : > { %6277 = vst [vmem:[#allocation73_spill] sm:$0xff] %v5421_v35  ;;  %v2138_v62 = vsel %vm1631_vm5, %v5421_v35, 0.0 }
 0x5ae   : > { %2139 = vadd.xlane.f32.xlu1 %v2138_v62  ;;  %v5425_v37 = vpop.permute.xlu1 %2365 }
 0x5af   : > { %v5427_v8 = vpop.permute.xlu0 %2423 }
 0x5b0   : > { %6278 = vst [vmem:[#allocation6_spill] sm:$0xff] %v5427_v8  ;;  %v5429_v29 = vpop.eup %3922 }
 0x5b1   : > { %6279 = vst [vmem:[#allocation3_spill] sm:$0xff] %v5429_v29  ;;  %v5431_v20 = vpop.eup %3924  ;;  %v2147_v21 = vsel %vm1631_vm5, %v5429_v29, 0.0  ;;  %v6283_v29 = vld [vmem:[#allocation43_spill] sm:$0xff] }
 0x5b2   : > { %6280 = vst [vmem:[#allocation2_spill] sm:$0xff] %v5431_v20  ;;  %2148 = vadd.xlane.f32.xlu1 %v2147_v21  ;;  %v5435_v46 = vpop.permute.xlu1 %2437  ;;  %v2141_v5 = vsel %vm1631_vm5, %v5431_v20, 0.0  ;;  %v2257_v21 = vmul.bf16 %v5335_v41, %v6204_v27  ;;  %v2258_v20 = vmul.bf16 %v5329_v42, %v4493_v53  ;;  %v2277_v41 = vmul.bf16 %v5355_v6, %v4509_v33 }
 0x5b3   : > { %v5439_v38 = vpop.permute.xlu0 %2367  ;;  %2142 = vadd.xlane.f32.xlu0 %v2141_v5  ;;  %v2259_v5 = vmul.bf16 %v5337_v7, %v6283_v29  ;;  %v2242_v42 = vmul.bf16 %v5184_v36, %v4501_v28  ;;  %v6285_v7 = vld [vmem:[#allocation45_spill] sm:$0xff]  ;;  %v2334_v29 = vmul.bf16 %v5353_v56, %v4539_v17  ;;  %v2278_v6 = vmul.bf16 %v5357_v63, %v6207_v31  ;;  %v6286_v63 = vld [vmem:[#allocation32_spill] sm:$0xff] }
 0x5b6   : > { %v5443_v62 = vpop.permute.xlu1 %2441 }
 0x5b7   : > { %v5441_v48 = vpop.permute.xlu0 %2439  ;;  %6281 = vst [vmem:[#allocation11_spill] sm:$0xff] %v5443_v62  ;;  %v2241_v62 = vmul.bf16 %v5198_v50, %v4497_v51 }
 0x5b9   : > { %v2261_v53 = vadd.bf16 %v2257_v21, %v2241_v62  ;;  %v2410_v21 = vmul.bf16 %v5373_v15, %v6208_v57  ;;  %v6290_v15 = vld [vmem:[#allocation27_spill] sm:$0xff] }
 0x5ba   : > { %v2165_v11 = vpop.permute.xlu1 %2164 }
 0x5bb   : > { %v5445_v35 = vpop.permute.xlu0 %2443 }
 0x5bc   : > { %6282 = vst [vmem:[#allocation68_spill] sm:$0xff] %v5445_v35  ;;  %v2260_v35 = vmul.bf16 %v5343_v13, %v6210_v12  ;;  %v2317_v13 = vmul.bf16 %v5347_v39, %v4527_v30  ;;  %v2354_v12 = vmul.bf16 %v5381_v34, %v6205_v61  ;;  %v2281_v39 = vadd.bf16 %v2277_v41, %v2261_v53  ;;  %v6292_v41 = vld [vmem:[#allocation39_spill] sm:$0xff] }
 0x5be   : > { %v2163_v27 = vpop.permute.xlu1 %2162 }
 0x5bf   : > { %v2167_v47 = vpop.permute.xlu0 %2166 }
 0x5c0   : > { %3652 = vmatprep.subr.bf16.mxu0 %v2167_v47 }
 0x5c1   : > { %3653 = vmatpush3.bf16.msra.mxu0 %v2167_v47  ;;  %v6284_v47 = vld [vmem:[#allocation28_spill] sm:$0xff] }
 0x5c2   : > { %3654 = vmatprep.subr.bf16.mxu0 %v2165_v11  ;;  %v2333_v8 = vmul.bf16 %v5351_v14, %v6284_v47  ;;  %v2244_v14 = vmul.bf16 %v5206_v58, %v6215_v19  ;;  %v2318_v47 = vmul.bf16 %v5349_v40, %v4535_v0  ;;  %v2353_v40 = vmul.bf16 %v5379_v52, %v6286_v63 }
 0x5c3   : > { %2523 = vrot.lane.b32.xlu1 %v4785_v44, %s4045_s24  ;;  %v2243_v44 = vmul.bf16 %v5192_v2, %v6285_v7 }
 0x5c4   : > { %v2264_v56 = vadd.bf16 %v2260_v35, %v2244_v14  ;;  %v2337_v62 = vadd.bf16 %v2333_v8, %v2317_v13  ;;  %v2338_v17 = vadd.bf16 %v2334_v29, %v2318_v47  ;;  %v6288_v8 = vld [vmem:[#allocation35_spill] sm:$0xff]  ;;  %v2298_v29 = vmul.bf16 %v5393_v54, %v6290_v15  ;;  %v6294_v14 = vld [vmem:[#allocation4_spill] sm:$0xff]  ;;  %v6308_v15 = vld [vmem:[#allocation62_spill] sm:$0xff] }
 0x5c5   : > { %3655 = vmatpush3.bf16.msra.mxu0 %v2165_v11  ;;  %v2262_v11 = vadd.bf16 %v2258_v20, %v2242_v42  ;;  %v2263_v33 = vadd.bf16 %v2259_v5, %v2243_v44  ;;  %v2319_v44 = vmul.bf16 %v5359_v59, %v4699_v16  ;;  %v6287_v20 = vld [vmem:[#allocation38_spill] sm:$0xff]  ;;  %v2409_v53 = vmul.bf16 %v5371_v55, %v6288_v8  ;;  %v6293_v42 = vld [vmem:[#allocation36_spill] sm:$0xff]  ;;  %v6295_v55 = vld [vmem:[#allocation31_spill] sm:$0xff] }
 0x5c6   : > { %3656 = vmatprep.subr.bf16.mxu0 %v2163_v27  ;;  %v2374_v34 = vmul.bf16 %v5417_v18, %v6287_v20  ;;  %v6289_v5 = vld [vmem:[#allocation34_spill] sm:$0xff]  ;;  %v2358_v52 = vadd.bf16 %v2354_v12, %v2338_v17  ;;  %v2430_v18 = vmul.bf16 %v5407_v24, %v6292_v41  ;;  %v2373_v13 = vmul.bf16 %v5409_v9, %v6293_v42  ;;  %v6298_v41 = vld [vmem:[#allocation51_spill] sm:$0xff] }
 0x5c7   : > { %2519 = vrot.lane.b32.xlu1 %v4830_v23, %s4045_s24  ;;  %v2282_v35 = vadd.bf16 %v2278_v6, %v2262_v11  ;;  %v6291_v59 = vld [vmem:[#allocation50_spill] sm:$0xff]  ;;  %v2393_v6 = vmul.bf16 %v5367_v25, %v6295_v55  ;;  %v2280_v54 = vmul.bf16 %v5377_v49, %v6218_v22  ;;  %v2357_v17 = vadd.bf16 %v2353_v40, %v2337_v62  ;;  %v6299_v25 = vld [vmem:[#allocation61_spill] sm:$0xff]  ;;  %v6301_v49 = vld [vmem:[#allocation60_spill] sm:$0xff] }
 0x5c8   : > { %v2335_v47 = vmul.bf16 %v5363_v10, %v6291_v59  ;;  %v6296_v11 = vld [vmem:[#allocation26_spill] sm:$0xff]  ;;  %v2429_v24 = vmul.bf16 %v5399_v60, %v6217_v3  ;;  %v2378_v12 = vadd.bf16 %v2374_v34, %v2358_v52  ;;  %v2450_v9 = vmul.bf16 %v5441_v48, %v6219_v32  ;;  %v6303_v34 = vld [vmem:[#allocation40_spill] sm:$0xff]  ;;  %v6304_v48 = vld [vmem:[#allocation7_spill] sm:$0xff] }
 0x5c9   : > { %3657 = vmatpush3.bf16.msra.mxu0 %v2163_v27  ;;  %2160 = vrot.lane.b32.xlu0 %v4851_v4, %s4022_s22  ;;  %v2394_v27 = vmul.bf16 %v5369_v26, %v6289_v5  ;;  %v2297_v10 = vmul.bf16 %v5391_v43, %v6296_v11  ;;  %v6300_v20 = vld [vmem:[#allocation46_spill] sm:$0xff]  ;;  %v2302_v23 = vadd.bf16 %v2298_v29, %v2282_v35  ;;  %v6305_v32 = vld [vmem:[#allocation48_spill] sm:$0xff]  ;;  %v6306_v3 = vld [vmem:[#allocation47_spill] sm:$0xff]  ;;  %s6331_s22 = smov 76  }
 0x5ca   : > { %v2279_v42 = vmul.bf16 %v6301_v49, %v6300_v20  ;;  %v2377_v62 = vadd.bf16 %v2373_v13, %v2357_v17  ;;  %v6302_v40 = vld [vmem:[#allocation14_spill] sm:$0xff]  ;;  %v2449_v52 = vmul.bf16 %v5435_v46, %v6303_v34  ;;  %v6309_v29 = vld [vmem:[#allocation49_spill] sm:$0xff] }
 0x5cb   : > { %2457 = vrot.lane.b32.xlu1 %v6294_v14, %s4045_s24  ;;  %v2414_v26 = vadd.bf16 %v2410_v21, %v2394_v27  ;;  %v6297_v14 = vld [vmem:[#allocation54_spill] sm:$0xff]  ;;  %v2336_v21 = vmul.bf16 %v6299_v25, %v6298_v41  ;;  %v2413_v27 = vadd.bf16 %v2409_v53, %v2393_v6  ;;  %v2300_v60 = vmul.bf16 %v5411_v1, %v6302_v40  ;;  %v6307_v6 = vld [vmem:[#allocation15_spill] sm:$0xff] }
 0x5cc   : > { %v2284_v25 = vadd.bf16 %v2280_v54, %v2264_v56  ;;  %v2301_v53 = vadd.bf16 %v2297_v10, %v2281_v39  ;;  %v2356_v49 = vmul.bf16 %v6308_v15, %v6307_v6  ;;  %v3512_v13 = vcombine.low %v2377_v62, %v2378_v12  ;;  %v6310_v17 = vld [vmem:[#allocation10_spill] sm:$0xff]  ;;  %v6313_v56 = vld [vmem:[#allocation63_spill] sm:$0xff]  ;;  %v6315_v12 = vld [vmem:[#allocation9_spill] sm:$0xff] }
 0x5cd   : > { %2521 = vrot.lane.b32.xlu0 %v6297_v14, %s4045_s24  ;;  %v2434_v43 = vadd.bf16 %v2430_v18, %v2414_v26  ;;  %v2320_v14 = vmul.bf16 %v6306_v3, %v6305_v32  ;;  %v2433_v35 = vadd.bf16 %v2429_v24, %v2413_v27  ;;  %v2299_v18 = vmul.bf16 %v5405_v45, %v6309_v29  ;;  %v6312_v3 = vld [vmem:[#allocation12_spill] sm:$0xff]  ;;  %v6314_v24 = vld [vmem:[#allocation18_spill] sm:$0xff] }
 0x5ce   : > { %v2283_v26 = vadd.bf16 %v2279_v42, %v2263_v33  ;;  %v2355_v39 = vmul.bf16 %v6313_v56, %v6312_v3  ;;  %v3510_v54 = vcombine.low %v2301_v53, %v2302_v23  ;;  %v2304_v10 = vadd.bf16 %v2300_v60, %v2284_v25  ;;  %v6318_v33 = vld [vmem:[#allocation66_spill] sm:$0xff]  ;;  %v6320_v23 = vld [vmem:[#allocation17_spill] sm:$0xff]  ;;  %v6323_v53 = vld [vmem:[#allocation67_spill] sm:$0xff] }
 0x5cf   : > { %2459 = vrot.lane.b32.xlu1 %v6304_v48, %s4045_s24  ;;  %v2454_v1 = vadd.bf16 %v2450_v9, %v2434_v43  ;;  %v2340_v46 = vadd.bf16 %v2336_v21, %v2320_v14  ;;  %v6311_v48 = vld [vmem:[#allocation64_spill] sm:$0xff]  ;;  %v2453_v15 = vadd.bf16 %v2449_v52, %v2433_v35  ;;  %v2376_v27 = vmul.bf16 %v5439_v38, %v6314_v24  ;;  %v6316_v9 = vld [vmem:[#allocation65_spill] sm:$0xff]  ;;  %v6321_v60 = vld [vmem:[#allocation6_spill] sm:$0xff] }
 0x5d0   : > { %v2412_v34 = vmul.bf16 %v6311_v48, %v6310_v17  ;;  %v2339_v45 = vadd.bf16 %v2335_v47, %v2319_v44  ;;  %v2411_v43 = vmul.bf16 %v6316_v9, %v6315_v12  ;;  %v6317_v14 = vld [vmem:[#allocation13_spill] sm:$0xff]  ;;  %v2303_v62 = vadd.bf16 %v2299_v18, %v2283_v26  ;;  %v6319_v48 = vld [vmem:[#allocation19_spill] sm:$0xff]  ;;  %v6322_v38 = vld [vmem:[#allocation8_spill] sm:$0xff] }
 0x5d1   : > { %2517 = vrot.lane.b32.xlu0 %v4851_v4, %s4045_s24  ;;  %v2396_v42 = vmul.bf16 %v6318_v33, %v6317_v14  ;;  %v2360_v21 = vadd.bf16 %v2356_v49, %v2340_v46  ;;  %v2375_v56 = vmul.bf16 %v5425_v37, %v6319_v48  ;;  %v2432_v52 = vmul.bf16 %v6321_v60, %v6320_v23  ;;  %v6324_v9 = vld [vmem:[#allocation16_spill] sm:$0xff]  ;;  %v6325_v4 = vld [vmem:[#allocation5_spill] sm:$0xff]  ;;  %s6333_s24 = smov 60  }
 0x5d2   : > { %v3514_v25 = vcombine.low %v2453_v15, %v2454_v1  ;;  %v2395_v44 = vmul.bf16 %v6323_v53, %v6322_v38  ;;  %v2359_v35 = vadd.bf16 %v2355_v39, %v2339_v45  ;;  %v2431_v33 = vmul.bf16 %v6325_v4, %v6324_v9  ;;  %v6326_v18 = vld [vmem:[#allocation21_spill] sm:$0xff]  ;;  %v6327_v46 = vld [vmem:[#allocation68_spill] sm:$0xff] }
 0x5d3   : > { %2485 = vrot.lane.b32.xlu1 %v3512_v13, %s4032_s26  ;;  %v2416_v47 = vadd.bf16 %v2412_v34, %v2396_v42  ;;  %v3511_v13 = vcombine.low %v2303_v62, %v2304_v10  ;;  %v2380_v49 = vadd.bf16 %v2376_v27, %v2360_v21  ;;  %v2452_v26 = vmul.bf16 %v6327_v46, %v6326_v18  ;;  %v6328_v15 = vld [vmem:[#allocation20_spill] sm:$0xff]  ;;  %v6338_v46 = vld [vmem:[#allocation69_spill] sm:$0xff] }
 0x5d4   : > { %v2415_v37 = vadd.bf16 %v2411_v43, %v2395_v44  ;;  %v2379_v60 = vadd.bf16 %v2375_v56, %v2359_v35  ;;  %v6337_v56 = vld [vmem:[#allocation53_spill] sm:$0xff] }
 0x5d5   : > { %2471 = vrot.lane.b32.xlu0 %v3510_v54, %s4030_s11  ;;  %v2436_v1 = vadd.bf16 %v2432_v52, %v2416_v47  ;;  %v6329_v54 = vld [vmem:[#allocation11_spill] sm:$0xff] }
 0x5d6   : > { %v2451_v23 = vmul.bf16 %v6329_v54, %v6328_v15  ;;  %v2435_v34 = vadd.bf16 %v2431_v33, %v2415_v37  ;;  %v3513_v39 = vcombine.low %v2379_v60, %v2380_v49  ;;  %v6339_v37 = vld [vmem:[#allocation3_spill] sm:$0xff]  ;;  %v6340_v54 = vld [vmem:[#allocation73_spill] sm:$0xff] }
 0x5d7   : > { %2499 = vrot.lane.b32.xlu1 %v3514_v25, %s4033_s27  ;;  %v2456_v10 = vadd.bf16 %v2452_v26, %v2436_v1 }
 0x5d8   : > { %v2455_v4 = vadd.bf16 %v2451_v23, %v2435_v34 }
 0x5d9   : > { %2473 = vrot.lane.b32.xlu0 %v3511_v13, %s4030_s11 }
 0x5da   : > { %v3515_v27 = vcombine.low %v2455_v4, %v2456_v10 }
 0x5db   : > { %2709 = vrot.lane.b32.xlu1 %v5184_v36, %s6330_s23 }
 0x5dd   : > { %2487 = vrot.lane.b32.xlu0 %v3513_v39, %s4032_s26  ;;  %v6341_v39 = vld [vmem:[#allocation2_spill] sm:$0xff] }
 0x5df   : > { %2723 = vrot.lane.b32.xlu1 %v5198_v50, %s6331_s22 }
 0x5e1   : > { %2501 = vrot.lane.b32.xlu0 %v3515_v27, %s4033_s27 }
 0x5e3   : > { %2711 = vrot.lane.b32.xlu1 %v5192_v2, %s6330_s23 }
 0x5e5   : > { %2707 = vrot.lane.b32.xlu0 %v5198_v50, %s6330_s23 }
 0x5e7   : > { %2727 = vrot.lane.b32.xlu1 %v5192_v2, %s6331_s22 }
 0x5e9   : > { %2725 = vrot.lane.b32.xlu0 %v5184_v36, %s6331_s22 }
 0x5eb   : > { %2783 = vrot.lane.b32.xlu1 %v5198_v50, %s6332_s29 }
 0x5ed   : > { %2713 = vrot.lane.b32.xlu0 %v5206_v58, %s6330_s23 }
 0x5ef   : > { %2799 = vrot.lane.b32.xlu1 %v5198_v50, %s6333_s24 }
 0x5f1   : > { %2729 = vrot.lane.b32.xlu0 %v5206_v58, %s6331_s22 }
 0x5f3   : > { %2743 = vrot.lane.b32.xlu1 %v5198_v50, %s6334_s20 }
 0x5f5   : > { %2785 = vrot.lane.b32.xlu0 %v5184_v36, %s6332_s29 }
 0x5f7   : > { %2787 = vrot.lane.b32.xlu1 %v5192_v2, %s6332_s29 }
 0x5f9   : > { %2801 = vrot.lane.b32.xlu0 %v5184_v36, %s6333_s24 }
 0x5fb   : > { %2803 = vrot.lane.b32.xlu1 %v5192_v2, %s6333_s24 }
 0x5fd   : > { %2745 = vrot.lane.b32.xlu0 %v5184_v36, %s6334_s20 }
 0x5ff   : > { %2859 = vrot.lane.b32.xlu1 %v5198_v50, %s4034_s28 }
 0x601   : > { %2789 = vrot.lane.b32.xlu0 %v5206_v58, %s6332_s29 }
 0x603   : > { %2875 = vrot.lane.b32.xlu1 %v5198_v50, %s4035_s12 }
 0x605   : > { %2805 = vrot.lane.b32.xlu0 %v5206_v58, %s6333_s24 }
 0x607   : > { %2747 = vrot.lane.b32.xlu1 %v5192_v2, %s6334_s20 }
 0x609   : > { %2861 = vrot.lane.b32.xlu0 %v5184_v36, %s4034_s28 }
 0x60b   : > { %2819 = vrot.lane.b32.xlu1 %v5198_v50, %s6335_s25 }
 0x60d   : > { %2877 = vrot.lane.b32.xlu0 %v5184_v36, %s4035_s12 }
 0x60f   : > { %2863 = vrot.lane.b32.xlu1 %v5192_v2, %s4034_s28 }
 0x611   : > { %2749 = vrot.lane.b32.xlu0 %v5206_v58, %s6334_s20 }
 0x613   : > { %2879 = vrot.lane.b32.xlu1 %v5192_v2, %s4035_s12 }
 0x615   : > { %2821 = vrot.lane.b32.xlu0 %v5184_v36, %s6335_s25 }
 0x617   : > { %2763 = vrot.lane.b32.xlu1 %v5198_v50, %s6336_s14 }
 0x619   : > { %2865 = vrot.lane.b32.xlu0 %v5206_v58, %s4034_s28  ;;  %s6353_s28 = smov 52  }
 0x61b   : > { %2823 = vrot.lane.b32.xlu1 %v5192_v2, %s6335_s25 }
 0x61d   : > { %2881 = vrot.lane.b32.xlu0 %v5206_v58, %s4035_s12  ;;  %s6354_s12 = smov 36  }
 0x61f   : > { %2895 = vrot.lane.b32.xlu1 %v5198_v50, %s4038_s13 }
 0x621   : > { %2765 = vrot.lane.b32.xlu0 %v5184_v36, %s6336_s14 }
 0x625   : > { %2825 = vrot.lane.b32.xlu0 %v5206_v58, %s6335_s25 }
 0x635   : > { %v2146_v45 = vpop.xlane.xlu0 %2145 }
 0x636   : > { %3926 = vrcp.f32 %v2146_v45 }
 0x637   : > { %v2140_v43 = vpop.xlane.xlu1 %2139 }
 0x638   : > { %3928 = vrcp.f32 %v2140_v43 }
 0x63b   : > { %v2149_v42 = vpop.xlane.xlu1 %2148 }
 0x63c   : > { %3930 = vrcp.f32 %v2149_v42  ;;  %v2143_v21 = vpop.xlane.xlu0 %2142 }
 0x63d   : > { %3932 = vrcp.f32 %v2143_v21 }
 0x63f   : > { %v2524_v62 = vpop.permute.xlu1 %2523 }
 0x640   : > { %v2532_v23 = vsel %vm1512_vm1, %v2524_v62, %v6337_v56  ;;  %v2161_v52 = vpop.permute.xlu0 %2160  ;;  %v6342_v62 = vld [vmem:[#allocation55_spill] sm:$0xff] }
 0x641   : > { %3658 = vmatprep.subr.bf16.mxu0 %v2161_v52  ;;  %v2543_v42 = vsel %vm1569_vm2, %v2532_v23, 0 }
 0x642   : > { %3659 = vmatpush3.bf16.msra.mxu0 %v2161_v52 }
 0x643   : > { %3728 = vmatprep.subr.msk.bf16.mxu0 %vm1569_vm2, %v2532_v23  ;;  %v2520_v25 = vpop.permute.xlu1 %2519  ;;  %v3927_v44 = vpop.eup %3926 }
 0x644   : > { %v2522_v53 = vpop.permute.xlu0 %2521  ;;  %v2156_v26 = vmul.f32 %v3927_v44, %v6338_v46 }
 0x645   : > { %v3929_v35 = vpop.eup %3928  ;;  %v2530_v52 = vsel %vm1512_vm1, %v2522_v53, %v6342_v62 }
 0x646   : > { %v2154_v34 = vmul.f32 %v3929_v35, %v6340_v54  ;;  %v6344_v54 = vld [vmem:[#allocation22_spill] sm:$0xff] }
 0x647   : > { %v2458_v47 = vpop.permute.xlu1 %2457 }
 0x648   : > { %v2518_v13 = vpop.permute.xlu0 %2517 }
 0x649   : > { %v3931_v33 = vpop.eup %3930 }
 0x64a   : > { %v3933_v49 = vpop.eup %3932  ;;  %v2157_v60 = vmul.f32 %v3931_v33, %v6339_v37 }
 0x64b   : > { %v2460_v1 = vpop.permute.xlu1 %2459  ;;  %v2155_v10 = vmul.f32 %v3933_v49, %v6341_v39 }
 0x64c   : > { %v2472_v4 = vpop.permute.xlu0 %2471  ;;  %v2159_v27 = vpack.c.bf16 %v2157_v60, %v2156_v26  ;;  %v2541_v26 = vsel %vm1569_vm2, %v2530_v52, 0  ;;  %v6343_v60 = vld [vmem:[#allocation57_spill] sm:$0xff] }
 0x64d   : > { %v2158_v45 = vpack.c.bf16 %v2155_v10, %v2154_v34  ;;  %v2505_v44 = vsel %vm1512_vm1, %v2458_v47, %v2472_v4  ;;  %v2528_v53 = vsel %vm1512_vm1, %v2520_v25, %v6343_v60  ;;  %v6346_v25 = vld [vmem:[#allocation23_spill] sm:$0xff] }
 0x64f   : > { %3660 = vmatprep.mubr.msk.bf16.mxu0 %vm1631_vm5, %v2158_v45  ;;  %v2486_v43 = vpop.permute.xlu1 %2485  ;;  %v2539_v45 = vsel %vm1569_vm2, %v2528_v53, 0 }
 0x650   : > { %3661 = vmatmul.mubr.msk.bf16.vlgmr.msra.gmra.mxu0 %vm1631_vm5, %v2159_v27  ;;  %v2474_v21 = vpop.permute.xlu0 %2473  ;;  %v2510_v35 = vsel %vm1519_vm3, %v2505_v44, %v2486_v43 }
 0x651   : > { %3665 = vmatpush3.bf16.xpose.msra.mxu0 %v2543_v42  ;;  %v6345_v42 = vld [vmem:[#allocation59_spill] sm:$0xff] }
 0x652   : > { %3729 = vmatprep.subr.msk.bf16.mxu0 %vm1569_vm2, %v2530_v52  ;;  %v2526_v52 = vsel %vm1512_vm1, %v2518_v13, %v6345_v42 }
 0x653   : > { %v2500_v33 = vpop.permute.xlu1 %2499 }
 0x654   : > { %v2514_v49 = vsel %vm1524_vm4, %v2510_v35, %v2500_v33  ;;  %v2488_v46 = vpop.permute.xlu0 %2487 }
 0x655   : > { %3672 = vmatprep.mubr.msk.bf16.mxu0 %vm1569_vm2, %v2514_v49 }
 0x657   : > { %v2710_v23 = vpop.permute.xlu1 %2709 }
 0x658   : > { %v2502_v37 = vpop.permute.xlu0 %2501  ;;  %v2720_v44 = vmul.bf16 %v2710_v23, %v4501_v28  ;;  %v6348_v28 = vld [vmem:[#allocation42_spill] sm:$0xff] }
 0x659   : > { %3667 = vmatpush3.bf16.xpose.msra.mxu0 %v2541_v26 }
 0x65a   : > { %3730 = vmatprep.subr.msk.bf16.mxu0 %vm1569_vm2, %v2528_v53 }
 0x65b   : > { %v2724_v47 = vpop.permute.xlu1 %2723 }
 0x65c   : > { %v2735_v34 = vmul.bf16 %v2724_v47, %v6344_v54  ;;  %v2708_v39 = vpop.permute.xlu0 %2707 }
 0x65d   : > { %v2719_v10 = vmul.bf16 %v2708_v39, %v4497_v51  ;;  %v6347_v51 = vld [vmem:[#allocation43_spill] sm:$0xff]  ;;  %v2537_v39 = vsel %vm1569_vm2, %v2526_v52, 0 }
 0x65f   : > { %v2739_v4 = vadd.bf16 %v2735_v34, %v2719_v10  ;;  %v2712_v27 = vpop.permute.xlu1 %2711 }
 0x660   : > { %v2726_v43 = vpop.permute.xlu0 %2725  ;;  %v2721_v26 = vmul.bf16 %v2712_v27, %v6285_v7  ;;  %v2508_v27 = vsel %vm1512_vm1, %v2460_v1, %v2474_v21 }
 0x661   : > { %3669 = vmatpush3.bf16.xpose.msra.mxu0 %v2539_v45  ;;  %v2736_v35 = vmul.bf16 %v2726_v43, %v6346_v25  ;;  %v6349_v25 = vld [vmem:[#allocation28_spill] sm:$0xff] }
 0x662   : > { %3731 = vmatprep.subr.msk.bf16.mxu0 %vm1569_vm2, %v2526_v52 }
 0x663   : > { %v2740_v33 = vadd.bf16 %v2736_v35, %v2720_v44  ;;  %v2728_v49 = vpop.permute.xlu1 %2727 }
 0x664   : > { %v2737_v47 = vmul.bf16 %v2728_v49, %v6347_v51  ;;  %v2714_v54 = vpop.permute.xlu0 %2713  ;;  %v2512_v49 = vsel %vm1519_vm3, %v2508_v27, %v2488_v46 }
 0x665   : > { %v2722_v13 = vmul.bf16 %v2714_v54, %v6215_v19  ;;  %v2516_v52 = vsel %vm1524_vm4, %v2512_v49, %v2502_v37  ;;  %v6350_v19 = vld [vmem:[#allocation25_spill] sm:$0xff] }
 0x666   : > { %v2741_v34 = vadd.bf16 %v2737_v47, %v2721_v26 }
 0x667   : > { %v2784_v53 = vpop.permute.xlu1 %2783 }
 0x668   : > { %v2730_v10 = vpop.permute.xlu0 %2729  ;;  %v2795_v44 = vmul.bf16 %v2784_v53, %v4527_v30 }
 0x669   : > { %3671 = vmatpush3.bf16.xpose.msra.mxu0 %v2537_v39  ;;  %v2738_v23 = vmul.bf16 %v2730_v10, %v6348_v28  ;;  %v6351_v10 = vld [vmem:[#allocation29_spill] sm:$0xff] }
 0x66b   : > { %v2742_v45 = vadd.bf16 %v2738_v23, %v2722_v13  ;;  %v2800_v43 = vpop.permute.xlu1 %2799 }
 0x66c   : > { %v2811_v35 = vmul.bf16 %v2800_v43, %v6349_v25  ;;  %v2786_v7 = vpop.permute.xlu0 %2785 }
 0x66d   : > { %v2796_v39 = vmul.bf16 %v2786_v7, %v4535_v0 }
 0x66e   : > { %v2815_v26 = vadd.bf16 %v2811_v35, %v2795_v44 }
 0x66f   : > { %v2744_v51 = vpop.permute.xlu1 %2743 }
 0x670   : > { %3673 = vmatmul.mubr.msk.bf16.vlgmr.msra.gmra.mxu0 %vm1569_vm2, %v2516_v52  ;;  %v2755_v47 = vmul.bf16 %v2744_v51, %v6350_v19  ;;  %v2802_v54 = vpop.permute.xlu0 %2801 }
 0x671   : > { %v2812_v30 = vmul.bf16 %v2802_v54, %v6351_v10 }
 0x672   : > { %v2759_v53 = vadd.bf16 %v2755_v47, %v2739_v4 }
 0x673   : > { %v2816_v13 = vadd.bf16 %v2812_v30, %v2796_v39  ;;  %v2788_v28 = vpop.permute.xlu1 %2787 }
 0x674   : > { %v2746_v23 = vpop.permute.xlu0 %2745  ;;  %v2797_v37 = vmul.bf16 %v2788_v28, %v4699_v16 }
 0x675   : > { %v2756_v1 = vmul.bf16 %v2746_v23, %v6207_v31 }
 0x677   : > { %v2760_v21 = vadd.bf16 %v2756_v1, %v2740_v33  ;;  %v2804_v46 = vpop.permute.xlu1 %2803 }
 0x678   : > { %v2813_v43 = vmul.bf16 %v2804_v46, %v6291_v59  ;;  %v2790_v44 = vpop.permute.xlu0 %2789 }
 0x679   : > { %v2798_v0 = vmul.bf16 %v2790_v44, %v6305_v32 }
 0x67a   : > { %v2817_v25 = vadd.bf16 %v2813_v43, %v2797_v37 }
 0x67b   : > { %v2860_v35 = vpop.permute.xlu1 %2859 }
 0x67c   : > { %v2806_v27 = vpop.permute.xlu0 %2805  ;;  %v2871_v52 = vmul.bf16 %v2860_v35, %v6295_v55 }
 0x67d   : > { %v2814_v7 = vmul.bf16 %v2806_v27, %v6298_v41 }
 0x67f   : > { %v2818_v4 = vadd.bf16 %v2814_v7, %v2798_v0  ;;  %v2876_v49 = vpop.permute.xlu1 %2875 }
 0x680   : > { %v2887_v31 = vmul.bf16 %v2876_v49, %v6288_v8  ;;  %v2862_v33 = vpop.permute.xlu0 %2861 }
 0x681   : > { %v2872_v47 = vmul.bf16 %v2862_v33, %v6289_v5 }
 0x682   : > { %v5683_v51 = vadd.bf16 %v2887_v31, %v2871_v52 }
 0x683   : > { %v2748_v16 = vpop.permute.xlu1 %2747 }
 0x684   : > { %v2757_v59 = vmul.bf16 %v2748_v16, %v6300_v20  ;;  %v2878_v19 = vpop.permute.xlu0 %2877 }
 0x685   : > { %v2888_v54 = vmul.bf16 %v2878_v19, %v6208_v57 }
 0x686   : > { %v5688_v32 = vadd.bf16 %v2757_v59, %v2741_v34 }
 0x687   : > { %v5690_v41 = vadd.bf16 %v2888_v54, %v2872_v47  ;;  %v2820_v39 = vpop.permute.xlu1 %2819 }
 0x688   : > { %v2831_v55 = vmul.bf16 %v2820_v39, %v6286_v63  ;;  %v2750_v10 = vpop.permute.xlu0 %2749 }
 0x689   : > { %v2758_v8 = vmul.bf16 %v2750_v10, %v6218_v22  ;;  %v6356_v10 = vld [vmem:[#allocation56_spill] sm:$0xff] }
 0x68a   : > { %v5694_v30 = vadd.bf16 %v2831_v55, %v2815_v26  ;;  %v6355_v55 = vld [vmem:[#allocation54_spill] sm:$0xff] }
 0x68b   : > { %v5696_v28 = vadd.bf16 %v2758_v8, %v2742_v45  ;;  %v2864_v20 = vpop.permute.xlu1 %2863 }
 0x68c   : > { %v2822_v23 = vpop.permute.xlu0 %2821  ;;  %v2873_v34 = vmul.bf16 %v2864_v20, %v6322_v38 }
 0x68d   : > { %v2832_v5 = vmul.bf16 %v2822_v23, %v6205_v61 }
 0x68f   : > { %v5699_v1 = vadd.bf16 %v2832_v5, %v2816_v13  ;;  %v2880_v57 = vpop.permute.xlu1 %2879 }
 0x690   : > { %v2889_v46 = vmul.bf16 %v2880_v57, %v6315_v12  ;;  %v2866_v37 = vpop.permute.xlu0 %2865  ;;  %v6352_v12 = vld [vmem:[#allocation27_spill] sm:$0xff] }
 0x691   : > { %v2874_v45 = vmul.bf16 %v2866_v37, %v6317_v14 }
 0x692   : > { %v5703_v63 = vadd.bf16 %v2889_v46, %v2873_v34 }
 0x693   : > { %v2764_v43 = vpop.permute.xlu1 %2763 }
 0x694   : > { %v2775_v22 = vmul.bf16 %v2764_v43, %v6296_v11  ;;  %v2882_v26 = vpop.permute.xlu0 %2881 }
 0x695   : > { %v2890_v44 = vmul.bf16 %v2882_v26, %v6310_v17 }
 0x696   : > { %v5708_v35 = vadd.bf16 %v2775_v22, %v2759_v53 }
 0x697   : > { %v5710_v61 = vadd.bf16 %v2890_v44, %v2874_v45  ;;  %v2824_v13 = vpop.permute.xlu1 %2823 }
 0x698   : > { %v2833_v38 = vmul.bf16 %v2824_v13, %v6312_v3  ;;  %v2766_v27 = vpop.permute.xlu0 %2765 }
 0x699   : > { %v2776_v0 = vmul.bf16 %v2766_v27, %v6352_v12 }
 0x69a   : > { %v5714_v7 = vadd.bf16 %v2833_v38, %v2817_v25 }
 0x69b   : > { %v5716_v49 = vadd.bf16 %v2776_v0, %v2760_v21  ;;  %v2896_v8 = vpop.permute.xlu1 %2895  ;;  %v6358_v0 = vld [vmem:[#allocation36_spill] sm:$0xff] }
 0x69c   : > { %v2826_v11 = vpop.permute.xlu0 %2825 }
 0x69d   : > { %v3520_v14 = vcombine.low %v5708_v35, %v5716_v49  ;;  %v2834_v17 = vmul.bf16 %v2826_v11, %v6307_v6 }
 0x69f   : > { %v5721_v53 = vadd.bf16 %v2834_v17, %v2818_v4 }
 0x710   : > { %v5723_v52 = vpop.f32.mrf.mxu0 }
 0x712   : > { %v5725_v31 = vpop.f32.mrf.mxu0 }
 0x714   : > { %v5727_v3 = vpop.f32.mrf.mxu0 }
 0x715   : > { %v3857_v25 = vpack.i.bf16 %v5727_v3, %v5723_v52 }
 0x716   : > { %v5731_v33 = vpop.f32.mrf.mxu0 }
 0x717   : > { %v3852_v21 = vpack.i.bf16 %v5731_v33, %v5725_v31 }
 0x730   : > { %v3674_v16 = vpop.f32.mrf.mxu0 }
 0x731   : > { %v2600_v59 = vsel %vm1631_vm5, %v3674_v16, -inf }
 0x732   : > { %2601 = vmax.xlane.f32.xlu0 %v2600_v59  ;;  %v2579_v6 = vpop.f32.mrf.mxu0 }
 0x733   : > { %v2594_v4 = vsel %vm1631_vm5, %v2579_v6, -inf }
 0x734   : > { %2595 = vmax.xlane.f32.xlu1 %v2594_v4  ;;  %v3675_v19 = vpop.f32.mrf.mxu0 }
 0x735   : > { %v2603_v54 = vsel %vm1631_vm5, %v3675_v19, -inf }
 0x736   : > { %v2582_v47 = vpop.f32.mrf.mxu0 }
 0x737   : > { %v2597_v39 = vsel %vm1631_vm5, %v2582_v47, -inf }
 0x738   : > { %2604 = vmax.xlane.f32.xlu1 %v2603_v54  ;;  %2598 = vmax.xlane.f32.xlu0 %v2597_v39 }
 0x749   : > { %2767 = vrot.lane.b32.xlu1 %v5192_v2, %s6336_s14 }
 0x74d   : > { %2839 = vrot.lane.b32.xlu1 %v5198_v50, %s6353_s28 }
 0x74e   : > { %2897 = vrot.lane.b32.xlu0 %v5184_v36, %s4038_s13 }
 0x751   : > { %2899 = vrot.lane.b32.xlu1 %v5192_v2, %s4038_s13 }
 0x752   : > { %2769 = vrot.lane.b32.xlu0 %v5206_v58, %s6336_s14 }
 0x755   : > { %2843 = vrot.lane.b32.xlu1 %v5192_v2, %s6353_s28 }
 0x756   : > { %2841 = vrot.lane.b32.xlu0 %v5184_v36, %s6353_s28 }
 0x759   : > { %2915 = vrot.lane.b32.xlu1 %v5198_v50, %s6354_s12  ;;  %v6357_v50 = vld [vmem:[#allocation52_spill] sm:$0xff] }
 0x75a   : > { %2901 = vrot.lane.b32.xlu0 %v5206_v58, %s4038_s13 }
 0x75d   : > { %2919 = vrot.lane.b32.xlu1 %v5192_v2, %s6354_s12 }
 0x75e   : > { %2845 = vrot.lane.b32.xlu0 %v5206_v58, %s6353_s28 }
 0x761   : > { %2644 = vrot.lane.b32.xlu1 %v6355_v55, %s6330_s23 }
 0x762   : > { %2917 = vrot.lane.b32.xlu0 %v5184_v36, %s6354_s12 }
 0x765   : > { %2642 = vrot.lane.b32.xlu1 %v6356_v10, %s6330_s23 }
 0x766   : > { %2921 = vrot.lane.b32.xlu0 %v5206_v58, %s6354_s12 }
 0x76a   : > { %2646 = vrot.lane.b32.xlu0 %v6357_v50, %s6330_s23 }
 0x7bb   : > { %v2602_v2 = vpop.xlane.xlu0 %2601 }
 0x7bc   : > { %v2608_v20 = vsub.f32 %v3674_v16, %v2602_v2 }
 0x7bd   : > { %v2596_v23 = vpop.xlane.xlu1 %2595 }
 0x7be   : > { %v2614_v5 = vmul.f32 1.442695, %v2608_v20  ;;  %v2606_v57 = vsub.f32 %v2579_v6, %v2596_v23 }
 0x7c0   : > { %3934 = vpow2.f32 %v2614_v5  ;;  %v2610_v34 = vmul.f32 1.442695, %v2606_v57 }
 0x7c1   : > { %v2605_v46 = vpop.xlane.xlu1 %2604  ;;  %v2599_v37 = vpop.xlane.xlu0 %2598 }
 0x7c2   : > { %3936 = vpow2.f32 %v2610_v34  ;;  %v2609_v36 = vsub.f32 %v3675_v19, %v2605_v46  ;;  %v2607_v43 = vsub.f32 %v2582_v47, %v2599_v37  ;;  %v6360_v46 = vld [vmem:[#allocation37_spill] sm:$0xff]  ;;  %v6361_v37 = vld [vmem:[#allocation39_spill] sm:$0xff] }
 0x7c4   : > { %v2616_v22 = vmul.f32 1.442695, %v2609_v36  ;;  %v2612_v26 = vmul.f32 1.442695, %v2607_v43 }
 0x7c5   : > { %v2768_v45 = vpop.permute.xlu1 %2767  ;;  %v2898_v58 = vpop.permute.xlu0 %2897 }
 0x7c6   : > { %3938 = vpow2.f32 %v2616_v22  ;;  %v2777_v44 = vmul.bf16 %v2768_v45, %v6309_v29  ;;  %v6359_v29 = vld [vmem:[#allocation38_spill] sm:$0xff] }
 0x7c7   : > { %3940 = vpow2.f32 %v2612_v26 }
 0x7c8   : > { %v5774_v12 = vadd.bf16 %v2777_v44, %v5688_v32  ;;  %v6362_v44 = vld [vmem:[#allocation40_spill] sm:$0xff] }
 0x7c9   : > { %v2840_v13 = vpop.permute.xlu1 %2839  ;;  %v2770_v38 = vpop.permute.xlu0 %2769 }
 0x7ca   : > { %v2778_v27 = vmul.bf16 %v2770_v38, %v6302_v40  ;;  %v2851_v11 = vmul.bf16 %v2840_v13, %v6358_v0 }
 0x7cc   : > { %v5778_v17 = vadd.bf16 %v2778_v27, %v5696_v28  ;;  %v2855_v32 = vadd.bf16 %v2851_v11, %v5694_v30  ;;  %v2907_v30 = vmul.bf16 %v2896_v8, %v6360_v46  ;;  %v6363_v11 = vld [vmem:[#allocation17_spill] sm:$0xff] }
 0x7cd   : > { %v5780_v16 = vpop.eup %3934  ;;  %v2900_v59 = vpop.permute.xlu1 %2899 }
 0x7ce   : > { %v2842_v6 = vpop.permute.xlu0 %2841  ;;  %v3521_v4 = vcombine.low %v5774_v12, %v5778_v17  ;;  %v2624_v40 = vsel %vm1631_vm5, %v5780_v16, 0.0  ;;  %v2911_v38 = vadd.bf16 %v2907_v30, %v5683_v51  ;;  %v2909_v0 = vmul.bf16 %v2900_v59, %v6324_v9 }
 0x7cf   : > { %v2852_v19 = vmul.bf16 %v2842_v6, %v6359_v29  ;;  %v5787_v47 = vpop.eup %3936  ;;  %2625 = vadd.xlane.f32.xlu0 %v2624_v40 }
 0x7d0   : > { %v2618_v54 = vsel %vm1631_vm5, %v5787_v47, 0.0 }
 0x7d1   : > { %v2856_v28 = vadd.bf16 %v2852_v19, %v5699_v1  ;;  %2619 = vadd.xlane.f32.xlu1 %v2618_v54  ;;  %v2844_v39 = vpop.permute.xlu1 %2843  ;;  %v2908_v1 = vmul.bf16 %v2898_v58, %v6361_v37  ;;  %v6364_v19 = vld [vmem:[#allocation41_spill] sm:$0xff] }
 0x7d2   : > { %v2902_v2 = vpop.permute.xlu0 %2901  ;;  %v2853_v57 = vmul.bf16 %v2844_v39, %v6319_v48 }
 0x7d3   : > { %v3522_v20 = vcombine.low %v2855_v32, %v2856_v28  ;;  %v5793_v23 = vpop.eup %3938  ;;  %v2912_v8 = vadd.bf16 %v2908_v1, %v5690_v41  ;;  %v2910_v6 = vmul.bf16 %v2902_v2, %v6363_v11 }
 0x7d4   : > { %v5795_v5 = vpop.eup %3940  ;;  %v2627_v34 = vsel %vm1631_vm5, %v5793_v23, 0.0  ;;  %v2857_v45 = vadd.bf16 %v2853_v57, %v5714_v7 }
 0x7d5   : > { %2628 = vadd.xlane.f32.xlu1 %v2627_v34  ;;  %v2916_v36 = vpop.permute.xlu1 %2915  ;;  %v2621_v43 = vsel %vm1631_vm5, %v5795_v5, 0.0  ;;  %v2914_v51 = vadd.bf16 %v2910_v6, %v5710_v61  ;;  %v6367_v61 = vld [vmem:[#allocation7_spill] sm:$0xff] }
 0x7d6   : > { %v2846_v22 = vpop.permute.xlu0 %2845  ;;  %2622 = vadd.xlane.f32.xlu0 %v2621_v43  ;;  %v2927_v48 = vmul.bf16 %v2916_v36, %v6362_v44 }
 0x7d7   : > { %v2854_v26 = vmul.bf16 %v2846_v22, %v6314_v24 }
 0x7d8   : > { %v2931_v24 = vadd.bf16 %v2927_v48, %v2911_v38 }
 0x7d9   : > { %v2858_v13 = vadd.bf16 %v2854_v26, %v5721_v53  ;;  %v2920_v58 = vpop.permute.xlu1 %2919  ;;  %v2913_v53 = vadd.bf16 %v2909_v0, %v5703_v63  ;;  %v6366_v63 = vld [vmem:[#allocation4_spill] sm:$0xff] }
 0x7da   : > { %v2918_v27 = vpop.permute.xlu0 %2917  ;;  %v2929_v7 = vmul.bf16 %v2920_v58, %v6328_v15 }
 0x7db   : > { %v3523_v29 = vcombine.low %v2857_v45, %v2858_v13  ;;  %v2928_v40 = vmul.bf16 %v2918_v27, %v6364_v19 }
 0x7dc   : > { %v2933_v39 = vadd.bf16 %v2929_v7, %v2913_v53 }
 0x7dd   : > { %v2932_v32 = vadd.bf16 %v2928_v40, %v2912_v8  ;;  %v2645_v9 = vpop.permute.xlu1 %2644 }
 0x7de   : > { %v2922_v28 = vpop.permute.xlu0 %2921 }
 0x7df   : > { %v3524_v54 = vcombine.low %v2931_v24, %v2932_v32  ;;  %v2930_v41 = vmul.bf16 %v2922_v28, %v6326_v18  ;;  %v6365_v18 = vld [vmem:[#allocation58_spill] sm:$0xff] }
 0x7e1   : > { %v2934_v57 = vadd.bf16 %v2930_v41, %v2914_v51  ;;  %v2643_v15 = vpop.permute.xlu1 %2642 }
 0x7e2   : > { %v2647_v59 = vpop.permute.xlu0 %2646 }
 0x7e3   : > { %v3525_v2 = vcombine.low %v2933_v39, %v2934_v57  ;;  %3676 = vmatprep.subr.bf16.mxu1 %v2647_v59 }
 0x7e4   : > { %3677 = vmatpush3.bf16.msra.mxu1 %v2647_v59 }
 0x7e5   : > { %3678 = vmatprep.subr.bf16.mxu1 %v2645_v9 }
 0x7e6   : > { %3001 = vrot.lane.b32.xlu1 %v6357_v50, %s4047_s21 }
 0x7e8   : > { %3679 = vmatpush3.bf16.msra.mxu1 %v2645_v9 }
 0x7e9   : > { %3680 = vmatprep.subr.bf16.mxu1 %v2643_v15 }
 0x7ea   : > { %2997 = vrot.lane.b32.xlu1 %v6356_v10, %s4047_s21 }
 0x7ec   : > { %3681 = vmatpush3.bf16.msra.mxu1 %v2643_v15  ;;  %2640 = vrot.lane.b32.xlu0 %v6365_v18, %s6330_s23  ;;  %s3458_s23 = sshll.u32 %s4153_s30, 3 }
 0x7ed   : > { %s439_s25 = scalar_lea.vmem %s5963_s10, %s3458_s23 }
 0x7ee   : > { %2935 = vrot.lane.b32.xlu1 %v6366_v63, %s4047_s21 }
 0x7f0   : > { %2999 = vrot.lane.b32.xlu0 %v6355_v55, %s4047_s21 }
 0x7f2   : > { %2937 = vrot.lane.b32.xlu1 %v6367_v61, %s4047_s21 }
 0x7f4   : > { %2995 = vrot.lane.b32.xlu0 %v6365_v18, %s4047_s21  ;;  %s6368_s21 = smov 24  }
 0x7f6   : > { %2963 = vrot.lane.b32.xlu1 %v3522_v20, %s4032_s26 }
 0x7f8   : > { %2949 = vrot.lane.b32.xlu0 %v3520_v14, %s4030_s11 }
 0x7fa   : > { %2977 = vrot.lane.b32.xlu1 %v3524_v54, %s4033_s27 }
 0x7fc   : > { %2951 = vrot.lane.b32.xlu0 %v3521_v4, %s4030_s11 }
 0x800   : > { %2965 = vrot.lane.b32.xlu0 %v3523_v29, %s4032_s26 }
 0x804   : > { %2979 = vrot.lane.b32.xlu0 %v3525_v2, %s4033_s27 }
 0x858   : > { %v2626_v34 = vpop.xlane.xlu0 %2625 }
 0x859   : > { %3942 = vrcp.f32 %v2626_v34 }
 0x85a   : > { %v2620_v46 = vpop.xlane.xlu1 %2619 }
 0x85b   : > { %3944 = vrcp.f32 %v2620_v46 }
 0x85e   : > { %v2629_v20 = vpop.xlane.xlu1 %2628 }
 0x85f   : > { %3946 = vrcp.f32 %v2629_v20  ;;  %v2623_v30 = vpop.xlane.xlu0 %2622 }
 0x860   : > { %3948 = vrcp.f32 %v2623_v30 }
 0x862   : > { %v3002_v35 = vpop.permute.xlu1 %3001 }
 0x863   : > { %v3010_v49 = vsel %vm1512_vm1, %v3002_v35, %v6337_v56  ;;  %v2641_v14 = vpop.permute.xlu0 %2640 }
 0x864   : > { %3682 = vmatprep.subr.bf16.mxu1 %v2641_v14  ;;  %v3021_v27 = vsel %vm1569_vm2, %v3010_v49, 0 }
 0x865   : > { %3683 = vmatpush3.bf16.msra.mxu1 %v2641_v14 }
 0x866   : > { %3732 = vmatprep.subr.msk.bf16.mxu1 %vm1569_vm2, %v3010_v49  ;;  %v2998_v12 = vpop.permute.xlu1 %2997  ;;  %v3943_v4 = vpop.eup %3942 }
 0x867   : > { %v3000_v17 = vpop.permute.xlu0 %2999  ;;  %v2636_v26 = vmul.f32 %v3943_v4, %v5780_v16  ;;  %v3006_v6 = vsel %vm1512_vm1, %v2998_v12, %v6343_v60 }
 0x868   : > { %v3945_v1 = vpop.eup %3944  ;;  %v3008_v16 = vsel %vm1512_vm1, %v3000_v17, %v6342_v62  ;;  %v3017_v62 = vsel %vm1569_vm2, %v3006_v6, 0 }
 0x869   : > { %v2634_v56 = vmul.f32 %v3945_v1, %v5787_v47  ;;  %v3019_v11 = vsel %vm1569_vm2, %v3008_v16, 0 }
 0x86a   : > { %v2936_v37 = vpop.permute.xlu1 %2935 }
 0x86b   : > { %v2996_v43 = vpop.permute.xlu0 %2995 }
 0x86c   : > { %v3947_v36 = vpop.eup %3946  ;;  %v3004_v19 = vsel %vm1512_vm1, %v2996_v43, %v6345_v42 }
 0x86d   : > { %v3949_v22 = vpop.eup %3948  ;;  %v2637_v45 = vmul.f32 %v3947_v36, %v5793_v23  ;;  %v3015_v24 = vsel %vm1569_vm2, %v3004_v19, 0 }
 0x86e   : > { %v2938_v44 = vpop.permute.xlu1 %2937  ;;  %v2635_v48 = vmul.f32 %v3949_v22, %v5795_v5 }
 0x86f   : > { %v2639_v13 = vpack.c.bf16 %v2637_v45, %v2636_v26  ;;  %v2950_v8 = vpop.permute.xlu0 %2949 }
 0x870   : > { %v2638_v38 = vpack.c.bf16 %v2635_v48, %v2634_v56  ;;  %v2983_v23 = vsel %vm1512_vm1, %v2936_v37, %v2950_v8 }
 0x872   : > { %3684 = vmatprep.mubr.msk.bf16.mxu1 %vm1631_vm5, %v2638_v38  ;;  %v2964_v58 = vpop.permute.xlu1 %2963 }
 0x873   : > { %3685 = vmatmul.mubr.msk.bf16.vlgmr.msra.gmra.mxu1 %vm1631_vm5, %v2639_v13  ;;  %v2988_v47 = vsel %vm1519_vm3, %v2983_v23, %v2964_v58  ;;  %v2952_v29 = vpop.permute.xlu0 %2951 }
 0x874   : > { %3689 = vmatpush3.bf16.xpose.msra.mxu1 %v3021_v27  ;;  %v2986_v32 = vsel %vm1512_vm1, %v2938_v44, %v2952_v29 }
 0x875   : > { %3733 = vmatprep.subr.msk.bf16.mxu1 %vm1569_vm2, %v3008_v16 }
 0x876   : > { %v2978_v5 = vpop.permute.xlu1 %2977 }
 0x877   : > { %v2992_v0 = vsel %vm1524_vm4, %v2988_v47, %v2978_v5  ;;  %v2966_v40 = vpop.permute.xlu0 %2965 }
 0x878   : > { %3696 = vmatprep.mubr.msk.bf16.mxu1 %vm1569_vm2, %v2992_v0  ;;  %v2990_v60 = vsel %vm1519_vm3, %v2986_v32, %v2966_v40  ;;  %v3900_v0 = vld [vmem:[%s5961_s8 + $0x8] sm:$0xff]  }
 0x87b   : > { %v2980_v7 = vpop.permute.xlu0 %2979 }
 0x87c   : > { %3691 = vmatpush3.bf16.xpose.msra.mxu1 %v3019_v11  ;;  %v2994_v28 = vsel %vm1524_vm4, %v2990_v60, %v2980_v7  ;;  %v3901_v11 = vld [vmem:[%s5961_s8] sm:$0xff]  }
 0x87d   : > { %3734 = vmatprep.subr.msk.bf16.mxu1 %vm1569_vm2, %v3006_v6 }
 0x884   : > { %3693 = vmatpush3.bf16.xpose.msra.mxu1 %v3017_v62 }
 0x885   : > { %3735 = vmatprep.subr.msk.bf16.mxu1 %vm1569_vm2, %v3004_v19 }
 0x88c   : > { %3695 = vmatpush3.bf16.xpose.msra.mxu1 %v3015_v24 }
 0x893   : > { %3697 = vmatmul.mubr.msk.bf16.vlgmr.msra.gmra.mxu1 %vm1569_vm2, %v2994_v28 }
 0x933   : > { %v3686_v53 = vpop.f32.mrf.mxu1 }
 0x935   : > { %v2692_v51 = vpop.f32.mrf.mxu1 }
 0x937   : > { %v3687_v54 = vpop.f32.mrf.mxu1 }
 0x938   : > { %v3867_v42 = vpack.i.bf16 %v3687_v54, %v3686_v53 }
 0x939   : > { %v2695_v41 = vpop.f32.mrf.mxu1 }
 0x93a   : > { %v3862_v39 = vpack.i.bf16 %v2695_v41, %v2692_v51 }
 0x953   : > { %v3698_v57 = vpop.f32.mrf.mxu1 }
 0x954   : > { %v3078_v34 = vsel %vm1631_vm5, %v3698_v57, -inf }
 0x955   : > { %v3057_v9 = vpop.f32.mrf.mxu1 }
 0x956   : > { %v3072_v59 = vsel %vm1631_vm5, %v3057_v9, -inf }
 0x957   : > { %3073 = vmax.xlane.f32.xlu1 %v3072_v59  ;;  %v3699_v2 = vpop.f32.mrf.mxu1 }
 0x958   : > { %v3081_v61 = vsel %vm1631_vm5, %v3699_v2, -inf }
 0x959   : > { %v3060_v15 = vpop.f32.mrf.mxu1 }
 0x95a   : > { %v3075_v63 = vsel %vm1631_vm5, %v3060_v15, -inf }
 0x95b   : > { %3082 = vmax.xlane.f32.xlu1 %v3081_v61  ;;  %3076 = vmax.xlane.f32.xlu0 %v3075_v63  ;;  %v6369_v63 = vld [vmem:[#allocation44_spill] sm:$0xff] }
 0x95f   : > { %3079 = vmax.xlane.f32.xlu0 %v3078_v34  ;;  %v6370_v34 = vld [vmem:[#allocation24_spill] sm:$0xff] }
 0x96c   : > { %3122 = vrot.lane.b32.xlu1 %v6355_v55, %s6334_s20 }
 0x975   : > { %3124 = vrot.lane.b32.xlu0 %v6357_v50, %s6334_s20 }
 0x9e0   : > { %v3074_v46 = vpop.xlane.xlu1 %3073 }
 0x9e1   : > { %v3084_v14 = vsub.f32 %v3057_v9, %v3074_v46 }
 0x9e3   : > { %v3088_v1 = vmul.f32 1.442695, %v3084_v14 }
 0x9e4   : > { %v3083_v20 = vpop.xlane.xlu1 %3082  ;;  %v3077_v30 = vpop.xlane.xlu0 %3076 }
 0x9e5   : > { %v3087_v35 = vsub.f32 %v3699_v2, %v3083_v20  ;;  %v3085_v49 = vsub.f32 %v3060_v15, %v3077_v30  ;;  %v6371_v20 = vld [vmem:[#allocation30_spill] sm:$0xff] }
 0x9e7   : > { %v3094_v12 = vmul.f32 1.442695, %v3087_v35  ;;  %v3090_v17 = vmul.f32 1.442695, %v3085_v49  ;;  %v6372_v35 = vld [vmem:[#allocation33_spill] sm:$0xff] }
 0x9e8   : > { %v3080_v4 = vpop.xlane.xlu0 %3079  ;;  %v3123_v55 = vpop.permute.xlu1 %3122 }
 0x9e9   : > { %3950 = vpow2.f32 %v3094_v12  ;;  %v3086_v37 = vsub.f32 %v3698_v57, %v3080_v4 }
 0x9ea   : > { %3952 = vpow2.f32 %v3090_v17 }
 0x9eb   : > { %v3092_v36 = vmul.f32 1.442695, %v3086_v37 }
 0x9ec   : > { %v3125_v43 = vpop.permute.xlu0 %3124 }
 0x9ed   : > { %3954 = vpow2.f32 %v3092_v36  ;;  %3700 = vmatprep.subr.bf16.mxu0 %v3125_v43 }
 0x9ee   : > { %3701 = vmatpush3.bf16.msra.mxu0 %v3125_v43  ;;  %3956 = vpow2.f32 %v3088_v1 }
 0x9ef   : > { %3702 = vmatprep.subr.bf16.mxu0 %v3123_v55 }
 0x9f2   : > { %3703 = vmatpush3.bf16.msra.mxu0 %v3123_v55 }
 0x9f6   : > { %v3951_v50 = vpop.eup %3950 }
 0x9f7   : > { %v3105_v22 = vsel %vm1631_vm5, %v3951_v50, 0.0  ;;  %v3953_v26 = vpop.eup %3952 }
 0x9f8   : > { %3106 = vadd.xlane.f32.xlu1 %v3105_v22  ;;  %v3099_v44 = vsel %vm1631_vm5, %v3953_v26, 0.0 }
 0x9fa   : > { %v3955_v45 = vpop.eup %3954 }
 0x9fb   : > { %v3102_v56 = vsel %vm1631_vm5, %v3955_v45, 0.0  ;;  %v3957_v48 = vpop.eup %3956 }
 0x9fc   : > { %3100 = vadd.xlane.f32.xlu1 %v3099_v44  ;;  %3103 = vadd.xlane.f32.xlu0 %v3102_v56  ;;  %v3096_v13 = vsel %vm1631_vm5, %v3957_v48, 0.0  ;;  %v3530_v44 = vld [vmem:[%s5962_s9] ss:$0 sm:$0xff] }
 0xa00   : > { %3097 = vadd.xlane.f32.xlu0 %v3096_v13 }
 0xa0d   : > { %3120 = vrot.lane.b32.xlu1 %v6356_v10, %s6334_s20 }
 0xa11   : > { %3853 = vrot.lane.b32.xlu1 %v3852_v21, %s4030_s11 }
 0xa15   : > { %3863 = vrot.lane.b32.xlu1 %v3862_v39, %s4033_s27 }
 0xa16   : > { %3118 = vrot.lane.b32.xlu0 %v6365_v18, %s6334_s20 }
 0xa1a   : > { %3858 = vrot.lane.b32.xlu0 %v3857_v25, %s4030_s11 }
 0xa1e   : > { %3868 = vrot.lane.b32.xlu0 %v3867_v42, %s4033_s27 }
 0xa81   : > { %v3107_v38 = vpop.xlane.xlu1 %3106 }
 0xa85   : > { %v3101_v8 = vpop.xlane.xlu1 %3100  ;;  %v3104_v10 = vpop.xlane.xlu0 %3103 }
 0xa86   : > { %3958 = vrcp.f32 %v3104_v10 }
 0xa87   : > { %3960 = vrcp.f32 %v3101_v8 }
 0xa88   : > { %3962 = vrcp.f32 %v3107_v38 }
 0xa89   : > { %v3121_v31 = vpop.permute.xlu1 %3120  ;;  %v3098_v33 = vpop.xlane.xlu0 %3097 }
 0xa8a   : > { %3964 = vrcp.f32 %v3098_v33  ;;  %3704 = vmatprep.subr.bf16.mxu0 %v3121_v31 }
 0xa8b   : > { %3705 = vmatpush3.bf16.msra.mxu0 %v3121_v31 }
 0xa8d   : > { %v3119_v21 = vpop.permute.xlu0 %3118  ;;  %v3854_v32 = vpop.permute.xlu1 %3853 }
 0xa8e   : > { %3706 = vmatprep.subr.bf16.mxu0 %v3119_v21  ;;  %v3856_v53 = vunpack.i.h.bf16 %v3854_v32  ;;  %v3855_v51 = vunpack.i.l.bf16 %v3854_v32 }
 0xa8f   : > { %3707 = vmatpush3.bf16.msra.mxu0 %v3119_v21 }
 0xa90   : > { %3712 = vmatprep.subr.bf16.mxu0 %v3900_v0  ;;  %v3234_v61 = vsel %vm1512_vm1, %v6369_v63, %v3856_v53  ;;  %v3233_v46 = vsel %vm1512_vm1, %v6370_v34, %v3855_v51 }
 0xa91   : > { %v3859_v7 = vpop.permute.xlu0 %3858  ;;  %v3864_v28 = vpop.permute.xlu1 %3863 }
 0xa92   : > { %v3861_v54 = vunpack.i.h.bf16 %v3859_v7  ;;  %v3860_v42 = vunpack.i.l.bf16 %v3859_v7  ;;  %v3866_v57 = vunpack.i.h.bf16 %v3864_v28  ;;  %v3865_v9 = vunpack.i.l.bf16 %v3864_v28 }
 0xa93   : > { %v3959_v18 = vpop.eup %3958 }
 0xa94   : > { %v3961_v58 = vpop.eup %3960  ;;  %v3114_v25 = vmul.f32 %v3959_v18, %v3955_v45  ;;  %v3236_v30 = vsel %vm1512_vm1, %v6371_v20, %v3861_v54  ;;  %v3235_v49 = vsel %vm1512_vm1, %v6372_v35, %v3860_v42  ;;  %v3237_v1 = vsel %vm1524_vm4, %v3233_v46, %v3865_v9 }
 0xa95   : > { %v3963_v52 = vpop.eup %3962  ;;  %v3113_v16 = vmul.f32 %v3961_v58, %v3953_v26  ;;  %v3869_v60 = vpop.permute.xlu0 %3868  ;;  %v3238_v36 = vsel %vm1524_vm4, %v3234_v61, %v3866_v57 }
 0xa96   : > { %v3115_v23 = vmul.f32 %v3963_v52, %v3951_v50  ;;  %v3871_v41 = vunpack.i.h.bf16 %v3869_v60  ;;  %v3870_v39 = vunpack.i.l.bf16 %v3869_v60 }
 0xa97   : > { %v3965_v3 = vpop.eup %3964 }
 0xa98   : > { %v3112_v27 = vmul.f32 %v3965_v3, %v3957_v48  ;;  %v3117_v5 = vpack.c.bf16 %v3115_v23, %v3114_v25  ;;  %v3239_v12 = vsel %vm1524_vm4, %v3235_v49, %v3870_v39  ;;  %v3240_v17 = vsel %vm1524_vm4, %v3236_v30, %v3871_v41 }
 0xa9a   : > { %v3116_v47 = vpack.c.bf16 %v3113_v16, %v3112_v27 }
 0xa9c   : > { %3708 = vmatprep.mubr.msk.bf16.mxu0 %vm1631_vm5, %v3116_v47 }
 0xa9d   : > { %3709 = vmatmul.mubr.msk.bf16.vlgmr.msra.gmra.mxu0 %vm1631_vm5, %v3117_v5 }
 0xa9e   : > { %3713 = vmatpush3.bf16.msra.mxu0 %v3900_v0 }
 0xa9f   : > { %3714 = vmatprep.subr.bf16.mxu0 %v3901_v11 }
 0xaa2   : > { %3715 = vmatpush3.bf16.msra.mxu0 %v3901_v11 }
 0xb5d   : > { %v3710_v6 = vpop.f32.mrf.mxu0 }
 0xb5f   : > { %v3170_v62 = vpop.f32.mrf.mxu0 }
 0xb61   : > { %v3711_v29 = vpop.f32.mrf.mxu0 }
 0xb62   : > { %v3877_v19 = vpack.i.bf16 %v3711_v29, %v3710_v6 }
 0xb63   : > { %v3173_v40 = vpop.f32.mrf.mxu0 }
 0xb64   : > { %v3872_v24 = vpack.i.bf16 %v3173_v40, %v3170_v62  ;;  %3878 = vrot.lane.b32.xlu0 %v3877_v19, %s6368_s21 }
 0xb66   : > { %3873 = vrot.lane.b32.xlu1 %v3872_v24, %s6368_s21 }
 0xbd6   : > { %v3879_v59 = vpop.permute.xlu0 %3878 }
 0xbd7   : > { %v3881_v2 = vunpack.i.h.bf16 %v3879_v59  ;;  %v3880_v15 = vunpack.i.l.bf16 %v3879_v59 }
 0xbd8   : > { %v3874_v14 = vpop.permute.xlu1 %3873 }
 0xbd9   : > { %v3876_v4 = vunpack.i.h.bf16 %v3874_v14  ;;  %v3875_v37 = vunpack.i.l.bf16 %v3874_v14  ;;  %v3244_v43 = vsel %vm3241_vm6, %v3239_v12, %v3880_v15  ;;  %v3245_v55 = vsel %vm3241_vm6, %v3240_v17, %v3881_v2 }
 0xbda   : > { %v3247_v45 = vpack.c.bf16 %v3245_v55, %v3244_v43 }
 0xbdb   : > { %v3243_v50 = vsel %vm3241_vm6, %v3238_v36, %v3876_v4  ;;  %v3242_v22 = vsel %vm3241_vm6, %v3237_v1, %v3875_v37 }
 0xbdc   : > { %v3246_v26 = vpack.c.bf16 %v3243_v50, %v3242_v22 }
 0xbde   : > { %3716 = vmatprep.mubr.msk.bf16.mxu0 %vm492_vm0, %v3246_v26 }
 0xbdf   : > { %3717 = vmatmul.mubr.msk.bf16.vlgmr.msra.gmra.mxu0 %vm492_vm0, %v3247_v45 }
 0xc9f   : > { %v3718_v56 = vpop.f32.mrf.mxu0 }
 0xca0   : > { %v3320_v48 = vadd.f32 %v3718_v56, %v3530_v44 }
 0xca1   : > { %v3311_v13 = vpop.f32.mrf.mxu0 }
 0xca2   : > { %3328 = vst.msk [vmem:[%s439_s25 + $0x10] sm:$0xff] %vm492_vm0, %v3320_v48  ;;  %v3312_v38 = vadd.f32 %v3530_v44, %v3311_v13 }
 0xca3   : > { %v3719_v8 = vpop.f32.mrf.mxu0 }
 0xca4   : > { %3326 = vst.msk [vmem:[%s439_s25] sm:$0xff] %vm492_vm0, %v3312_v38  ;;  %v3323_v10 = vadd.f32 %v3719_v8, %v3530_v44 }
 0xca5   : > { %v3314_v31 = vpop.f32.mrf.mxu0 }
 0xca6   : > { %3329 = vst.msk [vmem:[%s439_s25 + $0x18] sm:$0xff] %vm492_vm0, %v3323_v10  ;;  %v3315_v33 = vadd.f32 %v3530_v44, %v3314_v31 }
 0xca8   : > { %3327 = vst.msk [vmem:[%s439_s25 + $0x8] sm:$0xff] %vm492_vm0, %v3315_v33 }
 0xca9 PF: > { %s20_s17 = sadd.s32 1, %s4004_s17   ;;  %s6373_s13 = smov %s3996_s15 }
 0xcaa   : > { %p17_p7 = scmp.ge.s32.totalorder %s20_s17, 6   ;;  %s6374_s14 = smov %s4000_s16 }
 0xcab   : > { %s6375_s15 = smov %s6378_s18  ;;  %s6376_s16 = smov %s6382_s19 }
 0xcac   :  { %19 = sbr.rel (!%p17_p7) target bundleno = 3 (0x3), region = 96 }

</bundles_post_ra>
